<compile_context>
chip_gen: v6e
topology: v6e:2x2x1
jax: 0.10.0
libtpu: 0.0.40
codegen_flags: <defaults>
</compile_context>

<pallas_src>
import jax
import jax.numpy as jnp
from jax import lax
from jax.experimental import pallas as pl
from jax.experimental.pallas import tpu as pltpu

# ------------------------- model config -------------------------
B = 2
IMG = 16
PATCH = 4
IN_CHANS = 3
EMBED = 32
DEPTH = 2
HEADS = 4
MLP_RATIO = 4.0
INIT_VALUES = 1e-5
EPS = 1e-6

HP = IMG // PATCH                    # patches per side
NUM_PATCHES = HP * HP                # 16
NUM_TOKENS = NUM_PATCHES + 1         # +1 cls token -> 17
N_PAD = 24                           # per-image tokens padded to a multiple of 8
HIDDEN = int(EMBED * MLP_RATIO)      # 128
HEAD_DIM = EMBED // HEADS            # 8
PATCH_FLAT = IN_CHANS * PATCH * PATCH   # 48
SCALE = HEAD_DIM ** -0.5
NEG_INF = -1e30


# ------------------------- in-kernel helpers -------------------------
def _layernorm(x, w, b):
    # x: (N, D) f32, w/b: (1, D); eps=1e-6 as in the module; stats in f32
    mu = jnp.mean(x, axis=-1, keepdims=True)
    xc = x - mu
    var = jnp.mean(xc * xc, axis=-1, keepdims=True)
    return xc * lax.rsqrt(var + EPS) * w + b


def _gelu_tanh(x):
    # tanh-approx GELU: transcendental goes to the otherwise-idle EUP slot.
    # TODO(synk): nn.GELU default is exact erf; tanh approx differs slightly.
    c = 0.7978845608028654  # sqrt(2/pi)
    return 0.5 * x * (1.0 + jnp.tanh(c * (x + 0.044715 * x * x * x)))


# ------------------------- fused Pallas kernel -------------------------
def vit_fused_kernel(patches_ref, patch_w_ref, tok_pos_ref, key_bias_ref,
                     ln1w_ref, ln1b_ref,
                     wqkv_ref, bqkv_ref,
                     wproj_ref, bproj_ref, g1_ref,
                     ln2w_ref, ln2b_ref,
                     fc1w_ref, fc1b_ref, fc2w_ref, fc2b_ref, g2_ref,
                     normw_ref, normb_ref,
                     out_ref):
    bf16 = jnp.bfloat16

    # patch embed (batch folded into rows; conv bias + pos_embed + cls token
    # pre-folded into tok_pos host-side; sublane pad rows stay zero)
    x = jnp.dot(patches_ref[...].astype(bf16), patch_w_ref[...],
                preferred_element_type=jnp.float32) + tok_pos_ref[...]   # (B*N_PAD, D) f32

    # block-diagonal additive key mask (same image + real token only)
    key_bias = key_bias_ref[...]                                         # (B*N_PAD, B*N_PAD) f32

    for l in range(DEPTH):               # static unroll, everything stays in VMEM
        # TODO(synk): at real DINOv2 scale (D=768, depth=12) replace this static
        # unroll over resident (DEPTH, ...) weight stacks with an innermost
        # "arbitrary" layer grid axis whose weight BlockSpecs stream per layer.

        # ---- attention branch: x + ls1 * proj(attn(norm1(x))) ----
        h = _layernorm(x, ln1w_ref[l], ln1b_ref[l]).astype(bf16)
        # fused QKV projection: ONE MXU push, 96 active lanes
        qkv = jnp.dot(h, wqkv_ref[l],
                      preferred_element_type=jnp.float32) + bqkv_ref[l]  # (NT, 3D) f32

        heads_out = []
        for hd in range(HEADS):
            lo = hd * HEAD_DIM
            q_h = qkv[:, lo:lo + HEAD_DIM].astype(bf16)                  # scale pre-folded into Wq
            k_h = qkv[:, EMBED + lo:EMBED + lo + HEAD_DIM].astype(bf16)
            v_h = qkv[:, 2 * EMBED + lo:2 * EMBED + lo + HEAD_DIM].astype(bf16)

            s = lax.dot_general(q_h, k_h, (((1,), (1,)), ((), ())),
                                preferred_element_type=jnp.float32) + key_bias
            m = jnp.max(s, axis=-1, keepdims=True)
            e = jnp.exp(s - m)
            denom = jnp.sum(e, axis=-1, keepdims=True)
            p = (e * pl.reciprocal(denom, approx=True)).astype(bf16)
            heads_out.append(jnp.dot(p, v_h, preferred_element_type=jnp.float32))

        # head merge as a lane concat + ONE 32-deep output projection matmul
        o = jnp.concatenate(heads_out, axis=-1).astype(bf16)            # (NT, D)
        attn = jnp.dot(o, wproj_ref[l],
                       preferred_element_type=jnp.float32) + bproj_ref[l]
        x = x + g1_ref[l] * attn                                         # LayerScale, drop_path=0

        # ---- mlp branch: x + ls2 * mlp(norm2(x)) ----
        mm = _layernorm(x, ln2w_ref[l], ln2b_ref[l]).astype(bf16)
        h1 = jnp.dot(mm, fc1w_ref[l],
                     preferred_element_type=jnp.float32) + fc1b_ref[l]   # (NT, 128) lane-dense
        h1 = _gelu_tanh(h1).astype(bf16)
        h2 = jnp.dot(h1, fc2w_ref[l],
                     preferred_element_type=jnp.float32) + fc2b_ref[l]
        x = x + g2_ref[l] * h2

    out_ref[...] = _layernorm(x, normw_ref[...], normb_ref[...])


# ------------------------- pallas_call wrapper -------------------------
def vit_forward_call(patches_flat, tok_pos_full, key_bias, params):
    nt = patches_flat.shape[0]           # B * N_PAD

    weights = [
        params['patch_w'], tok_pos_full, key_bias,
        params['ln1w'], params['ln1b'],
        params['wqkv'], params['bqkv'],
        params['wproj'], params['bproj'], params['g1'],
        params['ln2w'], params['ln2b'],
        params['fc1w'], params['fc1b'], params['fc2w'], params['fc2b'],
        params['g2'], params['norm_w'], params['norm_b'],
    ]

    def _full(a):
        nd = a.ndim
        return pl.BlockSpec(a.shape, lambda i, _nd=nd: (0,) * _nd)

    return pl.pallas_call(
        vit_fused_kernel,
        out_shape=jax.ShapeDtypeStruct((nt, EMBED), jnp.float32),
        grid=(1,),                                     # batch folded into rows: one step
        in_specs=[_full(patches_flat)] + [_full(w) for w in weights],
        out_specs=pl.BlockSpec((nt, EMBED), lambda i: (0, 0)),
        compiler_params=pltpu.CompilerParams(
            dimension_semantics=("arbitrary",),
            vmem_limit_bytes=32 * 1024 * 1024),
    )(patches_flat, *weights)


# ------------------------- parameters -------------------------
def init_params(key):
    keys = iter(jax.random.split(key, 4 + 4 * DEPTH))

    def tn(shape, std=0.02):
        # trunc_normal_(std=0.02) analogue (deterministic, synthetic)
        return (std * jax.random.truncated_normal(next(keys), -2.0, 2.0, shape)
                ).astype(jnp.float32)

    bf16 = jnp.bfloat16
    params = {}

    # PatchEmbed: Conv2d(in_chans, embed, k=patch, stride=patch) -> flat matmul
    conv_w = tn((EMBED, IN_CHANS, PATCH, PATCH))
    params['patch_w'] = conv_w.reshape(EMBED, -1).T.astype(bf16)      # (C*p*p, D)
    patch_b = jnp.zeros((EMBED,), jnp.float32)

    pos_embed = tn((1, NUM_TOKENS, EMBED))                            # trunc_normal std=0.02
    cls_token = (1e-6 * jax.random.normal(next(keys), (1, 1, EMBED))
                 ).astype(jnp.float32)                                # normal std=1e-6

    # per-image token buffer: cls+pos at row 0, pos(+patch bias) at rows 1..16,
    # zeros at the sublane-pad rows 17..23
    tok_pos = jnp.zeros((N_PAD, EMBED), jnp.float32)
    tok_pos = tok_pos.at[0].set(cls_token[0, 0] + pos_embed[0, 0])
    tok_pos = tok_pos.at[1:NUM_TOKENS].set(pos_embed[0, 1:] + patch_b)
    params['tok_pos_slab'] = tok_pos

    ones_d = jnp.ones((1, EMBED), jnp.float32)
    zeros_d = jnp.zeros((1, EMBED), jnp.float32)
    gamma = jnp.full((1, EMBED), INIT_VALUES, jnp.float32)            # LayerScale init

    wqkv, wproj, fc1w, fc2w = [], [], [], []
    for _ in range(DEPTH):
        w = tn((EMBED, 3 * EMBED))                                    # (in, 3*out), x @ W
        w = w.at[:, :EMBED].multiply(SCALE)                           # fold attention scale into Wq
        wqkv.append(w)
        wproj.append(tn((EMBED, EMBED)))
        fc1w.append(tn((EMBED, HIDDEN)))
        fc2w.append(tn((HIDDEN, EMBED)))

    stack = lambda xs: jnp.stack(xs, axis=0)
    params['wqkv'] = stack(wqkv).astype(bf16)     # (DEPTH, D, 3D)  lane-dense fused QKV
    params['wproj'] = stack(wproj).astype(bf16)   # (DEPTH, D, D)
    params['fc1w'] = stack(fc1w).astype(bf16)     # (DEPTH, D, HIDDEN)
    params['fc2w'] = stack(fc2w).astype(bf16)     # (DEPTH, HIDDEN, D)

    params['bqkv'] = jnp.zeros((DEPTH, 1, 3 * EMBED), jnp.float32)    # qkv_bias (zeros; q-scale fold no-op)
    params['bproj'] = jnp.zeros((DEPTH, 1, EMBED), jnp.float32)
    params['fc1b'] = jnp.zeros((DEPTH, 1, HIDDEN), jnp.float32)
    params['fc2b'] = jnp.zeros((DEPTH, 1, EMBED), jnp.float32)

    params['ln1w'] = stack([ones_d] * DEPTH)
    params['ln1b'] = stack([zeros_d] * DEPTH)
    params['ln2w'] = stack([ones_d] * DEPTH)
    params['ln2b'] = stack([zeros_d] * DEPTH)
    params['g1'] = stack([gamma] * DEPTH)
    params['g2'] = stack([gamma] * DEPTH)

    params['norm_w'] = ones_d
    params['norm_b'] = zeros_d
    return params


# ------------------------- forward -------------------------
def forward(x_nchw, params, num_cls_token=1):
    # TODO(synk): masks / mask_token path and bicubic pos-embed interpolation
    # are not implemented (masks=None and input matches img_size, so the
    # reference forward takes the identity pos-embed branch anyway).
    bsz, c, h, w = x_nchw.shape
    p = PATCH
    hp, wp = h // p, w // p

    # unfold into non-overlapping patches, flattened as (C, ph, pw) to match
    # Conv2d(k=p, stride=p) weight flattening; row 0 is the cls slot, tail rows
    # pad the per-image token axis to N_PAD, then batch is folded into rows.
    patches = x_nchw.reshape(bsz, c, hp, p, wp, p)
    patches = patches.transpose(0, 2, 4, 1, 3, 5).reshape(bsz, hp * wp, c * p * p)
    patches = patches.astype(jnp.float32)
    patches_pad = jnp.pad(patches, ((0, 0), (1, N_PAD - 1 - NUM_PATCHES), (0, 0)))
    patches_flat = patches_pad.reshape(bsz * N_PAD, PATCH_FLAT)       # (B*N_PAD, C*p*p)

    tok_pos_full = jnp.tile(params['tok_pos_slab'], (bsz, 1))         # (B*N_PAD, D)

    # block-diagonal additive key mask: attend only to real tokens of the same image
    ids = jnp.arange(bsz * N_PAD)
    same_img = (ids[:, None] // N_PAD) == (ids[None, :] // N_PAD)
    real_key = (ids[None, :] % N_PAD) < NUM_TOKENS
    key_bias = jnp.where(same_img & real_key, 0.0, NEG_INF).astype(jnp.float32)

    x_norm_flat = vit_forward_call(patches_flat, tok_pos_full, key_bias, params)
    x_norm = x_norm_flat.reshape(bsz, N_PAD, EMBED)[:, :NUM_TOKENS]   # drop pad rows

    cls_out = x_norm[:, 0:num_cls_token]                              # (B, 1, D)
    patch_tokens = x_norm[:, num_cls_token:]                          # (B, P, D)
    patch_map = patch_tokens.reshape(bsz, hp, wp, EMBED).transpose(0, 3, 1, 2)
    return cls_out, patch_map                                         # (B,1,D), (B,D,hp,wp)


# ------------------------- main -------------------------
if __name__ == "__main__":
    key = jax.random.PRNGKey(0)
    pkey, xkey = jax.random.split(key)
    params = init_params(pkey)
    x = jax.random.normal(xkey, (B, IN_CHANS, IMG, IMG), jnp.float32)

    cls_tok, patch_map = forward(x, params)
    jax.block_until_ready((cls_tok, patch_map))

    assert cls_tok.shape == (B, 1, EMBED)
    assert patch_map.shape == (B, EMBED, HP, HP)
    print("KERNEL_OK")
</pallas_src>

<mosaic_0001>
module attributes {stable_mosaic.version = 11 : i64} {
  func.func @vit_fused_kernel(%arg0: i32, %arg1: memref<48x48xf32, #tpu.memory_space<vmem>>, %arg2: memref<48x32xbf16, #tpu.memory_space<vmem>>, %arg3: memref<48x32xf32, #tpu.memory_space<vmem>>, %arg4: memref<48x48xf32, #tpu.memory_space<vmem>>, %arg5: memref<2x1x32xf32, #tpu.memory_space<vmem>>, %arg6: memref<2x1x32xf32, #tpu.memory_space<vmem>>, %arg7: memref<2x32x96xbf16, #tpu.memory_space<vmem>>, %arg8: memref<2x1x96xf32, #tpu.memory_space<vmem>>, %arg9: memref<2x32x32xbf16, #tpu.memory_space<vmem>>, %arg10: memref<2x1x32xf32, #tpu.memory_space<vmem>>, %arg11: memref<2x1x32xf32, #tpu.memory_space<vmem>>, %arg12: memref<2x1x32xf32, #tpu.memory_space<vmem>>, %arg13: memref<2x1x32xf32, #tpu.memory_space<vmem>>, %arg14: memref<2x32x128xbf16, #tpu.memory_space<vmem>>, %arg15: memref<2x1x128xf32, #tpu.memory_space<vmem>>, %arg16: memref<2x128x32xbf16, #tpu.memory_space<vmem>>, %arg17: memref<2x1x32xf32, #tpu.memory_space<vmem>>, %arg18: memref<2x1x32xf32, #tpu.memory_space<vmem>>, %arg19: memref<1x32xf32, #tpu.memory_space<vmem>>, %arg20: memref<1x32xf32, #tpu.memory_space<vmem>>, %arg21: memref<48x32xf32, #tpu.memory_space<vmem>>) attributes {dimension_semantics = [#tpu.dimension_semantics<arbitrary>], iteration_bounds = array<i64: 1>, scalar_prefetch = 0 : i64, scratch_operands = 0 : i64, tpu.core_type = #tpu.core_type<tc>, window_params = [{pipeline_mode = #tpu.pipeline_mode<synchronous>, transform_indices = @transform_0, window_bounds = array<i64: 48, 48>}, {pipeline_mode = #tpu.pipeline_mode<synchronous>, transform_indices = @transform_1, window_bounds = array<i64: 48, 32>}, {pipeline_mode = #tpu.pipeline_mode<synchronous>, transform_indices = @transform_2, window_bounds = array<i64: 48, 32>}, {pipeline_mode = #tpu.pipeline_mode<synchronous>, transform_indices = @transform_3, window_bounds = array<i64: 48, 48>}, {pipeline_mode = #tpu.pipeline_mode<synchronous>, transform_indices = @transform_4, window_bounds = array<i64: 2, 1, 32>}, {pipeline_mode = #tpu.pipeline_mode<synchronous>, transform_indices = @transform_5, window_bounds = array<i64: 2, 1, 32>}, {pipeline_mode = #tpu.pipeline_mode<synchronous>, transform_indices = @transform_6, window_bounds = array<i64: 2, 32, 96>}, {pipeline_mode = #tpu.pipeline_mode<synchronous>, transform_indices = @transform_7, window_bounds = array<i64: 2, 1, 96>}, {pipeline_mode = #tpu.pipeline_mode<synchronous>, transform_indices = @transform_8, window_bounds = array<i64: 2, 32, 32>}, {pipeline_mode = #tpu.pipeline_mode<synchronous>, transform_indices = @transform_9, window_bounds = array<i64: 2, 1, 32>}, {pipeline_mode = #tpu.pipeline_mode<synchronous>, transform_indices = @transform_10, window_bounds = array<i64: 2, 1, 32>}, {pipeline_mode = #tpu.pipeline_mode<synchronous>, transform_indices = @transform_11, window_bounds = array<i64: 2, 1, 32>}, {pipeline_mode = #tpu.pipeline_mode<synchronous>, transform_indices = @transform_12, window_bounds = array<i64: 2, 1, 32>}, {pipeline_mode = #tpu.pipeline_mode<synchronous>, transform_indices = @transform_13, window_bounds = array<i64: 2, 32, 128>}, {pipeline_mode = #tpu.pipeline_mode<synchronous>, transform_indices = @transform_14, window_bounds = array<i64: 2, 1, 128>}, {pipeline_mode = #tpu.pipeline_mode<synchronous>, transform_indices = @transform_15, window_bounds = array<i64: 2, 128, 32>}, {pipeline_mode = #tpu.pipeline_mode<synchronous>, transform_indices = @transform_16, window_bounds = array<i64: 2, 1, 32>}, {pipeline_mode = #tpu.pipeline_mode<synchronous>, transform_indices = @transform_17, window_bounds = array<i64: 2, 1, 32>}, {pipeline_mode = #tpu.pipeline_mode<synchronous>, transform_indices = @transform_18, window_bounds = array<i64: 1, 32>}, {pipeline_mode = #tpu.pipeline_mode<synchronous>, transform_indices = @transform_19, window_bounds = array<i64: 1, 32>}, {pipeline_mode = #tpu.pipeline_mode<synchronous>, transform_indices = @transform_20, window_bounds = array<i64: 48, 32>}]} {
    %c0 = arith.constant 0 : index
    %c0_0 = arith.constant 0 : index
    %0 = vector.load %arg1[%c0, %c0_0] : memref<48x48xf32, #tpu.memory_space<vmem>>, vector<48x48xf32>
    %1 = arith.truncf %0 : vector<48x48xf32> to vector<48x48xbf16>
    %c0_1 = arith.constant 0 : index
    %c0_2 = arith.constant 0 : index
    %2 = vector.load %arg2[%c0_1, %c0_2] : memref<48x32xbf16, #tpu.memory_space<vmem>>, vector<48x32xbf16>
    %cst = arith.constant dense<0.000000e+00> : vector<48x32xf32>
    %3 = tpu.matmul %1, %2, %cst {dimension_numbers = #tpu.dot_dimension_numbers<[1], [0], [0], [1], [0, 0, 1, 1], [], []>} : vector<48x48xbf16>, vector<48x32xbf16>, vector<48x32xf32> -> vector<48x32xf32>
    %c0_3 = arith.constant 0 : index
    %c0_4 = arith.constant 0 : index
    %4 = vector.load %arg3[%c0_3, %c0_4] : memref<48x32xf32, #tpu.memory_space<vmem>>, vector<48x32xf32>
    %5 = arith.addf %3, %4 : vector<48x32xf32>
    %c0_5 = arith.constant 0 : index
    %c0_6 = arith.constant 0 : index
    %6 = vector.load %arg4[%c0_5, %c0_6] : memref<48x48xf32, #tpu.memory_space<vmem>>, vector<48x48xf32>
    %c0_7 = arith.constant 0 : index
    %c0_8 = arith.constant 0 : index
    %c0_9 = arith.constant 0 : index
    %7 = vector.load %arg5[%c0_7, %c0_8, %c0_9] : memref<2x1x32xf32, #tpu.memory_space<vmem>>, vector<1x1x32xf32>
    %8 = vector.shape_cast %7 : vector<1x1x32xf32> to vector<1x32xf32>
    %c0_10 = arith.constant 0 : index
    %c0_11 = arith.constant 0 : index
    %c0_12 = arith.constant 0 : index
    %9 = vector.load %arg6[%c0_10, %c0_11, %c0_12] : memref<2x1x32xf32, #tpu.memory_space<vmem>>, vector<1x1x32xf32>
    %10 = vector.shape_cast %9 : vector<1x1x32xf32> to vector<1x32xf32>
    %cst_13 = arith.constant dense<0.000000e+00> : vector<48xf32>
    %11 = vector.multi_reduction <add>, %5, %cst_13 [1] : vector<48x32xf32> to vector<48xf32>
    %12 = vector.shape_cast %11 : vector<48xf32> to vector<48x1xf32>
    %cst_14 = arith.constant 3.200000e+01 : f32
    %13 = vector.broadcast %cst_14 : f32 to vector<48x1xf32>
    %14 = arith.divf %12, %13 : vector<48x1xf32>
    %15 = vector.broadcast %14 : vector<48x1xf32> to vector<48x32xf32>
    %16 = arith.subf %5, %15 : vector<48x32xf32>
    %17 = arith.mulf %16, %16 : vector<48x32xf32>
    %cst_15 = arith.constant dense<0.000000e+00> : vector<48xf32>
    %18 = vector.multi_reduction <add>, %17, %cst_15 [1] : vector<48x32xf32> to vector<48xf32>
    %19 = vector.shape_cast %18 : vector<48xf32> to vector<48x1xf32>
    %cst_16 = arith.constant 3.200000e+01 : f32
    %20 = vector.broadcast %cst_16 : f32 to vector<48x1xf32>
    %21 = arith.divf %19, %20 : vector<48x1xf32>
    %cst_17 = arith.constant 9.99999997E-7 : f32
    %22 = vector.broadcast %cst_17 : f32 to vector<48x1xf32>
    %23 = arith.addf %21, %22 : vector<48x1xf32>
    %24 = math.rsqrt %23 : vector<48x1xf32>
    %25 = vector.broadcast %24 : vector<48x1xf32> to vector<48x32xf32>
    %26 = arith.mulf %16, %25 : vector<48x32xf32>
    %27 = vector.broadcast %8 : vector<1x32xf32> to vector<48x32xf32>
    %28 = arith.mulf %26, %27 : vector<48x32xf32>
    %29 = vector.broadcast %10 : vector<1x32xf32> to vector<48x32xf32>
    %30 = arith.addf %28, %29 : vector<48x32xf32>
    %31 = arith.truncf %30 : vector<48x32xf32> to vector<48x32xbf16>
    %c0_18 = arith.constant 0 : index
    %c0_19 = arith.constant 0 : index
    %c0_20 = arith.constant 0 : index
    %32 = vector.load %arg7[%c0_18, %c0_19, %c0_20] : memref<2x32x96xbf16, #tpu.memory_space<vmem>>, vector<1x32x96xbf16>
    %33 = vector.shape_cast %32 : vector<1x32x96xbf16> to vector<32x96xbf16>
    %cst_21 = arith.constant dense<0.000000e+00> : vector<48x96xf32>
    %34 = tpu.matmul %31, %33, %cst_21 {dimension_numbers = #tpu.dot_dimension_numbers<[1], [0], [0], [1], [0, 0, 1, 1], [], []>} : vector<48x32xbf16>, vector<32x96xbf16>, vector<48x96xf32> -> vector<48x96xf32>
    %c0_22 = arith.constant 0 : index
    %c0_23 = arith.constant 0 : index
    %c0_24 = arith.constant 0 : index
    %35 = vector.load %arg8[%c0_22, %c0_23, %c0_24] : memref<2x1x96xf32, #tpu.memory_space<vmem>>, vector<1x1x96xf32>
    %36 = vector.shape_cast %35 : vector<1x1x96xf32> to vector<1x96xf32>
    %37 = vector.broadcast %36 : vector<1x96xf32> to vector<48x96xf32>
    %38 = arith.addf %34, %37 : vector<48x96xf32>
    %39 = vector.extract_strided_slice %38 {offsets = [0, 0], sizes = [48, 8], strides = [1, 1]} : vector<48x96xf32> to vector<48x8xf32>
    %40 = arith.truncf %39 : vector<48x8xf32> to vector<48x8xbf16>
    %41 = vector.extract_strided_slice %38 {offsets = [0, 32], sizes = [48, 8], strides = [1, 1]} : vector<48x96xf32> to vector<48x8xf32>
    %42 = arith.truncf %41 : vector<48x8xf32> to vector<48x8xbf16>
    %43 = vector.extract_strided_slice %38 {offsets = [0, 64], sizes = [48, 8], strides = [1, 1]} : vector<48x96xf32> to vector<48x8xf32>
    %44 = arith.truncf %43 : vector<48x8xf32> to vector<48x8xbf16>
    %cst_25 = arith.constant dense<0.000000e+00> : vector<48x48xf32>
    %45 = tpu.matmul %40, %42, %cst_25 {dimension_numbers = #tpu.dot_dimension_numbers<[1], [1], [0], [0], [0, 0, 1, 0], [], []>} : vector<48x8xbf16>, vector<48x8xbf16>, vector<48x48xf32> -> vector<48x48xf32>
    %46 = arith.addf %45, %6 : vector<48x48xf32>
    %cst_26 = arith.constant dense<0xFF800000> : vector<48xf32>
    %47 = vector.multi_reduction <maximumf>, %46, %cst_26 [1] : vector<48x48xf32> to vector<48xf32>
    %48 = vector.shape_cast %47 : vector<48xf32> to vector<48x1xf32>
    %49 = vector.broadcast %48 : vector<48x1xf32> to vector<48x48xf32>
    %50 = arith.subf %46, %49 : vector<48x48xf32>
    %51 = math.exp %50 : vector<48x48xf32>
    %cst_27 = arith.constant dense<0.000000e+00> : vector<48xf32>
    %52 = vector.multi_reduction <add>, %51, %cst_27 [1] : vector<48x48xf32> to vector<48xf32>
    %53 = vector.shape_cast %52 : vector<48xf32> to vector<48x1xf32>
    %54 = tpu.reciprocal %53 {approx = true} : vector<48x1xf32> -> vector<48x1xf32>
    %55 = vector.broadcast %54 : vector<48x1xf32> to vector<48x48xf32>
    %56 = arith.mulf %51, %55 : vector<48x48xf32>
    %57 = arith.truncf %56 : vector<48x48xf32> to vector<48x48xbf16>
    %cst_28 = arith.constant dense<0.000000e+00> : vector<48x8xf32>
    %58 = tpu.matmul %57, %44, %cst_28 {dimension_numbers = #tpu.dot_dimension_numbers<[1], [0], [0], [1], [0, 0, 1, 1], [], []>} : vector<48x48xbf16>, vector<48x8xbf16>, vector<48x8xf32> -> vector<48x8xf32>
    %59 = vector.extract_strided_slice %38 {offsets = [0, 8], sizes = [48, 8], strides = [1, 1]} : vector<48x96xf32> to vector<48x8xf32>
    %60 = arith.truncf %59 : vector<48x8xf32> to vector<48x8xbf16>
    %61 = vector.extract_strided_slice %38 {offsets = [0, 40], sizes = [48, 8], strides = [1, 1]} : vector<48x96xf32> to vector<48x8xf32>
    %62 = arith.truncf %61 : vector<48x8xf32> to vector<48x8xbf16>
    %63 = vector.extract_strided_slice %38 {offsets = [0, 72], sizes = [48, 8], strides = [1, 1]} : vector<48x96xf32> to vector<48x8xf32>
    %64 = arith.truncf %63 : vector<48x8xf32> to vector<48x8xbf16>
    %cst_29 = arith.constant dense<0.000000e+00> : vector<48x48xf32>
    %65 = tpu.matmul %60, %62, %cst_29 {dimension_numbers = #tpu.dot_dimension_numbers<[1], [1], [0], [0], [0, 0, 1, 0], [], []>} : vector<48x8xbf16>, vector<48x8xbf16>, vector<48x48xf32> -> vector<48x48xf32>
    %66 = arith.addf %65, %6 : vector<48x48xf32>
    %cst_30 = arith.constant dense<0xFF800000> : vector<48xf32>
    %67 = vector.multi_reduction <maximumf>, %66, %cst_30 [1] : vector<48x48xf32> to vector<48xf32>
    %68 = vector.shape_cast %67 : vector<48xf32> to vector<48x1xf32>
    %69 = vector.broadcast %68 : vector<48x1xf32> to vector<48x48xf32>
    %70 = arith.subf %66, %69 : vector<48x48xf32>
    %71 = math.exp %70 : vector<48x48xf32>
    %cst_31 = arith.constant dense<0.000000e+00> : vector<48xf32>
    %72 = vector.multi_reduction <add>, %71, %cst_31 [1] : vector<48x48xf32> to vector<48xf32>
    %73 = vector.shape_cast %72 : vector<48xf32> to vector<48x1xf32>
    %74 = tpu.reciprocal %73 {approx = true} : vector<48x1xf32> -> vector<48x1xf32>
    %75 = vector.broadcast %74 : vector<48x1xf32> to vector<48x48xf32>
    %76 = arith.mulf %71, %75 : vector<48x48xf32>
    %77 = arith.truncf %76 : vector<48x48xf32> to vector<48x48xbf16>
    %cst_32 = arith.constant dense<0.000000e+00> : vector<48x8xf32>
    %78 = tpu.matmul %77, %64, %cst_32 {dimension_numbers = #tpu.dot_dimension_numbers<[1], [0], [0], [1], [0, 0, 1, 1], [], []>} : vector<48x48xbf16>, vector<48x8xbf16>, vector<48x8xf32> -> vector<48x8xf32>
    %79 = vector.extract_strided_slice %38 {offsets = [0, 16], sizes = [48, 8], strides = [1, 1]} : vector<48x96xf32> to vector<48x8xf32>
    %80 = arith.truncf %79 : vector<48x8xf32> to vector<48x8xbf16>
    %81 = vector.extract_strided_slice %38 {offsets = [0, 48], sizes = [48, 8], strides = [1, 1]} : vector<48x96xf32> to vector<48x8xf32>
    %82 = arith.truncf %81 : vector<48x8xf32> to vector<48x8xbf16>
    %83 = vector.extract_strided_slice %38 {offsets = [0, 80], sizes = [48, 8], strides = [1, 1]} : vector<48x96xf32> to vector<48x8xf32>
    %84 = arith.truncf %83 : vector<48x8xf32> to vector<48x8xbf16>
    %cst_33 = arith.constant dense<0.000000e+00> : vector<48x48xf32>
    %85 = tpu.matmul %80, %82, %cst_33 {dimension_numbers = #tpu.dot_dimension_numbers<[1], [1], [0], [0], [0, 0, 1, 0], [], []>} : vector<48x8xbf16>, vector<48x8xbf16>, vector<48x48xf32> -> vector<48x48xf32>
    %86 = arith.addf %85, %6 : vector<48x48xf32>
    %cst_34 = arith.constant dense<0xFF800000> : vector<48xf32>
    %87 = vector.multi_reduction <maximumf>, %86, %cst_34 [1] : vector<48x48xf32> to vector<48xf32>
    %88 = vector.shape_cast %87 : vector<48xf32> to vector<48x1xf32>
    %89 = vector.broadcast %88 : vector<48x1xf32> to vector<48x48xf32>
    %90 = arith.subf %86, %89 : vector<48x48xf32>
    %91 = math.exp %90 : vector<48x48xf32>
    %cst_35 = arith.constant dense<0.000000e+00> : vector<48xf32>
    %92 = vector.multi_reduction <add>, %91, %cst_35 [1] : vector<48x48xf32> to vector<48xf32>
    %93 = vector.shape_cast %92 : vector<48xf32> to vector<48x1xf32>
    %94 = tpu.reciprocal %93 {approx = true} : vector<48x1xf32> -> vector<48x1xf32>
    %95 = vector.broadcast %94 : vector<48x1xf32> to vector<48x48xf32>
    %96 = arith.mulf %91, %95 : vector<48x48xf32>
    %97 = arith.truncf %96 : vector<48x48xf32> to vector<48x48xbf16>
    %cst_36 = arith.constant dense<0.000000e+00> : vector<48x8xf32>
    %98 = tpu.matmul %97, %84, %cst_36 {dimension_numbers = #tpu.dot_dimension_numbers<[1], [0], [0], [1], [0, 0, 1, 1], [], []>} : vector<48x48xbf16>, vector<48x8xbf16>, vector<48x8xf32> -> vector<48x8xf32>
    %99 = vector.extract_strided_slice %38 {offsets = [0, 24], sizes = [48, 8], strides = [1, 1]} : vector<48x96xf32> to vector<48x8xf32>
    %100 = arith.truncf %99 : vector<48x8xf32> to vector<48x8xbf16>
    %101 = vector.extract_strided_slice %38 {offsets = [0, 56], sizes = [48, 8], strides = [1, 1]} : vector<48x96xf32> to vector<48x8xf32>
    %102 = arith.truncf %101 : vector<48x8xf32> to vector<48x8xbf16>
    %103 = vector.extract_strided_slice %38 {offsets = [0, 88], sizes = [48, 8], strides = [1, 1]} : vector<48x96xf32> to vector<48x8xf32>
    %104 = arith.truncf %103 : vector<48x8xf32> to vector<48x8xbf16>
    %cst_37 = arith.constant dense<0.000000e+00> : vector<48x48xf32>
    %105 = tpu.matmul %100, %102, %cst_37 {dimension_numbers = #tpu.dot_dimension_numbers<[1], [1], [0], [0], [0, 0, 1, 0], [], []>} : vector<48x8xbf16>, vector<48x8xbf16>, vector<48x48xf32> -> vector<48x48xf32>
    %106 = arith.addf %105, %6 : vector<48x48xf32>
    %cst_38 = arith.constant dense<0xFF800000> : vector<48xf32>
    %107 = vector.multi_reduction <maximumf>, %106, %cst_38 [1] : vector<48x48xf32> to vector<48xf32>
    %108 = vector.shape_cast %107 : vector<48xf32> to vector<48x1xf32>
    %109 = vector.broadcast %108 : vector<48x1xf32> to vector<48x48xf32>
    %110 = arith.subf %106, %109 : vector<48x48xf32>
    %111 = math.exp %110 : vector<48x48xf32>
    %cst_39 = arith.constant dense<0.000000e+00> : vector<48xf32>
    %112 = vector.multi_reduction <add>, %111, %cst_39 [1] : vector<48x48xf32> to vector<48xf32>
    %113 = vector.shape_cast %112 : vector<48xf32> to vector<48x1xf32>
    %114 = tpu.reciprocal %113 {approx = true} : vector<48x1xf32> -> vector<48x1xf32>
    %115 = vector.broadcast %114 : vector<48x1xf32> to vector<48x48xf32>
    %116 = arith.mulf %111, %115 : vector<48x48xf32>
    %117 = arith.truncf %116 : vector<48x48xf32> to vector<48x48xbf16>
    %cst_40 = arith.constant dense<0.000000e+00> : vector<48x8xf32>
    %118 = tpu.matmul %117, %104, %cst_40 {dimension_numbers = #tpu.dot_dimension_numbers<[1], [0], [0], [1], [0, 0, 1, 1], [], []>} : vector<48x48xbf16>, vector<48x8xbf16>, vector<48x8xf32> -> vector<48x8xf32>
    %119 = tpu.concatenate %58, %78, %98, %118 in 1 : vector<48x8xf32>, vector<48x8xf32>, vector<48x8xf32>, vector<48x8xf32> -> vector<48x32xf32>
    %120 = arith.truncf %119 : vector<48x32xf32> to vector<48x32xbf16>
    %c0_41 = arith.constant 0 : index
    %c0_42 = arith.constant 0 : index
    %c0_43 = arith.constant 0 : index
    %121 = vector.load %arg9[%c0_41, %c0_42, %c0_43] : memref<2x32x32xbf16, #tpu.memory_space<vmem>>, vector<1x32x32xbf16>
    %122 = vector.shape_cast %121 : vector<1x32x32xbf16> to vector<32x32xbf16>
    %cst_44 = arith.constant dense<0.000000e+00> : vector<48x32xf32>
    %123 = tpu.matmul %120, %122, %cst_44 {dimension_numbers = #tpu.dot_dimension_numbers<[1], [0], [0], [1], [0, 0, 1, 1], [], []>} : vector<48x32xbf16>, vector<32x32xbf16>, vector<48x32xf32> -> vector<48x32xf32>
    %c0_45 = arith.constant 0 : index
    %c0_46 = arith.constant 0 : index
    %c0_47 = arith.constant 0 : index
    %124 = vector.load %arg10[%c0_45, %c0_46, %c0_47] : memref<2x1x32xf32, #tpu.memory_space<vmem>>, vector<1x1x32xf32>
    %125 = vector.shape_cast %124 : vector<1x1x32xf32> to vector<1x32xf32>
    %126 = vector.broadcast %125 : vector<1x32xf32> to vector<48x32xf32>
    %127 = arith.addf %123, %126 : vector<48x32xf32>
    %c0_48 = arith.constant 0 : index
    %c0_49 = arith.constant 0 : index
    %c0_50 = arith.constant 0 : index
    %128 = vector.load %arg11[%c0_48, %c0_49, %c0_50] : memref<2x1x32xf32, #tpu.memory_space<vmem>>, vector<1x1x32xf32>
    %129 = vector.shape_cast %128 : vector<1x1x32xf32> to vector<1x32xf32>
    %130 = vector.broadcast %129 : vector<1x32xf32> to vector<48x32xf32>
    %131 = arith.mulf %130, %127 : vector<48x32xf32>
    %132 = arith.addf %5, %131 : vector<48x32xf32>
    %c0_51 = arith.constant 0 : index
    %c0_52 = arith.constant 0 : index
    %c0_53 = arith.constant 0 : index
    %133 = vector.load %arg12[%c0_51, %c0_52, %c0_53] : memref<2x1x32xf32, #tpu.memory_space<vmem>>, vector<1x1x32xf32>
    %134 = vector.shape_cast %133 : vector<1x1x32xf32> to vector<1x32xf32>
    %c0_54 = arith.constant 0 : index
    %c0_55 = arith.constant 0 : index
    %c0_56 = arith.constant 0 : index
    %135 = vector.load %arg13[%c0_54, %c0_55, %c0_56] : memref<2x1x32xf32, #tpu.memory_space<vmem>>, vector<1x1x32xf32>
    %136 = vector.shape_cast %135 : vector<1x1x32xf32> to vector<1x32xf32>
    %cst_57 = arith.constant dense<0.000000e+00> : vector<48xf32>
    %137 = vector.multi_reduction <add>, %132, %cst_57 [1] : vector<48x32xf32> to vector<48xf32>
    %138 = vector.shape_cast %137 : vector<48xf32> to vector<48x1xf32>
    %cst_58 = arith.constant 3.200000e+01 : f32
    %139 = vector.broadcast %cst_58 : f32 to vector<48x1xf32>
    %140 = arith.divf %138, %139 : vector<48x1xf32>
    %141 = vector.broadcast %140 : vector<48x1xf32> to vector<48x32xf32>
    %142 = arith.subf %132, %141 : vector<48x32xf32>
    %143 = arith.mulf %142, %142 : vector<48x32xf32>
    %cst_59 = arith.constant dense<0.000000e+00> : vector<48xf32>
    %144 = vector.multi_reduction <add>, %143, %cst_59 [1] : vector<48x32xf32> to vector<48xf32>
    %145 = vector.shape_cast %144 : vector<48xf32> to vector<48x1xf32>
    %cst_60 = arith.constant 3.200000e+01 : f32
    %146 = vector.broadcast %cst_60 : f32 to vector<48x1xf32>
    %147 = arith.divf %145, %146 : vector<48x1xf32>
    %cst_61 = arith.constant 9.99999997E-7 : f32
    %148 = vector.broadcast %cst_61 : f32 to vector<48x1xf32>
    %149 = arith.addf %147, %148 : vector<48x1xf32>
    %150 = math.rsqrt %149 : vector<48x1xf32>
    %151 = vector.broadcast %150 : vector<48x1xf32> to vector<48x32xf32>
    %152 = arith.mulf %142, %151 : vector<48x32xf32>
    %153 = vector.broadcast %134 : vector<1x32xf32> to vector<48x32xf32>
    %154 = arith.mulf %152, %153 : vector<48x32xf32>
    %155 = vector.broadcast %136 : vector<1x32xf32> to vector<48x32xf32>
    %156 = arith.addf %154, %155 : vector<48x32xf32>
    %157 = arith.truncf %156 : vector<48x32xf32> to vector<48x32xbf16>
    %c0_62 = arith.constant 0 : index
    %c0_63 = arith.constant 0 : index
    %c0_64 = arith.constant 0 : index
    %158 = vector.load %arg14[%c0_62, %c0_63, %c0_64] : memref<2x32x128xbf16, #tpu.memory_space<vmem>>, vector<1x32x128xbf16>
    %159 = vector.shape_cast %158 : vector<1x32x128xbf16> to vector<32x128xbf16>
    %cst_65 = arith.constant dense<0.000000e+00> : vector<48x128xf32>
    %160 = tpu.matmul %157, %159, %cst_65 {dimension_numbers = #tpu.dot_dimension_numbers<[1], [0], [0], [1], [0, 0, 1, 1], [], []>} : vector<48x32xbf16>, vector<32x128xbf16>, vector<48x128xf32> -> vector<48x128xf32>
    %c0_66 = arith.constant 0 : index
    %c0_67 = arith.constant 0 : index
    %c0_68 = arith.constant 0 : index
    %161 = vector.load %arg15[%c0_66, %c0_67, %c0_68] : memref<2x1x128xf32, #tpu.memory_space<vmem>>, vector<1x1x128xf32>
    %162 = vector.shape_cast %161 : vector<1x1x128xf32> to vector<1x128xf32>
    %163 = vector.broadcast %162 : vector<1x128xf32> to vector<48x128xf32>
    %164 = arith.addf %160, %163 : vector<48x128xf32>
    %cst_69 = arith.constant 5.000000e-01 : f32
    %165 = vector.broadcast %cst_69 : f32 to vector<48x128xf32>
    %166 = arith.mulf %165, %164 : vector<48x128xf32>
    %cst_70 = arith.constant 4.471500e-02 : f32
    %167 = vector.broadcast %cst_70 : f32 to vector<48x128xf32>
    %168 = arith.mulf %167, %164 : vector<48x128xf32>
    %169 = arith.mulf %168, %164 : vector<48x128xf32>
    %170 = arith.mulf %169, %164 : vector<48x128xf32>
    %171 = arith.addf %164, %170 : vector<48x128xf32>
    %cst_71 = arith.constant 0.797884583 : f32
    %172 = vector.broadcast %cst_71 : f32 to vector<48x128xf32>
    %173 = arith.mulf %172, %171 : vector<48x128xf32>
    %174 = math.tanh %173 : vector<48x128xf32>
    %cst_72 = arith.constant 1.000000e+00 : f32
    %175 = vector.broadcast %cst_72 : f32 to vector<48x128xf32>
    %176 = arith.addf %175, %174 : vector<48x128xf32>
    %177 = arith.mulf %166, %176 : vector<48x128xf32>
    %178 = arith.truncf %177 : vector<48x128xf32> to vector<48x128xbf16>
    %c0_73 = arith.constant 0 : index
    %c0_74 = arith.constant 0 : index
    %c0_75 = arith.constant 0 : index
    %179 = vector.load %arg16[%c0_73, %c0_74, %c0_75] : memref<2x128x32xbf16, #tpu.memory_space<vmem>>, vector<1x128x32xbf16>
    %180 = vector.shape_cast %179 : vector<1x128x32xbf16> to vector<128x32xbf16>
    %cst_76 = arith.constant dense<0.000000e+00> : vector<48x32xf32>
    %181 = tpu.matmul %178, %180, %cst_76 {dimension_numbers = #tpu.dot_dimension_numbers<[1], [0], [0], [1], [0, 0, 1, 1], [], []>} : vector<48x128xbf16>, vector<128x32xbf16>, vector<48x32xf32> -> vector<48x32xf32>
    %c0_77 = arith.constant 0 : index
    %c0_78 = arith.constant 0 : index
    %c0_79 = arith.constant 0 : index
    %182 = vector.load %arg17[%c0_77, %c0_78, %c0_79] : memref<2x1x32xf32, #tpu.memory_space<vmem>>, vector<1x1x32xf32>
    %183 = vector.shape_cast %182 : vector<1x1x32xf32> to vector<1x32xf32>
    %184 = vector.broadcast %183 : vector<1x32xf32> to vector<48x32xf32>
    %185 = arith.addf %181, %184 : vector<48x32xf32>
    %c0_80 = arith.constant 0 : index
    %c0_81 = arith.constant 0 : index
    %c0_82 = arith.constant 0 : index
    %186 = vector.load %arg18[%c0_80, %c0_81, %c0_82] : memref<2x1x32xf32, #tpu.memory_space<vmem>>, vector<1x1x32xf32>
    %187 = vector.shape_cast %186 : vector<1x1x32xf32> to vector<1x32xf32>
    %188 = vector.broadcast %187 : vector<1x32xf32> to vector<48x32xf32>
    %189 = arith.mulf %188, %185 : vector<48x32xf32>
    %190 = arith.addf %132, %189 : vector<48x32xf32>
    %c1 = arith.constant 1 : index
    %c0_83 = arith.constant 0 : index
    %c0_84 = arith.constant 0 : index
    %191 = vector.load %arg5[%c1, %c0_83, %c0_84] : memref<2x1x32xf32, #tpu.memory_space<vmem>>, vector<1x1x32xf32>
    %192 = vector.shape_cast %191 : vector<1x1x32xf32> to vector<1x32xf32>
    %c1_85 = arith.constant 1 : index
    %c0_86 = arith.constant 0 : index
    %c0_87 = arith.constant 0 : index
    %193 = vector.load %arg6[%c1_85, %c0_86, %c0_87] : memref<2x1x32xf32, #tpu.memory_space<vmem>>, vector<1x1x32xf32>
    %194 = vector.shape_cast %193 : vector<1x1x32xf32> to vector<1x32xf32>
    %cst_88 = arith.constant dense<0.000000e+00> : vector<48xf32>
    %195 = vector.multi_reduction <add>, %190, %cst_88 [1] : vector<48x32xf32> to vector<48xf32>
    %196 = vector.shape_cast %195 : vector<48xf32> to vector<48x1xf32>
    %cst_89 = arith.constant 3.200000e+01 : f32
    %197 = vector.broadcast %cst_89 : f32 to vector<48x1xf32>
    %198 = arith.divf %196, %197 : vector<48x1xf32>
    %199 = vector.broadcast %198 : vector<48x1xf32> to vector<48x32xf32>
    %200 = arith.subf %190, %199 : vector<48x32xf32>
    %201 = arith.mulf %200, %200 : vector<48x32xf32>
    %cst_90 = arith.constant dense<0.000000e+00> : vector<48xf32>
    %202 = vector.multi_reduction <add>, %201, %cst_90 [1] : vector<48x32xf32> to vector<48xf32>
    %203 = vector.shape_cast %202 : vector<48xf32> to vector<48x1xf32>
    %cst_91 = arith.constant 3.200000e+01 : f32
    %204 = vector.broadcast %cst_91 : f32 to vector<48x1xf32>
    %205 = arith.divf %203, %204 : vector<48x1xf32>
    %cst_92 = arith.constant 9.99999997E-7 : f32
    %206 = vector.broadcast %cst_92 : f32 to vector<48x1xf32>
    %207 = arith.addf %205, %206 : vector<48x1xf32>
    %208 = math.rsqrt %207 : vector<48x1xf32>
    %209 = vector.broadcast %208 : vector<48x1xf32> to vector<48x32xf32>
    %210 = arith.mulf %200, %209 : vector<48x32xf32>
    %211 = vector.broadcast %192 : vector<1x32xf32> to vector<48x32xf32>
    %212 = arith.mulf %210, %211 : vector<48x32xf32>
    %213 = vector.broadcast %194 : vector<1x32xf32> to vector<48x32xf32>
    %214 = arith.addf %212, %213 : vector<48x32xf32>
    %215 = arith.truncf %214 : vector<48x32xf32> to vector<48x32xbf16>
    %c1_93 = arith.constant 1 : index
    %c0_94 = arith.constant 0 : index
    %c0_95 = arith.constant 0 : index
    %216 = vector.load %arg7[%c1_93, %c0_94, %c0_95] : memref<2x32x96xbf16, #tpu.memory_space<vmem>>, vector<1x32x96xbf16>
    %217 = vector.shape_cast %216 : vector<1x32x96xbf16> to vector<32x96xbf16>
    %cst_96 = arith.constant dense<0.000000e+00> : vector<48x96xf32>
    %218 = tpu.matmul %215, %217, %cst_96 {dimension_numbers = #tpu.dot_dimension_numbers<[1], [0], [0], [1], [0, 0, 1, 1], [], []>} : vector<48x32xbf16>, vector<32x96xbf16>, vector<48x96xf32> -> vector<48x96xf32>
    %c1_97 = arith.constant 1 : index
    %c0_98 = arith.constant 0 : index
    %c0_99 = arith.constant 0 : index
    %219 = vector.load %arg8[%c1_97, %c0_98, %c0_99] : memref<2x1x96xf32, #tpu.memory_space<vmem>>, vector<1x1x96xf32>
    %220 = vector.shape_cast %219 : vector<1x1x96xf32> to vector<1x96xf32>
    %221 = vector.broadcast %220 : vector<1x96xf32> to vector<48x96xf32>
    %222 = arith.addf %218, %221 : vector<48x96xf32>
    %223 = vector.extract_strided_slice %222 {offsets = [0, 0], sizes = [48, 8], strides = [1, 1]} : vector<48x96xf32> to vector<48x8xf32>
    %224 = arith.truncf %223 : vector<48x8xf32> to vector<48x8xbf16>
    %225 = vector.extract_strided_slice %222 {offsets = [0, 32], sizes = [48, 8], strides = [1, 1]} : vector<48x96xf32> to vector<48x8xf32>
    %226 = arith.truncf %225 : vector<48x8xf32> to vector<48x8xbf16>
    %227 = vector.extract_strided_slice %222 {offsets = [0, 64], sizes = [48, 8], strides = [1, 1]} : vector<48x96xf32> to vector<48x8xf32>
    %228 = arith.truncf %227 : vector<48x8xf32> to vector<48x8xbf16>
    %cst_100 = arith.constant dense<0.000000e+00> : vector<48x48xf32>
    %229 = tpu.matmul %224, %226, %cst_100 {dimension_numbers = #tpu.dot_dimension_numbers<[1], [1], [0], [0], [0, 0, 1, 0], [], []>} : vector<48x8xbf16>, vector<48x8xbf16>, vector<48x48xf32> -> vector<48x48xf32>
    %230 = arith.addf %229, %6 : vector<48x48xf32>
    %cst_101 = arith.constant dense<0xFF800000> : vector<48xf32>
    %231 = vector.multi_reduction <maximumf>, %230, %cst_101 [1] : vector<48x48xf32> to vector<48xf32>
    %232 = vector.shape_cast %231 : vector<48xf32> to vector<48x1xf32>
    %233 = vector.broadcast %232 : vector<48x1xf32> to vector<48x48xf32>
    %234 = arith.subf %230, %233 : vector<48x48xf32>
    %235 = math.exp %234 : vector<48x48xf32>
    %cst_102 = arith.constant dense<0.000000e+00> : vector<48xf32>
    %236 = vector.multi_reduction <add>, %235, %cst_102 [1] : vector<48x48xf32> to vector<48xf32>
    %237 = vector.shape_cast %236 : vector<48xf32> to vector<48x1xf32>
    %238 = tpu.reciprocal %237 {approx = true} : vector<48x1xf32> -> vector<48x1xf32>
    %239 = vector.broadcast %238 : vector<48x1xf32> to vector<48x48xf32>
    %240 = arith.mulf %235, %239 : vector<48x48xf32>
    %241 = arith.truncf %240 : vector<48x48xf32> to vector<48x48xbf16>
    %cst_103 = arith.constant dense<0.000000e+00> : vector<48x8xf32>
    %242 = tpu.matmul %241, %228, %cst_103 {dimension_numbers = #tpu.dot_dimension_numbers<[1], [0], [0], [1], [0, 0, 1, 1], [], []>} : vector<48x48xbf16>, vector<48x8xbf16>, vector<48x8xf32> -> vector<48x8xf32>
    %243 = vector.extract_strided_slice %222 {offsets = [0, 8], sizes = [48, 8], strides = [1, 1]} : vector<48x96xf32> to vector<48x8xf32>
    %244 = arith.truncf %243 : vector<48x8xf32> to vector<48x8xbf16>
    %245 = vector.extract_strided_slice %222 {offsets = [0, 40], sizes = [48, 8], strides = [1, 1]} : vector<48x96xf32> to vector<48x8xf32>
    %246 = arith.truncf %245 : vector<48x8xf32> to vector<48x8xbf16>
    %247 = vector.extract_strided_slice %222 {offsets = [0, 72], sizes = [48, 8], strides = [1, 1]} : vector<48x96xf32> to vector<48x8xf32>
    %248 = arith.truncf %247 : vector<48x8xf32> to vector<48x8xbf16>
    %cst_104 = arith.constant dense<0.000000e+00> : vector<48x48xf32>
    %249 = tpu.matmul %244, %246, %cst_104 {dimension_numbers = #tpu.dot_dimension_numbers<[1], [1], [0], [0], [0, 0, 1, 0], [], []>} : vector<48x8xbf16>, vector<48x8xbf16>, vector<48x48xf32> -> vector<48x48xf32>
    %250 = arith.addf %249, %6 : vector<48x48xf32>
    %cst_105 = arith.constant dense<0xFF800000> : vector<48xf32>
    %251 = vector.multi_reduction <maximumf>, %250, %cst_105 [1] : vector<48x48xf32> to vector<48xf32>
    %252 = vector.shape_cast %251 : vector<48xf32> to vector<48x1xf32>
    %253 = vector.broadcast %252 : vector<48x1xf32> to vector<48x48xf32>
    %254 = arith.subf %250, %253 : vector<48x48xf32>
    %255 = math.exp %254 : vector<48x48xf32>
    %cst_106 = arith.constant dense<0.000000e+00> : vector<48xf32>
    %256 = vector.multi_reduction <add>, %255, %cst_106 [1] : vector<48x48xf32> to vector<48xf32>
    %257 = vector.shape_cast %256 : vector<48xf32> to vector<48x1xf32>
    %258 = tpu.reciprocal %257 {approx = true} : vector<48x1xf32> -> vector<48x1xf32>
    %259 = vector.broadcast %258 : vector<48x1xf32> to vector<48x48xf32>
    %260 = arith.mulf %255, %259 : vector<48x48xf32>
    %261 = arith.truncf %260 : vector<48x48xf32> to vector<48x48xbf16>
    %cst_107 = arith.constant dense<0.000000e+00> : vector<48x8xf32>
    %262 = tpu.matmul %261, %248, %cst_107 {dimension_numbers = #tpu.dot_dimension_numbers<[1], [0], [0], [1], [0, 0, 1, 1], [], []>} : vector<48x48xbf16>, vector<48x8xbf16>, vector<48x8xf32> -> vector<48x8xf32>
    %263 = vector.extract_strided_slice %222 {offsets = [0, 16], sizes = [48, 8], strides = [1, 1]} : vector<48x96xf32> to vector<48x8xf32>
    %264 = arith.truncf %263 : vector<48x8xf32> to vector<48x8xbf16>
    %265 = vector.extract_strided_slice %222 {offsets = [0, 48], sizes = [48, 8], strides = [1, 1]} : vector<48x96xf32> to vector<48x8xf32>
    %266 = arith.truncf %265 : vector<48x8xf32> to vector<48x8xbf16>
    %267 = vector.extract_strided_slice %222 {offsets = [0, 80], sizes = [48, 8], strides = [1, 1]} : vector<48x96xf32> to vector<48x8xf32>
    %268 = arith.truncf %267 : vector<48x8xf32> to vector<48x8xbf16>
    %cst_108 = arith.constant dense<0.000000e+00> : vector<48x48xf32>
    %269 = tpu.matmul %264, %266, %cst_108 {dimension_numbers = #tpu.dot_dimension_numbers<[1], [1], [0], [0], [0, 0, 1, 0], [], []>} : vector<48x8xbf16>, vector<48x8xbf16>, vector<48x48xf32> -> vector<48x48xf32>
    %270 = arith.addf %269, %6 : vector<48x48xf32>
    %cst_109 = arith.constant dense<0xFF800000> : vector<48xf32>
    %271 = vector.multi_reduction <maximumf>, %270, %cst_109 [1] : vector<48x48xf32> to vector<48xf32>
    %272 = vector.shape_cast %271 : vector<48xf32> to vector<48x1xf32>
    %273 = vector.broadcast %272 : vector<48x1xf32> to vector<48x48xf32>
    %274 = arith.subf %270, %273 : vector<48x48xf32>
    %275 = math.exp %274 : vector<48x48xf32>
    %cst_110 = arith.constant dense<0.000000e+00> : vector<48xf32>
    %276 = vector.multi_reduction <add>, %275, %cst_110 [1] : vector<48x48xf32> to vector<48xf32>
    %277 = vector.shape_cast %276 : vector<48xf32> to vector<48x1xf32>
    %278 = tpu.reciprocal %277 {approx = true} : vector<48x1xf32> -> vector<48x1xf32>
    %279 = vector.broadcast %278 : vector<48x1xf32> to vector<48x48xf32>
    %280 = arith.mulf %275, %279 : vector<48x48xf32>
    %281 = arith.truncf %280 : vector<48x48xf32> to vector<48x48xbf16>
    %cst_111 = arith.constant dense<0.000000e+00> : vector<48x8xf32>
    %282 = tpu.matmul %281, %268, %cst_111 {dimension_numbers = #tpu.dot_dimension_numbers<[1], [0], [0], [1], [0, 0, 1, 1], [], []>} : vector<48x48xbf16>, vector<48x8xbf16>, vector<48x8xf32> -> vector<48x8xf32>
    %283 = vector.extract_strided_slice %222 {offsets = [0, 24], sizes = [48, 8], strides = [1, 1]} : vector<48x96xf32> to vector<48x8xf32>
    %284 = arith.truncf %283 : vector<48x8xf32> to vector<48x8xbf16>
    %285 = vector.extract_strided_slice %222 {offsets = [0, 56], sizes = [48, 8], strides = [1, 1]} : vector<48x96xf32> to vector<48x8xf32>
    %286 = arith.truncf %285 : vector<48x8xf32> to vector<48x8xbf16>
    %287 = vector.extract_strided_slice %222 {offsets = [0, 88], sizes = [48, 8], strides = [1, 1]} : vector<48x96xf32> to vector<48x8xf32>
    %288 = arith.truncf %287 : vector<48x8xf32> to vector<48x8xbf16>
    %cst_112 = arith.constant dense<0.000000e+00> : vector<48x48xf32>
    %289 = tpu.matmul %284, %286, %cst_112 {dimension_numbers = #tpu.dot_dimension_numbers<[1], [1], [0], [0], [0, 0, 1, 0], [], []>} : vector<48x8xbf16>, vector<48x8xbf16>, vector<48x48xf32> -> vector<48x48xf32>
    %290 = arith.addf %289, %6 : vector<48x48xf32>
    %cst_113 = arith.constant dense<0xFF800000> : vector<48xf32>
    %291 = vector.multi_reduction <maximumf>, %290, %cst_113 [1] : vector<48x48xf32> to vector<48xf32>
    %292 = vector.shape_cast %291 : vector<48xf32> to vector<48x1xf32>
    %293 = vector.broadcast %292 : vector<48x1xf32> to vector<48x48xf32>
    %294 = arith.subf %290, %293 : vector<48x48xf32>
    %295 = math.exp %294 : vector<48x48xf32>
    %cst_114 = arith.constant dense<0.000000e+00> : vector<48xf32>
    %296 = vector.multi_reduction <add>, %295, %cst_114 [1] : vector<48x48xf32> to vector<48xf32>
    %297 = vector.shape_cast %296 : vector<48xf32> to vector<48x1xf32>
    %298 = tpu.reciprocal %297 {approx = true} : vector<48x1xf32> -> vector<48x1xf32>
    %299 = vector.broadcast %298 : vector<48x1xf32> to vector<48x48xf32>
    %300 = arith.mulf %295, %299 : vector<48x48xf32>
    %301 = arith.truncf %300 : vector<48x48xf32> to vector<48x48xbf16>
    %cst_115 = arith.constant dense<0.000000e+00> : vector<48x8xf32>
    %302 = tpu.matmul %301, %288, %cst_115 {dimension_numbers = #tpu.dot_dimension_numbers<[1], [0], [0], [1], [0, 0, 1, 1], [], []>} : vector<48x48xbf16>, vector<48x8xbf16>, vector<48x8xf32> -> vector<48x8xf32>
    %303 = tpu.concatenate %242, %262, %282, %302 in 1 : vector<48x8xf32>, vector<48x8xf32>, vector<48x8xf32>, vector<48x8xf32> -> vector<48x32xf32>
    %304 = arith.truncf %303 : vector<48x32xf32> to vector<48x32xbf16>
    %c1_116 = arith.constant 1 : index
    %c0_117 = arith.constant 0 : index
    %c0_118 = arith.constant 0 : index
    %305 = vector.load %arg9[%c1_116, %c0_117, %c0_118] : memref<2x32x32xbf16, #tpu.memory_space<vmem>>, vector<1x32x32xbf16>
    %306 = vector.shape_cast %305 : vector<1x32x32xbf16> to vector<32x32xbf16>
    %cst_119 = arith.constant dense<0.000000e+00> : vector<48x32xf32>
    %307 = tpu.matmul %304, %306, %cst_119 {dimension_numbers = #tpu.dot_dimension_numbers<[1], [0], [0], [1], [0, 0, 1, 1], [], []>} : vector<48x32xbf16>, vector<32x32xbf16>, vector<48x32xf32> -> vector<48x32xf32>
    %c1_120 = arith.constant 1 : index
    %c0_121 = arith.constant 0 : index
    %c0_122 = arith.constant 0 : index
    %308 = vector.load %arg10[%c1_120, %c0_121, %c0_122] : memref<2x1x32xf32, #tpu.memory_space<vmem>>, vector<1x1x32xf32>
    %309 = vector.shape_cast %308 : vector<1x1x32xf32> to vector<1x32xf32>
    %310 = vector.broadcast %309 : vector<1x32xf32> to vector<48x32xf32>
    %311 = arith.addf %307, %310 : vector<48x32xf32>
    %c1_123 = arith.constant 1 : index
    %c0_124 = arith.constant 0 : index
    %c0_125 = arith.constant 0 : index
    %312 = vector.load %arg11[%c1_123, %c0_124, %c0_125] : memref<2x1x32xf32, #tpu.memory_space<vmem>>, vector<1x1x32xf32>
    %313 = vector.shape_cast %312 : vector<1x1x32xf32> to vector<1x32xf32>
    %314 = vector.broadcast %313 : vector<1x32xf32> to vector<48x32xf32>
    %315 = arith.mulf %314, %311 : vector<48x32xf32>
    %316 = arith.addf %190, %315 : vector<48x32xf32>
    %c1_126 = arith.constant 1 : index
    %c0_127 = arith.constant 0 : index
    %c0_128 = arith.constant 0 : index
    %317 = vector.load %arg12[%c1_126, %c0_127, %c0_128] : memref<2x1x32xf32, #tpu.memory_space<vmem>>, vector<1x1x32xf32>
    %318 = vector.shape_cast %317 : vector<1x1x32xf32> to vector<1x32xf32>
    %c1_129 = arith.constant 1 : index
    %c0_130 = arith.constant 0 : index
    %c0_131 = arith.constant 0 : index
    %319 = vector.load %arg13[%c1_129, %c0_130, %c0_131] : memref<2x1x32xf32, #tpu.memory_space<vmem>>, vector<1x1x32xf32>
    %320 = vector.shape_cast %319 : vector<1x1x32xf32> to vector<1x32xf32>
    %cst_132 = arith.constant dense<0.000000e+00> : vector<48xf32>
    %321 = vector.multi_reduction <add>, %316, %cst_132 [1] : vector<48x32xf32> to vector<48xf32>
    %322 = vector.shape_cast %321 : vector<48xf32> to vector<48x1xf32>
    %cst_133 = arith.constant 3.200000e+01 : f32
    %323 = vector.broadcast %cst_133 : f32 to vector<48x1xf32>
    %324 = arith.divf %322, %323 : vector<48x1xf32>
    %325 = vector.broadcast %324 : vector<48x1xf32> to vector<48x32xf32>
    %326 = arith.subf %316, %325 : vector<48x32xf32>
    %327 = arith.mulf %326, %326 : vector<48x32xf32>
    %cst_134 = arith.constant dense<0.000000e+00> : vector<48xf32>
    %328 = vector.multi_reduction <add>, %327, %cst_134 [1] : vector<48x32xf32> to vector<48xf32>
    %329 = vector.shape_cast %328 : vector<48xf32> to vector<48x1xf32>
    %cst_135 = arith.constant 3.200000e+01 : f32
    %330 = vector.broadcast %cst_135 : f32 to vector<48x1xf32>
    %331 = arith.divf %329, %330 : vector<48x1xf32>
    %cst_136 = arith.constant 9.99999997E-7 : f32
    %332 = vector.broadcast %cst_136 : f32 to vector<48x1xf32>
    %333 = arith.addf %331, %332 : vector<48x1xf32>
    %334 = math.rsqrt %333 : vector<48x1xf32>
    %335 = vector.broadcast %334 : vector<48x1xf32> to vector<48x32xf32>
    %336 = arith.mulf %326, %335 : vector<48x32xf32>
    %337 = vector.broadcast %318 : vector<1x32xf32> to vector<48x32xf32>
    %338 = arith.mulf %336, %337 : vector<48x32xf32>
    %339 = vector.broadcast %320 : vector<1x32xf32> to vector<48x32xf32>
    %340 = arith.addf %338, %339 : vector<48x32xf32>
    %341 = arith.truncf %340 : vector<48x32xf32> to vector<48x32xbf16>
    %c1_137 = arith.constant 1 : index
    %c0_138 = arith.constant 0 : index
    %c0_139 = arith.constant 0 : index
    %342 = vector.load %arg14[%c1_137, %c0_138, %c0_139] : memref<2x32x128xbf16, #tpu.memory_space<vmem>>, vector<1x32x128xbf16>
    %343 = vector.shape_cast %342 : vector<1x32x128xbf16> to vector<32x128xbf16>
    %cst_140 = arith.constant dense<0.000000e+00> : vector<48x128xf32>
    %344 = tpu.matmul %341, %343, %cst_140 {dimension_numbers = #tpu.dot_dimension_numbers<[1], [0], [0], [1], [0, 0, 1, 1], [], []>} : vector<48x32xbf16>, vector<32x128xbf16>, vector<48x128xf32> -> vector<48x128xf32>
    %c1_141 = arith.constant 1 : index
    %c0_142 = arith.constant 0 : index
    %c0_143 = arith.constant 0 : index
    %345 = vector.load %arg15[%c1_141, %c0_142, %c0_143] : memref<2x1x128xf32, #tpu.memory_space<vmem>>, vector<1x1x128xf32>
    %346 = vector.shape_cast %345 : vector<1x1x128xf32> to vector<1x128xf32>
    %347 = vector.broadcast %346 : vector<1x128xf32> to vector<48x128xf32>
    %348 = arith.addf %344, %347 : vector<48x128xf32>
    %cst_144 = arith.constant 5.000000e-01 : f32
    %349 = vector.broadcast %cst_144 : f32 to vector<48x128xf32>
    %350 = arith.mulf %349, %348 : vector<48x128xf32>
    %cst_145 = arith.constant 4.471500e-02 : f32
    %351 = vector.broadcast %cst_145 : f32 to vector<48x128xf32>
    %352 = arith.mulf %351, %348 : vector<48x128xf32>
    %353 = arith.mulf %352, %348 : vector<48x128xf32>
    %354 = arith.mulf %353, %348 : vector<48x128xf32>
    %355 = arith.addf %348, %354 : vector<48x128xf32>
    %cst_146 = arith.constant 0.797884583 : f32
    %356 = vector.broadcast %cst_146 : f32 to vector<48x128xf32>
    %357 = arith.mulf %356, %355 : vector<48x128xf32>
    %358 = math.tanh %357 : vector<48x128xf32>
    %cst_147 = arith.constant 1.000000e+00 : f32
    %359 = vector.broadcast %cst_147 : f32 to vector<48x128xf32>
    %360 = arith.addf %359, %358 : vector<48x128xf32>
    %361 = arith.mulf %350, %360 : vector<48x128xf32>
    %362 = arith.truncf %361 : vector<48x128xf32> to vector<48x128xbf16>
    %c1_148 = arith.constant 1 : index
    %c0_149 = arith.constant 0 : index
    %c0_150 = arith.constant 0 : index
    %363 = vector.load %arg16[%c1_148, %c0_149, %c0_150] : memref<2x128x32xbf16, #tpu.memory_space<vmem>>, vector<1x128x32xbf16>
    %364 = vector.shape_cast %363 : vector<1x128x32xbf16> to vector<128x32xbf16>
    %cst_151 = arith.constant dense<0.000000e+00> : vector<48x32xf32>
    %365 = tpu.matmul %362, %364, %cst_151 {dimension_numbers = #tpu.dot_dimension_numbers<[1], [0], [0], [1], [0, 0, 1, 1], [], []>} : vector<48x128xbf16>, vector<128x32xbf16>, vector<48x32xf32> -> vector<48x32xf32>
    %c1_152 = arith.constant 1 : index
    %c0_153 = arith.constant 0 : index
    %c0_154 = arith.constant 0 : index
    %366 = vector.load %arg17[%c1_152, %c0_153, %c0_154] : memref<2x1x32xf32, #tpu.memory_space<vmem>>, vector<1x1x32xf32>
    %367 = vector.shape_cast %366 : vector<1x1x32xf32> to vector<1x32xf32>
    %368 = vector.broadcast %367 : vector<1x32xf32> to vector<48x32xf32>
    %369 = arith.addf %365, %368 : vector<48x32xf32>
    %c1_155 = arith.constant 1 : index
    %c0_156 = arith.constant 0 : index
    %c0_157 = arith.constant 0 : index
    %370 = vector.load %arg18[%c1_155, %c0_156, %c0_157] : memref<2x1x32xf32, #tpu.memory_space<vmem>>, vector<1x1x32xf32>
    %371 = vector.shape_cast %370 : vector<1x1x32xf32> to vector<1x32xf32>
    %372 = vector.broadcast %371 : vector<1x32xf32> to vector<48x32xf32>
    %373 = arith.mulf %372, %369 : vector<48x32xf32>
    %374 = arith.addf %316, %373 : vector<48x32xf32>
    %c0_158 = arith.constant 0 : index
    %c0_159 = arith.constant 0 : index
    %375 = vector.load %arg19[%c0_158, %c0_159] : memref<1x32xf32, #tpu.memory_space<vmem>>, vector<1x32xf32>
    %c0_160 = arith.constant 0 : index
    %c0_161 = arith.constant 0 : index
    %376 = vector.load %arg20[%c0_160, %c0_161] : memref<1x32xf32, #tpu.memory_space<vmem>>, vector<1x32xf32>
    %cst_162 = arith.constant dense<0.000000e+00> : vector<48xf32>
    %377 = vector.multi_reduction <add>, %374, %cst_162 [1] : vector<48x32xf32> to vector<48xf32>
    %378 = vector.shape_cast %377 : vector<48xf32> to vector<48x1xf32>
    %cst_163 = arith.constant 3.200000e+01 : f32
    %379 = vector.broadcast %cst_163 : f32 to vector<48x1xf32>
    %380 = arith.divf %378, %379 : vector<48x1xf32>
    %381 = vector.broadcast %380 : vector<48x1xf32> to vector<48x32xf32>
    %382 = arith.subf %374, %381 : vector<48x32xf32>
    %383 = arith.mulf %382, %382 : vector<48x32xf32>
    %cst_164 = arith.constant dense<0.000000e+00> : vector<48xf32>
    %384 = vector.multi_reduction <add>, %383, %cst_164 [1] : vector<48x32xf32> to vector<48xf32>
    %385 = vector.shape_cast %384 : vector<48xf32> to vector<48x1xf32>
    %cst_165 = arith.constant 3.200000e+01 : f32
    %386 = vector.broadcast %cst_165 : f32 to vector<48x1xf32>
    %387 = arith.divf %385, %386 : vector<48x1xf32>
    %cst_166 = arith.constant 9.99999997E-7 : f32
    %388 = vector.broadcast %cst_166 : f32 to vector<48x1xf32>
    %389 = arith.addf %387, %388 : vector<48x1xf32>
    %390 = math.rsqrt %389 : vector<48x1xf32>
    %391 = vector.broadcast %390 : vector<48x1xf32> to vector<48x32xf32>
    %392 = arith.mulf %382, %391 : vector<48x32xf32>
    %393 = vector.broadcast %375 : vector<1x32xf32> to vector<48x32xf32>
    %394 = arith.mulf %392, %393 : vector<48x32xf32>
    %395 = vector.broadcast %376 : vector<1x32xf32> to vector<48x32xf32>
    %396 = arith.addf %394, %395 : vector<48x32xf32>
    %c0_167 = arith.constant 0 : index
    %c0_168 = arith.constant 0 : index
    %397 = vector.load %arg21[%c0_167, %c0_168] : memref<48x32xf32, #tpu.memory_space<vmem>>, vector<48x32xf32>
    tpu.vector_store %arg21[%c0_167, %c0_168], %396 {strides = array<i32>} : memref<48x32xf32, #tpu.memory_space<vmem>>, vector<48x32xf32>,
    return
  }
  func.func @transform_0(%arg0: i32) -> (i32, i32) {
    %c0_i32 = arith.constant 0 : i32
    %c0_i32_0 = arith.constant 0 : i32
    %c0_i32_1 = arith.constant 0 : i32
    return %c0_i32, %c0_i32_0 : i32, i32
  }
  func.func @transform_1(%arg0: i32) -> (i32, i32) {
    %c0_i32 = arith.constant 0 : i32
    %c0_i32_0 = arith.constant 0 : i32
    %c0_i32_1 = arith.constant 0 : i32
    return %c0_i32, %c0_i32_0 : i32, i32
  }
  func.func @transform_2(%arg0: i32) -> (i32, i32) {
    %c0_i32 = arith.constant 0 : i32
    %c0_i32_0 = arith.constant 0 : i32
    %c0_i32_1 = arith.constant 0 : i32
    return %c0_i32, %c0_i32_0 : i32, i32
  }
  func.func @transform_3(%arg0: i32) -> (i32, i32) {
    %c0_i32 = arith.constant 0 : i32
    %c0_i32_0 = arith.constant 0 : i32
    %c0_i32_1 = arith.constant 0 : i32
    return %c0_i32, %c0_i32_0 : i32, i32
  }
  func.func @transform_4(%arg0: i32) -> (i32, i32, i32) {
    %c0_i32 = arith.constant 0 : i32
    %c0_i32_0 = arith.constant 0 : i32
    %c0_i32_1 = arith.constant 0 : i32
    %c0_i32_2 = arith.constant 0 : i32
    return %c0_i32, %c0_i32_0, %c0_i32_1 : i32, i32, i32
  }
  func.func @transform_5(%arg0: i32) -> (i32, i32, i32) {
    %c0_i32 = arith.constant 0 : i32
    %c0_i32_0 = arith.constant 0 : i32
    %c0_i32_1 = arith.constant 0 : i32
    %c0_i32_2 = arith.constant 0 : i32
    return %c0_i32, %c0_i32_0, %c0_i32_1 : i32, i32, i32
  }
  func.func @transform_6(%arg0: i32) -> (i32, i32, i32) {
    %c0_i32 = arith.constant 0 : i32
    %c0_i32_0 = arith.constant 0 : i32
    %c0_i32_1 = arith.constant 0 : i32
    %c0_i32_2 = arith.constant 0 : i32
    return %c0_i32, %c0_i32_0, %c0_i32_1 : i32, i32, i32
  }
  func.func @transform_7(%arg0: i32) -> (i32, i32, i32) {
    %c0_i32 = arith.constant 0 : i32
    %c0_i32_0 = arith.constant 0 : i32
    %c0_i32_1 = arith.constant 0 : i32
    %c0_i32_2 = arith.constant 0 : i32
    return %c0_i32, %c0_i32_0, %c0_i32_1 : i32, i32, i32
  }
  func.func @transform_8(%arg0: i32) -> (i32, i32, i32) {
    %c0_i32 = arith.constant 0 : i32
    %c0_i32_0 = arith.constant 0 : i32
    %c0_i32_1 = arith.constant 0 : i32
    %c0_i32_2 = arith.constant 0 : i32
    return %c0_i32, %c0_i32_0, %c0_i32_1 : i32, i32, i32
  }
  func.func @transform_9(%arg0: i32) -> (i32, i32, i32) {
    %c0_i32 = arith.constant 0 : i32
    %c0_i32_0 = arith.constant 0 : i32
    %c0_i32_1 = arith.constant 0 : i32
    %c0_i32_2 = arith.constant 0 : i32
    return %c0_i32, %c0_i32_0, %c0_i32_1 : i32, i32, i32
  }
  func.func @transform_10(%arg0: i32) -> (i32, i32, i32) {
    %c0_i32 = arith.constant 0 : i32
    %c0_i32_0 = arith.constant 0 : i32
    %c0_i32_1 = arith.constant 0 : i32
    %c0_i32_2 = arith.constant 0 : i32
    return %c0_i32, %c0_i32_0, %c0_i32_1 : i32, i32, i32
  }
  func.func @transform_11(%arg0: i32) -> (i32, i32, i32) {
    %c0_i32 = arith.constant 0 : i32
    %c0_i32_0 = arith.constant 0 : i32
    %c0_i32_1 = arith.constant 0 : i32
    %c0_i32_2 = arith.constant 0 : i32
    return %c0_i32, %c0_i32_0, %c0_i32_1 : i32, i32, i32
  }
  func.func @transform_12(%arg0: i32) -> (i32, i32, i32) {
    %c0_i32 = arith.constant 0 : i32
    %c0_i32_0 = arith.constant 0 : i32
    %c0_i32_1 = arith.constant 0 : i32
    %c0_i32_2 = arith.constant 0 : i32
    return %c0_i32, %c0_i32_0, %c0_i32_1 : i32, i32, i32
  }
  func.func @transform_13(%arg0: i32) -> (i32, i32, i32) {
    %c0_i32 = arith.constant 0 : i32
    %c0_i32_0 = arith.constant 0 : i32
    %c0_i32_1 = arith.constant 0 : i32
    %c0_i32_2 = arith.constant 0 : i32
    return %c0_i32, %c0_i32_0, %c0_i32_1 : i32, i32, i32
  }
  func.func @transform_14(%arg0: i32) -> (i32, i32, i32) {
    %c0_i32 = arith.constant 0 : i32
    %c0_i32_0 = arith.constant 0 : i32
    %c0_i32_1 = arith.constant 0 : i32
    %c0_i32_2 = arith.constant 0 : i32
    return %c0_i32, %c0_i32_0, %c0_i32_1 : i32, i32, i32
  }
  func.func @transform_15(%arg0: i32) -> (i32, i32, i32) {
    %c0_i32 = arith.constant 0 : i32
    %c0_i32_0 = arith.constant 0 : i32
    %c0_i32_1 = arith.constant 0 : i32
    %c0_i32_2 = arith.constant 0 : i32
    return %c0_i32, %c0_i32_0, %c0_i32_1 : i32, i32, i32
  }
  func.func @transform_16(%arg0: i32) -> (i32, i32, i32) {
    %c0_i32 = arith.constant 0 : i32
    %c0_i32_0 = arith.constant 0 : i32
    %c0_i32_1 = arith.constant 0 : i32
    %c0_i32_2 = arith.constant 0 : i32
    return %c0_i32, %c0_i32_0, %c0_i32_1 : i32, i32, i32
  }
  func.func @transform_17(%arg0: i32) -> (i32, i32, i32) {
    %c0_i32 = arith.constant 0 : i32
    %c0_i32_0 = arith.constant 0 : i32
    %c0_i32_1 = arith.constant 0 : i32
    %c0_i32_2 = arith.constant 0 : i32
    return %c0_i32, %c0_i32_0, %c0_i32_1 : i32, i32, i32
  }
  func.func @transform_18(%arg0: i32) -> (i32, i32) {
    %c0_i32 = arith.constant 0 : i32
    %c0_i32_0 = arith.constant 0 : i32
    %c0_i32_1 = arith.constant 0 : i32
    return %c0_i32, %c0_i32_0 : i32, i32
  }
  func.func @transform_19(%arg0: i32) -> (i32, i32) {
    %c0_i32 = arith.constant 0 : i32
    %c0_i32_0 = arith.constant 0 : i32
    %c0_i32_1 = arith.constant 0 : i32
    return %c0_i32, %c0_i32_0 : i32, i32
  }
  func.func @transform_20(%arg0: i32) -> (i32, i32) {
    %c0_i32 = arith.constant 0 : i32
    %c0_i32_0 = arith.constant 0 : i32
    %c0_i32_1 = arith.constant 0 : i32
    return %c0_i32, %c0_i32_0 : i32, i32
  }
}

</mosaic_0001>

<bundles_post_ra>
// kernel: tpu_custom_call.1
= control target key start
LH: loop header
LB: loop body
LE: loop exit
PB: predicated region body
PF: predicated region fallthrough
CT: control target
= control target key end

     0   :  { %v4950_v0 = vmov 0.0   ;;  %vm4951_vm0 = vmmov 0   ;;  %vm105_vm1 = vcmask 392192   ;;  %vm180_vm2 = vcmask 261120   ;;  %s4953_s22 = smov 88   ;;  %s4955_s24 = smov 120   ;;  %s6737_s1 = inlined_call_operand.vmem [shape: bf16[48,32], index: 1, kind: input, shape index: {}]   ;;  %s6738_s0 = inlined_call_operand.vmem [shape: f32[48,48], index: 0, kind: input, shape index: {}]   ;;  %s6739_s2 = inlined_call_operand.vmem [shape: f32[48,32], index: 2, kind: input, shape index: {}]   ;;  %s6740_s6 = inlined_call_operand.vmem [shape: bf16[2,32,96], index: 6, kind: input, shape index: {}]   ;;  %s6741_s4 = inlined_call_operand.vmem [shape: f32[2,1,32], index: 4, kind: input, shape index: {}]   ;;  %s6742_s5 = inlined_call_operand.vmem [shape: f32[2,1,32], index: 5, kind: input, shape index: {}]   ;;  %s6743_s7 = inlined_call_operand.vmem [shape: f32[2,1,96], index: 7, kind: input, shape index: {}]   ;;  %s6744_s3 = inlined_call_operand.vmem [shape: f32[48,48], index: 3, kind: input, shape index: {}]   ;;  %s6745_s8 = inlined_call_operand.vmem [shape: bf16[2,32,32], index: 8, kind: input, shape index: {}]   ;;  %s6746_s9 = inlined_call_operand.vmem [shape: f32[2,1,32], index: 9, kind: input, shape index: {}]   ;;  %s6747_s10 = inlined_call_operand.vmem [shape: f32[2,1,32], index: 10, kind: input, shape index: {}]   ;;  %s6748_s13 = inlined_call_operand.vmem [shape: bf16[2,32,128], index: 13, kind: input, shape index: {}]   ;;  %s6749_s11 = inlined_call_operand.vmem [shape: f32[2,1,32], index: 11, kind: input, shape index: {}]   ;;  %s6750_s12 = inlined_call_operand.vmem [shape: f32[2,1,32], index: 12, kind: input, shape index: {}]   ;;  %s6751_s15 = inlined_call_operand.vmem [shape: bf16[2,128,32], index: 15, kind: input, shape index: {}]   ;;  %s6752_s14 = inlined_call_operand.vmem [shape: f32[2,1,128], index: 14, kind: input, shape index: {}]   ;;  %s6753_s16 = inlined_call_operand.vmem [shape: f32[2,1,32], index: 16, kind: input, shape index: {}]   ;;  %s6754_s17 = inlined_call_operand.vmem [shape: f32[2,1,32], index: 17, kind: input, shape index: {}]   ;;  %s6755_s18 = inlined_call_operand.vmem [shape: f32[1,32], index: 18, kind: input, shape index: {}]   ;;  %s6756_s19 = inlined_call_operand.vmem [shape: f32[1,32], index: 19, kind: input, shape index: {}]   ;;  %s6757_s20 = inlined_call_operand.vmem [shape: f32[48,32], index: 20, kind: output, shape index: {}]  }
   0x1   :  { %6781 = sst [smem:[#allocation2_spill]] %s6737_s1  ;;  %4067 = vmatprep.subr.bf16.mxu0 %v4950_v0  ;;  %4073 = vmatprep.mubr.msk.bf16.mxu0 %vm4951_vm0, %v4950_v0  ;;  %s6775_s27 = smov 64   ;;  %vm388_vm3 = vcmask 64512   ;;  %vm1379_vm4 = vcmask 130048   ;;  %vm1386_vm5 = vcmask 195584  }
   0x2   :  { %6782 = sst [smem:[#allocation3_spill]] %s6738_s0  ;;  %4085 = vmatprep.subr.bf16.mxu1 %v4950_v0  ;;  %4089 = vmatprep.mubr.msk.bf16.mxu1 %vm4951_vm0, %v4950_v0  ;;  %s4952_s0 = smov 96  }
   0x3   :  { %6783 = sst [smem:[#allocation4_spill]] %s6739_s2  ;;  %s6777_s2 = smov 72  }
   0x4   :  { %6784 = sst [smem:[#allocation5_spill]] %s6740_s6  ;;  %s4957_s6 = smov 112  }
   0x5   :  { %6785 = sst [smem:[#allocation6_spill]] %s6741_s4  ;;  %s6767_s4 = smov 56  }
   0x6   :  { %s6786_s23 = sld [smem:[#allocation2_spill]]  ;;  %s6765_s29 = smov 48  }
   0x7   :  { %s6787_s28 = sld [smem:[#allocation3_spill]]  ;;  %s6763_s30 = smov 40  }
   0x8   :  { %s6788_s26 = sld [smem:[#allocation4_spill]]  ;;  %s6773_s1 = smov 8  }
   0x9   :  { %s6789_s25 = sld [smem:[#allocation5_spill]]  ;;  %s6769_s21 = smov 24  }
   0xc   :  { %v4637_v1 = vld [vmem:[%s6786_s23 + $0x10] sm:$0xff]   ;;  %v4638_v2 = vld [vmem:[%s6786_s23 + $0x8] sm:$0xff]   ;;  %v4639_v3 = vld [vmem:[%s6786_s23] sm:$0xff]   ;;  %s4954_s23 = smov 80  }
   0xd   :  { %4068 = vmatpush3.bf16.msra.mxu0 %v4637_v1  ;;  %v66_v4 = vld [vmem:[%s6787_s28] sm:$0xff]  ;;  %v67_v5 = vld [vmem:[%s6787_s28 + $0x8] sm:$0xff]  ;;  %v68_v7 = vld [vmem:[%s6787_s28 + $0x10] sm:$0xff] }
   0xe   :  { %4069 = vmatprep.subr.bf16.mxu0 %v4950_v0  ;;  %v72_v6 = vpack.c.bf16 %v67_v5, %v66_v4  ;;  %v69_v8 = vld [vmem:[%s6787_s28 + $0x18] sm:$0xff]  ;;  %v70_v10 = vld [vmem:[%s6787_s28 + $0x20] sm:$0xff]  ;;  %v71_v11 = vld [vmem:[%s6787_s28 + $0x28] sm:$0xff]  ;;  %s6790_s28 = sld [smem:[#allocation6_spill]] }
   0xf   :  { %v73_v9 = vpack.c.bf16 %v69_v8, %v68_v7  ;;  %v74_v12 = vpack.c.bf16 %v71_v11, %v70_v10  ;;  %v81_v13 = vld [vmem:[%s6788_s26] sm:$0xff]  ;;  %v82_v17 = vld [vmem:[%s6788_s26 + $0x8] sm:$0xff]  ;;  %v83_v22 = vld [vmem:[%s6788_s26 + $0x10] sm:$0xff] }
  0x10   :  { %v84_v27 = vld [vmem:[%s6788_s26 + $0x18] sm:$0xff]  ;;  %v85_v32 = vld [vmem:[%s6788_s26 + $0x20] sm:$0xff]  ;;  %v86_v37 = vld [vmem:[%s6788_s26 + $0x28] sm:$0xff]  ;;  %s6779_s26 = smov 104  }
  0x11   :  { %4070 = vmatpush3.bf16.msra.mxu0 %v4638_v2  ;;  %v4640_v10 = vld [vmem:[%s6789_s25 + $0x8] sm:$0xff]   ;;  %v4641_v11 = vld [vmem:[%s6789_s25] sm:$0xff]  }
  0x12   :  { %4071 = vmatprep.subr.bf16.mxu0 %v4950_v0  ;;  %4086 = vmatpush3.bf16.msra.mxu1 %v4640_v10 }
  0x13   :  { %4087 = vmatprep.subr.bf16.mxu1 %v4950_v0 }
  0x15   :  { %4072 = vmatpush3.bf16.msra.mxu0 %v4639_v3 }
  0x16   :  { %4119 = vmatprep.subr.bf16.mxu0 %v4950_v0  ;;  %4088 = vmatpush3.bf16.msra.mxu1 %v4641_v11 }
  0x17   :  { %4101 = vmatprep.subr.bf16.mxu1 %v4950_v0 }
  0x18   :  { %4074 = vmatmul.mubr.msk.bf16.vlgmr.msra.gmra.mxu0 %vm105_vm1, %v72_v6 }
  0x19   :  { %4077 = vmatprep.mubr.msk.bf16.mxu0 %vm4951_vm0, %v4950_v0 }
  0x20   :  { %4078 = vmatmul.mubr.msk.bf16.gmra.mxu0 %vm105_vm1, %v73_v9 }
  0x21   :  { %4081 = vmatprep.mubr.msk.bf16.mxu0 %vm4951_vm0, %v4950_v0 }
  0x28   :  { %4082 = vmatmul.mubr.msk.bf16.gmra.mxu0 %vm105_vm1, %v74_v12 }
  0x29   :  { %4125 = vmatprep.mubr.msk.bf16.mxu0 %vm4951_vm0, %v4950_v0 }
  0xd8   :  { %v149_v14 = vpop.f32.mrf.mxu0 }
  0xd9   :  { %v5119_v15 = vadd.f32 %v149_v14, %v81_v13 }
  0xda   :  { %v4075_v16 = vpop.f32.mrf.mxu0 }
  0xdb   :  { %v181_v18 = vsel %vm180_vm2, %v5119_v15, 0.0 }
  0xdc   :  { %182 = vadd.xlane.f32.xlu0 %v181_v18  ;;  %v152_v19 = vpop.f32.mrf.mxu0 }
  0xdd   :  { %v5126_v20 = vadd.f32 %v152_v19, %v82_v17 }
  0xde   :  { %v4076_v21 = vpop.f32.mrf.mxu0 }
  0xdf   :  { %v184_v23 = vsel %vm180_vm2, %v5126_v20, 0.0 }
  0xe0   :  { %185 = vadd.xlane.f32.xlu0 %v184_v23  ;;  %v157_v24 = vpop.f32.mrf.mxu0 }
  0xe1   :  { %v5133_v25 = vadd.f32 %v157_v24, %v83_v22 }
  0xe2   :  { %v4079_v26 = vpop.f32.mrf.mxu0 }
  0xe3   :  { %v187_v28 = vsel %vm180_vm2, %v5133_v25, 0.0 }
  0xe4   :  { %188 = vadd.xlane.f32.xlu1 %v187_v28  ;;  %v160_v29 = vpop.f32.mrf.mxu0 }
  0xe5   :  { %v5140_v30 = vadd.f32 %v160_v29, %v84_v27 }
  0xe6   :  { %v4080_v31 = vpop.f32.mrf.mxu0 }
  0xe7   :  { %v190_v33 = vsel %vm180_vm2, %v5140_v30, 0.0 }
  0xe8   :  { %191 = vadd.xlane.f32.xlu1 %v190_v33  ;;  %v165_v34 = vpop.f32.mrf.mxu0 }
  0xe9   :  { %v5147_v35 = vadd.f32 %v165_v34, %v85_v32  ;;  %v3759_v34 = vld [vmem:[%s6790_s28] ss:$0 sm:$0xff] }
  0xea   :  { %v4083_v36 = vpop.f32.mrf.mxu0 }
  0xeb   :  { %v193_v38 = vsel %vm180_vm2, %v5147_v35, 0.0 }
  0xec   :  { %194 = vadd.xlane.f32.xlu0 %v193_v38  ;;  %v168_v39 = vpop.f32.mrf.mxu0 }
  0xed   :  { %v5154_v40 = vadd.f32 %v168_v39, %v86_v37 }
  0xee   :  { %v4084_v41 = vpop.f32.mrf.mxu0 }
  0xef   :  { %v196_v42 = vsel %vm180_vm2, %v5154_v40, 0.0 }
  0xf0   :  { %197 = vadd.xlane.f32.xlu1 %v196_v42  ;;  %v3760_v42 = vld [vmem:[%s6742_s5] ss:$0 sm:$0xff] }
 0x165   :  { %v183_v43 = vpop.xlane.xlu0 %182 }
 0x166   :  { %v200_v44 = vmul.f32 0.03125, %v183_v43 }
 0x168   :  { %v206_v45 = vsub.f32 %v5119_v15, %v200_v44 }
 0x169   :  { %v186_v46 = vpop.xlane.xlu0 %185 }
 0x16a   :  { %v201_v47 = vmul.f32 0.03125, %v186_v46  ;;  %v212_v48 = vmul.f32 %v206_v45, %v206_v45 }
 0x16c   :  { %v5160_v49 = vsub.f32 %v5126_v20, %v201_v47  ;;  %v218_v50 = vsel %vm180_vm2, %v212_v48, 0.0 }
 0x16d   :  { %v189_v51 = vpop.xlane.xlu1 %188  ;;  %219 = vadd.xlane.f32.xlu0 %v218_v50 }
 0x16e   :  { %v202_v52 = vmul.f32 0.03125, %v189_v51  ;;  %v213_v53 = vmul.f32 %v5160_v49, %v5160_v49 }
 0x170   :  { %v5166_v54 = vsub.f32 %v5133_v25, %v202_v52  ;;  %v221_v55 = vsel %vm180_vm2, %v213_v53, 0.0 }
 0x171   :  { %v192_v56 = vpop.xlane.xlu1 %191  ;;  %222 = vadd.xlane.f32.xlu1 %v221_v55 }
 0x172   :  { %v203_v57 = vmul.f32 0.03125, %v192_v56  ;;  %v214_v58 = vmul.f32 %v5166_v54, %v5166_v54 }
 0x174   :  { %v5172_v59 = vsub.f32 %v5140_v30, %v203_v57  ;;  %v224_v60 = vsel %vm180_vm2, %v214_v58, 0.0 }
 0x175   :  { %225 = vadd.xlane.f32.xlu0 %v224_v60  ;;  %v195_v61 = vpop.xlane.xlu0 %194 }
 0x176   :  { %v204_v62 = vmul.f32 0.03125, %v195_v61  ;;  %v215_v63 = vmul.f32 %v5172_v59, %v5172_v59 }
 0x178   :  { %v5178_v1 = vsub.f32 %v5147_v35, %v204_v62  ;;  %v227_v2 = vsel %vm180_vm2, %v215_v63, 0.0 }
 0x179   :  { %228 = vadd.xlane.f32.xlu1 %v227_v2  ;;  %v198_v3 = vpop.xlane.xlu1 %197 }
 0x17a   :  { %v205_v4 = vmul.f32 0.03125, %v198_v3  ;;  %v216_v5 = vmul.f32 %v5178_v1, %v5178_v1 }
 0x17c   :  { %v5184_v6 = vsub.f32 %v5154_v40, %v205_v4  ;;  %v230_v7 = vsel %vm180_vm2, %v216_v5, 0.0 }
 0x17d   :  { %231 = vadd.xlane.f32.xlu0 %v230_v7 }
 0x17e   :  { %v217_v8 = vmul.f32 %v5184_v6, %v5184_v6 }
 0x180   :  { %v233_v9 = vsel %vm180_vm2, %v217_v8, 0.0 }
 0x181   :  { %234 = vadd.xlane.f32.xlu1 %v233_v9 }
 0x1f6   :  { %v220_v12 = vpop.xlane.xlu0 %219 }
 0x1f7   :  { %v236_v13 = vmul.f32 0.03125, %v220_v12 }
 0x1f9   :  { %v242_v14 = vadd.f32 1e-06, %v236_v13 }
 0x1fa   :  { %v223_v16 = vpop.xlane.xlu1 %222 }
 0x1fb   :  { %4668 = vrsqrt.f32 %v242_v14  ;;  %v237_v17 = vmul.f32 0.03125, %v223_v16 }
 0x1fd   :  { %v243_v18 = vadd.f32 1e-06, %v237_v17 }
 0x1fe   :  { %v226_v19 = vpop.xlane.xlu0 %225 }
 0x1ff   :  { %4670 = vrsqrt.f32 %v243_v18  ;;  %v238_v21 = vmul.f32 0.03125, %v226_v19 }
 0x201   :  { %v244_v22 = vadd.f32 1e-06, %v238_v21 }
 0x202   :  { %v229_v23 = vpop.xlane.xlu1 %228 }
 0x203   :  { %4672 = vrsqrt.f32 %v244_v22  ;;  %v239_v24 = vmul.f32 0.03125, %v229_v23 }
 0x205   :  { %v245_v26 = vadd.f32 1e-06, %v239_v24 }
 0x206   :  { %v232_v27 = vpop.xlane.xlu0 %231 }
 0x207   :  { %4674 = vrsqrt.f32 %v245_v26  ;;  %v240_v28 = vmul.f32 0.03125, %v232_v27 }
 0x208   :  { %v4669_v29 = vpop.eup %4668 }
 0x209   :  { %v246_v31 = vadd.f32 1e-06, %v240_v28  ;;  %v254_v32 = vmul.f32 %v4669_v29, %v206_v45 }
 0x20a   :  { %v235_v33 = vpop.xlane.xlu1 %234 }
 0x20b   :  { %4676 = vrsqrt.f32 %v246_v31  ;;  %v241_v36 = vmul.f32 0.03125, %v235_v33  ;;  %v266_v41 = vmul.f32 %v3759_v34, %v254_v32 }
 0x20c   :  { %v4671_v37 = vpop.eup %4670 }
 0x20d   :  { %v247_v38 = vadd.f32 1e-06, %v241_v36  ;;  %v255_v39 = vmul.f32 %v4671_v37, %v5160_v49  ;;  %v278_v45 = vadd.f32 %v3760_v42, %v266_v41 }
 0x20f   :  { %4678 = vrsqrt.f32 %v247_v38  ;;  %v267_v43 = vmul.f32 %v3759_v34, %v255_v39 }
 0x210   :  { %v4673_v44 = vpop.eup %4672 }
 0x211   :  { %v279_v46 = vadd.f32 %v3760_v42, %v267_v43  ;;  %v256_v47 = vmul.f32 %v4673_v44, %v5166_v54 }
 0x213   :  { %v284_v48 = vpack.c.bf16 %v279_v46, %v278_v45  ;;  %v268_v52 = vmul.f32 %v3759_v34, %v256_v47 }
 0x214   :  { %v4675_v50 = vpop.eup %4674 }
 0x215   :  { %4090 = vmatmul.mubr.msk.bf16.vlgmr.msra.gmra.mxu1 %vm180_vm2, %v284_v48  ;;  %v257_v51 = vmul.f32 %v4675_v50, %v5172_v59  ;;  %v280_v55 = vadd.f32 %v3760_v42, %v268_v52 }
 0x216   :  { %4093 = vmatprep.mubr.msk.bf16.mxu1 %vm4951_vm0, %v4950_v0 }
 0x217   :  { %v269_v49 = vmul.f32 %v3759_v34, %v257_v51 }
 0x218   :  { %v4677_v53 = vpop.eup %4676 }
 0x219   :  { %v281_v56 = vadd.f32 %v3760_v42, %v269_v49  ;;  %v258_v57 = vmul.f32 %v4677_v53, %v5178_v1 }
 0x21b   :  { %v285_v58 = vpack.c.bf16 %v281_v56, %v280_v55  ;;  %v270_v61 = vmul.f32 %v3759_v34, %v258_v57 }
 0x21c   :  { %v4679_v60 = vpop.eup %4678 }
 0x21d   :  { %4094 = vmatmul.mubr.msk.bf16.gmra.mxu1 %vm180_vm2, %v285_v58  ;;  %v259_v54 = vmul.f32 %v4679_v60, %v5184_v6  ;;  %v282_v62 = vadd.f32 %v3760_v42, %v270_v61  ;;  %v3761_v6 = vld [vmem:[%s6743_s7] ss:$0 sm:$0xff] }
 0x21e   :  { %4097 = vmatprep.mubr.msk.bf16.mxu1 %vm4951_vm0, %v4950_v0 }
 0x21f   :  { %v271_v59 = vmul.f32 %v3759_v34, %v259_v54 }
 0x221   :  { %v283_v63 = vadd.f32 %v3760_v42, %v271_v59 }
 0x223   :  { %v286_v2 = vpack.c.bf16 %v283_v63, %v282_v62 }
 0x225   :  { %4098 = vmatmul.mubr.msk.bf16.gmra.mxu1 %vm180_vm2, %v286_v2 }
 0x226   :  { %4107 = vmatprep.mubr.msk.bf16.mxu1 %vm4951_vm0, %v4950_v0 }
 0x2d5   :  { %v353_v1 = vpop.f32.mrf.mxu1 }
 0x2d6   :  { %v354_v17 = vadd.f32 %v3761_v6, %v353_v1 }
 0x2d7   :  { %v4091_v3 = vpop.f32.mrf.mxu1 }
 0x2d8   :  { %v5348_v3 = vld [vmem:[%s6744_s3] sm:$0xff] }
 0x2d9   :  { %v356_v4 = vpop.f32.mrf.mxu1 }
 0x2da   :  { %v357_v13 = vadd.f32 %v3761_v6, %v356_v4 }
 0x2db   :  { %v4092_v5 = vpop.f32.mrf.mxu1 }
 0x2dc   :  { %v5225_v19 = vpack.c.bf16 %v357_v13, %v354_v17 }
 0x2dd   :  { %v361_v7 = vpop.f32.mrf.mxu1 }
 0x2de   :  { %v362_v10 = vadd.f32 %v3761_v6, %v361_v7 }
 0x2df   :  { %v4095_v8 = vpop.f32.mrf.mxu1 }
 0x2e0   :  { %v5356_v8 = vld [vmem:[%s6744_s3 + $0x8] sm:$0xff] }
 0x2e1   :  { %v364_v9 = vpop.f32.mrf.mxu1 }
 0x2e2   :  { %v365_v11 = vadd.f32 %v3761_v6, %v364_v9 }
 0x2e3   :  { %v4096_v12 = vpop.f32.mrf.mxu1 }
 0x2e4   :  { %v5221_v14 = vpack.c.bf16 %v365_v11, %v362_v10  ;;  %v5366_v12 = vld [vmem:[%s6744_s3 + $0x10] sm:$0xff] }
 0x2e5   :  { %v369_v16 = vpop.f32.mrf.mxu1 }
 0x2e6   :  { %384 = vrot.lane.b32.xlu1 %v5221_v14, %s4952_s0  ;;  %v370_v22 = vadd.f32 %v3761_v6, %v369_v16 }
 0x2e7   :  { %v4099_v18 = vpop.f32.mrf.mxu1 }
 0x2e9   :  { %v372_v21 = vpop.f32.mrf.mxu1 }
 0x2ea   :  { %v373_v23 = vadd.f32 %v3761_v6, %v372_v21  ;;  %382 = vrot.lane.b32.xlu1 %v5225_v19, %s4952_s0  ;;  %v5376_v21 = vld [vmem:[%s6744_s3 + $0x18] sm:$0xff] }
 0x2eb   :  { %v4100_v24 = vpop.f32.mrf.mxu1 }
 0x2ec   :  { %v5229_v26 = vpack.c.bf16 %v373_v23, %v370_v22 }
 0x2ee   :  { %618 = vrot.lane.b32.xlu1 %v5229_v26, %s4953_s22  ;;  %386 = vrot.lane.b32.xlu0 %v5229_v26, %s4952_s0 }
 0x2f2   :  { %614 = vrot.lane.b32.xlu1 %v5225_v19, %s4953_s22  ;;  %616 = vrot.lane.b32.xlu0 %v5221_v14, %s4953_s22 }
 0x2f6   :  { %849 = vrot.lane.b32.xlu1 %v5229_v26, %s4954_s23  ;;  %608 = vrot.lane.b32.xlu0 %v5225_v19, %s4955_s24 }
 0x2fa   :  { %847 = vrot.lane.b32.xlu1 %v5221_v14, %s4954_s23  ;;  %610 = vrot.lane.b32.xlu0 %v5221_v14, %s4955_s24 }
 0x2fe   :  { %845 = vrot.lane.b32.xlu1 %v5225_v19, %s4954_s23  ;;  %612 = vrot.lane.b32.xlu0 %v5229_v26, %s4955_s24 }
 0x302   :  { %1080 = vrot.lane.b32.xlu1 %v5229_v26, %s6777_s2  ;;  %839 = vrot.lane.b32.xlu0 %v5225_v19, %s4957_s6 }
 0x306   :  { %1078 = vrot.lane.b32.xlu1 %v5221_v14, %s6777_s2  ;;  %841 = vrot.lane.b32.xlu0 %v5221_v14, %s4957_s6 }
 0x30a   :  { %1076 = vrot.lane.b32.xlu1 %v5225_v19, %s6777_s2  ;;  %843 = vrot.lane.b32.xlu0 %v5229_v26, %s4957_s6 }
 0x30e   :  { %1072 = vrot.lane.b32.xlu1 %v5221_v14, %s6779_s26  ;;  %1070 = vrot.lane.b32.xlu0 %v5225_v19, %s6779_s26 }
 0x312   :  { %533 = vrot.lane.b32.xlu1 %v5225_v19, %s6775_s27  ;;  %1074 = vrot.lane.b32.xlu0 %v5229_v26, %s6779_s26 }
 0x316   :  { %537 = vrot.lane.b32.xlu1 %v5229_v26, %s6775_s27  ;;  %535 = vrot.lane.b32.xlu0 %v5221_v14, %s6775_s27 }
 0x31a   :  { %768 = vrot.lane.b32.xlu1 %v5229_v26, %s6767_s4  ;;  %766 = vrot.lane.b32.xlu0 %v5221_v14, %s6767_s4 }
 0x358   :  { %v385_v27 = vpop.permute.xlu1 %384 }
 0x359   :  { %v402_v38 = vsel %vm388_vm3, %v385_v27, 0 }
 0x35c   :  { %v383_v28 = vpop.permute.xlu1 %382 }
 0x35d   :  { %v399_v44 = vsel %vm388_vm3, %v383_v28, 0  ;;  %v5386_v28 = vld [vmem:[%s6744_s3 + $0x20] sm:$0xff] }
 0x360   :  { %v387_v29 = vpop.permute.xlu0 %386  ;;  %v619_v31 = vpop.permute.xlu1 %618 }
 0x361   :  { %v405_v32 = vsel %vm388_vm3, %v387_v29, 0  ;;  %v636_v50 = vsel %vm388_vm3, %v619_v31, 0 }
 0x362   :  { %4102 = vmatpush3.bf16.xpose.msra.mxu1 %v405_v32 }
 0x363   :  { %4103 = vmatprep.subr.bf16.mxu1 %v4950_v0 }
 0x364   :  { %v617_v33 = vpop.permute.xlu0 %616  ;;  %v615_v34 = vpop.permute.xlu1 %614 }
 0x365   :  { %v633_v55 = vsel %vm388_vm3, %v617_v33, 0  ;;  %v630_v60 = vsel %vm388_vm3, %v615_v34, 0  ;;  %v5396_v34 = vld [vmem:[%s6744_s3 + $0x28] sm:$0xff] }
 0x368   :  { %v609_v36 = vpop.permute.xlu0 %608  ;;  %v850_v37 = vpop.permute.xlu1 %849 }
 0x369   :  { %v867_v61 = vsel %vm388_vm3, %v850_v37, 0 }
 0x36a   :  { %4104 = vmatpush3.bf16.xpose.msra.mxu1 %v402_v38 }
 0x36b   :  { %4105 = vmatprep.subr.bf16.mxu1 %v4950_v0 }
 0x36c   :  { %v611_v39 = vpop.permute.xlu0 %610  ;;  %v848_v41 = vpop.permute.xlu1 %847 }
 0x36d   :  { %v864_v59 = vsel %vm388_vm3, %v848_v41, 0 }
 0x370   :  { %v613_v42 = vpop.permute.xlu0 %612  ;;  %v846_v43 = vpop.permute.xlu1 %845 }
 0x371   :  { %v861_v62 = vsel %vm388_vm3, %v846_v43, 0 }
 0x372   :  { %4106 = vmatpush3.bf16.xpose.msra.mxu1 %v399_v44 }
 0x373   :  { %4137 = vmatprep.subr.bf16.mxu1 %v4950_v0 }
 0x374   :  { %v840_v45 = vpop.permute.xlu0 %839  ;;  %v1081_v46 = vpop.permute.xlu1 %1080 }
 0x375   :  { %v1098_v63 = vsel %vm388_vm3, %v1081_v46, 0 }
 0x378   :  { %v842_v47 = vpop.permute.xlu0 %841  ;;  %v1079_v48 = vpop.permute.xlu1 %1078 }
 0x379   :  { %4108 = vmatmul.mubr.msk.bf16.vlgmr.msra.gmra.mxu1 %vm388_vm3, %v5225_v19  ;;  %v1095_v2 = vsel %vm388_vm3, %v1079_v48, 0 }
 0x37a   :  { %4138 = vmatpush3.bf16.xpose.msra.mxu1 %v636_v50  ;;  %4111 = vmatprep.mubr.msk.bf16.mxu1 %vm4951_vm0, %v4950_v0 }
 0x37b   :  { %4139 = vmatprep.subr.bf16.mxu1 %v4950_v0 }
 0x37c   :  { %v844_v51 = vpop.permute.xlu0 %843  ;;  %v1077_v52 = vpop.permute.xlu1 %1076 }
 0x37d   :  { %v1092_v1 = vsel %vm388_vm3, %v1077_v52, 0 }
 0x380   :  { %v1071_v49 = vpop.permute.xlu0 %1070  ;;  %v1073_v53 = vpop.permute.xlu1 %1072 }
 0x381   :  { %4112 = vmatmul.mubr.msk.bf16.gmra.mxu1 %vm388_vm3, %v5221_v14 }
 0x382   :  { %4140 = vmatpush3.bf16.xpose.msra.mxu1 %v633_v55  ;;  %4115 = vmatprep.mubr.msk.bf16.mxu1 %vm4951_vm0, %v4950_v0 }
 0x383   :  { %4141 = vmatprep.subr.bf16.mxu1 %v4950_v0 }
 0x384   :  { %v534_v56 = vpop.permute.xlu1 %533  ;;  %v1075_v57 = vpop.permute.xlu0 %1074 }
 0x388   :  { %v538_v58 = vpop.permute.xlu1 %537  ;;  %v536_v54 = vpop.permute.xlu0 %535 }
 0x389   :  { %4116 = vmatmul.mubr.msk.bf16.gmra.mxu1 %vm388_vm3, %v5229_v26  ;;  %4120 = vmatpush3.bf16.msra.mxu0 %v538_v58 }
 0x38a   :  { %4142 = vmatpush3.bf16.xpose.msra.mxu1 %v630_v60  ;;  %4121 = vmatprep.subr.bf16.mxu0 %v4950_v0 }
 0x38b   :  { %4143 = vmatprep.mubr.msk.bf16.mxu1 %vm4951_vm0, %v4950_v0  ;;  %4173 = vmatprep.subr.bf16.mxu1 %v4950_v0 }
 0x38d   :  { %4122 = vmatpush3.bf16.msra.mxu0 %v536_v54 }
 0x38e   :  { %4123 = vmatprep.subr.bf16.mxu0 %v4950_v0 }
 0x391   :  { %4124 = vmatpush3.bf16.msra.mxu0 %v534_v56  ;;  %4144 = vmatmul.mubr.msk.bf16.vlgmr.msra.gmra.mxu1 %vm388_vm3, %v609_v36 }
 0x392   :  { %4174 = vmatpush3.bf16.xpose.msra.mxu1 %v867_v61  ;;  %4147 = vmatprep.mubr.msk.bf16.mxu1 %vm4951_vm0, %v4950_v0 }
 0x393   :  { %4175 = vmatprep.subr.bf16.mxu1 %v4950_v0  ;;  %4155 = vmatprep.subr.bf16.mxu0 %v4950_v0 }
 0x399   :  { %4148 = vmatmul.mubr.msk.bf16.gmra.mxu1 %vm388_vm3, %v611_v39 }
 0x39a   :  { %4176 = vmatpush3.bf16.xpose.msra.mxu1 %v864_v59  ;;  %4151 = vmatprep.mubr.msk.bf16.mxu1 %vm4951_vm0, %v4950_v0 }
 0x39b   :  { %4177 = vmatprep.subr.bf16.mxu1 %v4950_v0 }
 0x3a1   :  { %4152 = vmatmul.mubr.msk.bf16.gmra.mxu1 %vm388_vm3, %v613_v42 }
 0x3a2   :  { %4178 = vmatpush3.bf16.xpose.msra.mxu1 %v861_v62  ;;  %4179 = vmatprep.mubr.msk.bf16.mxu1 %vm4951_vm0, %v4950_v0 }
 0x3a3   :  { %4209 = vmatprep.subr.bf16.mxu1 %v4950_v0 }
 0x3a9   :  { %4180 = vmatmul.mubr.msk.bf16.vlgmr.msra.gmra.mxu1 %vm388_vm3, %v840_v45 }
 0x3aa   :  { %4210 = vmatpush3.bf16.xpose.msra.mxu1 %v1098_v63  ;;  %4183 = vmatprep.mubr.msk.bf16.mxu1 %vm4951_vm0, %v4950_v0 }
 0x3ab   :  { %4211 = vmatprep.subr.bf16.mxu1 %v4950_v0 }
 0x3b1   :  { %4184 = vmatmul.mubr.msk.bf16.gmra.mxu1 %vm388_vm3, %v842_v47 }
 0x3b2   :  { %4212 = vmatpush3.bf16.xpose.msra.mxu1 %v1095_v2  ;;  %4187 = vmatprep.mubr.msk.bf16.mxu1 %vm4951_vm0, %v4950_v0 }
 0x3b3   :  { %4213 = vmatprep.subr.bf16.mxu1 %v4950_v0 }
 0x3b9   :  { %4188 = vmatmul.mubr.msk.bf16.gmra.mxu1 %vm388_vm3, %v844_v51 }
 0x3ba   :  { %4214 = vmatpush3.bf16.xpose.msra.mxu1 %v1092_v1  ;;  %4215 = vmatprep.mubr.msk.bf16.mxu1 %vm4951_vm0, %v4950_v0 }
 0x3bb   :  { %4525 = vmatprep.subr.bf16.mxu1 %v4950_v0 }
 0x3c1   :  { %4216 = vmatmul.mubr.msk.bf16.vlgmr.msra.gmra.mxu1 %vm388_vm3, %v1071_v49 }
 0x3c2   :  { %4219 = vmatprep.mubr.msk.bf16.mxu1 %vm4951_vm0, %v4950_v0 }
 0x3c9   :  { %4220 = vmatmul.mubr.msk.bf16.gmra.mxu1 %vm388_vm3, %v1073_v53 }
 0x3ca   :  { %4223 = vmatprep.mubr.msk.bf16.mxu1 %vm4951_vm0, %v4950_v0 }
 0x3d1   :  { %4224 = vmatmul.mubr.msk.bf16.gmra.mxu1 %vm388_vm3, %v1075_v57 }
 0x3d2   :  { %4237 = vmatprep.mubr.msk.bf16.mxu1 %vm4951_vm0, %v4950_v0 }
 0x439   :  { %v441_v4 = vpop.f32.mrf.mxu1 }
 0x43a   :  { %v5351_v5 = vadd.f32 %v441_v4, %v5348_v3 }
 0x43b   :  { %v4109_v7 = vpop.f32.mrf.mxu1 }
 0x43c   :  { %v464_v6 = vsel %vm105_vm1, %v5351_v5, -inf }
 0x43d   :  { %465 = vmax.xlane.f32.xlu1 %v464_v6  ;;  %v444_v9 = vpop.f32.mrf.mxu1 }
 0x43e   :  { %v5361_v10 = vadd.f32 %v444_v9, %v5356_v8 }
 0x43f   :  { %v4110_v11 = vpop.f32.mrf.mxu1 }
 0x440   :  { %v467_v13 = vsel %vm105_vm1, %v5361_v10, -inf }
 0x441   :  { %468 = vmax.xlane.f32.xlu0 %v467_v13  ;;  %v449_v16 = vpop.f32.mrf.mxu1 }
 0x442   :  { %v5371_v17 = vadd.f32 %v449_v16, %v5366_v12 }
 0x443   :  { %v4113_v18 = vpop.f32.mrf.mxu1 }
 0x444   :  { %v470_v22 = vsel %vm105_vm1, %v5371_v17, -inf }
 0x445   :  { %471 = vmax.xlane.f32.xlu0 %v470_v22  ;;  %v452_v23 = vpop.f32.mrf.mxu1 }
 0x446   :  { %v5381_v24 = vadd.f32 %v452_v23, %v5376_v21 }
 0x447   :  { %v4114_v27 = vpop.f32.mrf.mxu1 }
 0x448   :  { %v473_v29 = vsel %vm105_vm1, %v5381_v24, -inf }
 0x449   :  { %474 = vmax.xlane.f32.xlu0 %v473_v29  ;;  %v457_v31 = vpop.f32.mrf.mxu1 }
 0x44a   :  { %v5391_v32 = vadd.f32 %v457_v31, %v5386_v28 }
 0x44b   :  { %v4117_v33 = vpop.f32.mrf.mxu1 }
 0x44c   :  { %v476_v36 = vsel %vm105_vm1, %v5391_v32, -inf }
 0x44d   :  { %477 = vmax.xlane.f32.xlu1 %v476_v36  ;;  %v460_v37 = vpop.f32.mrf.mxu1 }
 0x44e   :  { %v5401_v38 = vadd.f32 %v460_v37, %v5396_v34 }
 0x44f   :  { %v4118_v39 = vpop.f32.mrf.mxu1 }
 0x450   :  { %v479_v41 = vsel %vm105_vm1, %v5401_v38, -inf }
 0x451   :  { %480 = vmax.xlane.f32.xlu0 %v479_v41  ;;  %v672_v42 = vpop.f32.mrf.mxu1 }
 0x452   :  { %v5406_v43 = vadd.f32 %v672_v42, %v5348_v3 }
 0x453   :  { %v4145_v44 = vpop.f32.mrf.mxu1 }
 0x454   :  { %v695_v45 = vsel %vm105_vm1, %v5406_v43, -inf }
 0x455   :  { %696 = vmax.xlane.f32.xlu1 %v695_v45  ;;  %v675_v46 = vpop.f32.mrf.mxu1 }
 0x456   :  { %v5411_v47 = vadd.f32 %v675_v46, %v5356_v8 }
 0x457   :  { %v4146_v48 = vpop.f32.mrf.mxu1 }
 0x458   :  { %v698_v50 = vsel %vm105_vm1, %v5411_v47, -inf }
 0x459   :  { %699 = vmax.xlane.f32.xlu0 %v698_v50  ;;  %v680_v51 = vpop.f32.mrf.mxu1 }
 0x45a   :  { %v5416_v52 = vadd.f32 %v680_v51, %v5366_v12 }
 0x45b   :  { %v4149_v49 = vpop.f32.mrf.mxu1 }
 0x45c   :  { %v701_v53 = vsel %vm105_vm1, %v5416_v52, -inf }
 0x45d   :  { %702 = vmax.xlane.f32.xlu1 %v701_v53  ;;  %v683_v55 = vpop.f32.mrf.mxu1 }
 0x45e   :  { %v5421_v56 = vadd.f32 %v683_v55, %v5376_v21 }
 0x45f   :  { %v4150_v57 = vpop.f32.mrf.mxu1 }
 0x460   :  { %v704_v58 = vsel %vm105_vm1, %v5421_v56, -inf }
 0x461   :  { %705 = vmax.xlane.f32.xlu0 %v704_v58  ;;  %v688_v60 = vpop.f32.mrf.mxu1 }
 0x462   :  { %v5426_v54 = vadd.f32 %v688_v60, %v5386_v28 }
 0x463   :  { %v4153_v61 = vpop.f32.mrf.mxu1 }
 0x464   :  { %v707_v59 = vsel %vm105_vm1, %v5426_v54, -inf }
 0x465   :  { %708 = vmax.xlane.f32.xlu1 %v707_v59  ;;  %v691_v62 = vpop.f32.mrf.mxu1 }
 0x466   :  { %v5437_v45 = vadd.f32 %v691_v62, %v5396_v34 }
 0x467   :  { %v4154_v63 = vpop.f32.mrf.mxu1 }
 0x468   :  { %v710_v53 = vsel %vm105_vm1, %v5437_v45, -inf }
 0x469   :  { %v903_v2 = vpop.f32.mrf.mxu1 }
 0x46a   :  { %v5440_v46 = vadd.f32 %v903_v2, %v5348_v3 }
 0x46b   :  { %v4181_v1 = vpop.f32.mrf.mxu1 }
 0x46c   :  { %v926_v55 = vsel %vm105_vm1, %v5440_v46, -inf }
 0x46d   :  { %v906_v4 = vpop.f32.mrf.mxu1 }
 0x46e   :  { %v5443_v51 = vadd.f32 %v906_v4, %v5356_v8 }
 0x46f   :  { %v4182_v7 = vpop.f32.mrf.mxu1 }
 0x470   :  { %v929_v60 = vsel %vm105_vm1, %v5443_v51, -inf }
 0x471   :  { %v911_v6 = vpop.f32.mrf.mxu1 }
 0x472   :  { %v5446_v49 = vadd.f32 %v911_v6, %v5366_v12 }
 0x473   :  { %v4185_v9 = vpop.f32.mrf.mxu1 }
 0x474   :  { %v932_v61 = vsel %vm105_vm1, %v5446_v49, -inf }
 0x475   :  { %v914_v11 = vpop.f32.mrf.mxu1 }
 0x476   :  { %764 = vrot.lane.b32.xlu1 %v5225_v19, %s6767_s4  ;;  %v5453_v57 = vadd.f32 %v914_v11, %v5376_v21 }
 0x477   :  { %999 = vrot.lane.b32.xlu0 %v5229_v26, %s6765_s29  ;;  %v4186_v13 = vpop.f32.mrf.mxu1 }
 0x478   :  { %v935_v63 = vsel %vm105_vm1, %v5453_v57, -inf }
 0x479   :  { %v919_v16 = vpop.f32.mrf.mxu1 }
 0x47a   :  { %v5456_v58 = vadd.f32 %v919_v16, %v5386_v28  ;;  %v5501_v16 = vpop.permute.xlu1 %768 }
 0x47b   :  { %997 = vrot.lane.b32.xlu0 %v5221_v14, %s6765_s29  ;;  %v4189_v18 = vpop.f32.mrf.mxu1 }
 0x47c   :  { %v938_v2 = vsel %vm105_vm1, %v5456_v58, -inf  ;;  %v5503_v18 = vpop.permute.xlu0 %766 }
 0x47d   :  { %v922_v22 = vpop.f32.mrf.mxu1 }
 0x47e   :  { %v5463_v59 = vadd.f32 %v922_v22, %v5396_v34 }
 0x47f   :  { %v4190_v23 = vpop.f32.mrf.mxu1 }
 0x480   :  { %v941_v7 = vsel %vm105_vm1, %v5463_v59, -inf }
 0x481   :  { %v1134_v27 = vpop.f32.mrf.mxu1 }
 0x482   :  { %v5466_v62 = vadd.f32 %v1134_v27, %v5348_v3 }
 0x483   :  { %v4217_v29 = vpop.f32.mrf.mxu1 }
 0x484   :  { %v1157_v3 = vsel %vm105_vm1, %v5466_v62, -inf }
 0x485   :  { %v1137_v31 = vpop.f32.mrf.mxu1 }
 0x486   :  { %v5473_v1 = vadd.f32 %v1137_v31, %v5356_v8 }
 0x487   :  { %v4218_v33 = vpop.f32.mrf.mxu1 }
 0x488   :  { %v1160_v8 = vsel %vm105_vm1, %v5473_v1, -inf }
 0x489   :  { %v1142_v36 = vpop.f32.mrf.mxu1 }
 0x48a   :  { %v5476_v4 = vadd.f32 %v1142_v36, %v5366_v12 }
 0x48b   :  { %v4221_v37 = vpop.f32.mrf.mxu1 }
 0x48c   :  { %v1163_v12 = vsel %vm105_vm1, %v5476_v4, -inf }
 0x48d   :  { %v1145_v39 = vpop.f32.mrf.mxu1 }
 0x48e   :  { %v5483_v6 = vadd.f32 %v1145_v39, %v5376_v21 }
 0x48f   :  { %v4222_v41 = vpop.f32.mrf.mxu1 }
 0x490   :  { %v1166_v13 = vsel %vm105_vm1, %v5483_v6, -inf }
 0x491   :  { %v1150_v42 = vpop.f32.mrf.mxu1 }
 0x492   :  { %v5486_v9 = vadd.f32 %v1150_v42, %v5386_v28 }
 0x493   :  { %v4225_v44 = vpop.f32.mrf.mxu1 }
 0x494   :  { %v1169_v21 = vsel %vm105_vm1, %v5486_v9, -inf }
 0x495   :  { %v1153_v48 = vpop.f32.mrf.mxu1 }
 0x496   :  { %v5493_v11 = vadd.f32 %v1153_v48, %v5396_v34 }
 0x497   :  { %v4226_v50 = vpop.f32.mrf.mxu1 }
 0x498   :  { %v1172_v28 = vsel %vm105_vm1, %v5493_v11, -inf }
 0x49a   :  { %711 = vmax.xlane.f32.xlu0 %v710_v53  ;;  %927 = vmax.xlane.f32.xlu1 %v926_v55 }
 0x49e   :  { %930 = vmax.xlane.f32.xlu0 %v929_v60  ;;  %933 = vmax.xlane.f32.xlu1 %v932_v61 }
 0x4a2   :  { %936 = vmax.xlane.f32.xlu0 %v935_v63  ;;  %939 = vmax.xlane.f32.xlu1 %v938_v2 }
 0x4a6   :  { %942 = vmax.xlane.f32.xlu0 %v941_v7  ;;  %1158 = vmax.xlane.f32.xlu1 %v1157_v3 }
 0x4aa   :  { %1161 = vmax.xlane.f32.xlu0 %v1160_v8  ;;  %1164 = vmax.xlane.f32.xlu1 %v1163_v12 }
 0x4ae   :  { %1167 = vmax.xlane.f32.xlu0 %v1166_v13  ;;  %1170 = vmax.xlane.f32.xlu1 %v1169_v21 }
 0x4b2   :  { %1173 = vmax.xlane.f32.xlu0 %v1172_v28 }
 0x4c6   :  { %v466_v22 = vpop.xlane.xlu1 %465 }
 0x4c7   :  { %v482_v34 = vsub.f32 %v5351_v5, %v466_v22 }
 0x4c9   :  { %v488_v23 = vmul.f32 1.442695, %v482_v34 }
 0x4ca   :  { %v469_v27 = vpop.xlane.xlu0 %468 }
 0x4cb   :  { %4680 = vpow2.f32 %v488_v23  ;;  %v483_v29 = vsub.f32 %v5361_v10, %v469_v27 }
 0x4cd   :  { %v490_v31 = vmul.f32 1.442695, %v483_v29 }
 0x4ce   :  { %v472_v33 = vpop.xlane.xlu0 %471 }
 0x4cf   :  { %4682 = vpow2.f32 %v490_v31  ;;  %v484_v36 = vsub.f32 %v5371_v17, %v472_v33 }
 0x4d1   :  { %v492_v37 = vmul.f32 1.442695, %v484_v36 }
 0x4d2   :  { %v475_v39 = vpop.xlane.xlu0 %474 }
 0x4d3   :  { %4684 = vpow2.f32 %v492_v37  ;;  %v485_v41 = vsub.f32 %v5381_v24, %v475_v39 }
 0x4d5   :  { %v494_v42 = vmul.f32 1.442695, %v485_v41 }
 0x4d6   :  { %v478_v44 = vpop.xlane.xlu1 %477 }
 0x4d7   :  { %4686 = vpow2.f32 %v494_v42  ;;  %v486_v5 = vsub.f32 %v5391_v32, %v478_v44 }
 0x4d8   :  { %v5510_v48 = vpop.eup %4680 }
 0x4d9   :  { %v496_v50 = vmul.f32 1.442695, %v486_v5  ;;  %v500_v10 = vsel %vm105_vm1, %v5510_v48, 0.0 }
 0x4da   :  { %v481_v53 = vpop.xlane.xlu0 %480  ;;  %501 = vadd.xlane.f32.xlu1 %v500_v10 }
 0x4db   :  { %4688 = vpow2.f32 %v496_v50  ;;  %v487_v17 = vsub.f32 %v5401_v38, %v481_v53 }
 0x4dc   :  { %v5515_v55 = vpop.eup %4682 }
 0x4dd   :  { %v498_v60 = vmul.f32 1.442695, %v487_v17  ;;  %v503_v24 = vsel %vm105_vm1, %v5515_v55, 0.0 }
 0x4de   :  { %504 = vadd.xlane.f32.xlu0 %v503_v24  ;;  %v697_v61 = vpop.xlane.xlu1 %696 }
 0x4df   :  { %4690 = vpow2.f32 %v498_v60  ;;  %v713_v32 = vsub.f32 %v5406_v43, %v697_v61 }
 0x4e0   :  { %v5520_v63 = vpop.eup %4684 }
 0x4e1   :  { %v719_v2 = vmul.f32 1.442695, %v713_v32  ;;  %v506_v7 = vsel %vm105_vm1, %v5520_v63, 0.0 }
 0x4e2   :  { %507 = vadd.xlane.f32.xlu1 %v506_v7  ;;  %v700_v22 = vpop.xlane.xlu0 %699 }
 0x4e3   :  { %4692 = vpow2.f32 %v719_v2  ;;  %v714_v34 = vsub.f32 %v5411_v47, %v700_v22 }
 0x4e4   :  { %v5524_v38 = vpop.eup %4686 }
 0x4e5   :  { %v509_v3 = vsel %vm105_vm1, %v5524_v38, 0.0  ;;  %v721_v27 = vmul.f32 1.442695, %v714_v34 }
 0x4e6   :  { %510 = vadd.xlane.f32.xlu0 %v509_v3  ;;  %v703_v23 = vpop.xlane.xlu1 %702 }
 0x4e7   :  { %v715_v29 = vsub.f32 %v5416_v52, %v703_v23  ;;  %4694 = vpow2.f32 %v721_v27 }
 0x4e8   :  { %v5528_v8 = vpop.eup %4688 }
 0x4e9   :  { %v512_v12 = vsel %vm105_vm1, %v5528_v8, 0.0  ;;  %v723_v33 = vmul.f32 1.442695, %v715_v29 }
 0x4ea   :  { %513 = vadd.xlane.f32.xlu1 %v512_v12  ;;  %v706_v31 = vpop.xlane.xlu0 %705 }
 0x4eb   :  { %v716_v36 = vsub.f32 %v5421_v56, %v706_v31  ;;  %4696 = vpow2.f32 %v723_v33 }
 0x4ec   :  { %v5532_v43 = vpop.eup %4690 }
 0x4ed   :  { %v515_v13 = vsel %vm105_vm1, %v5532_v43, 0.0  ;;  %v725_v39 = vmul.f32 1.442695, %v716_v36 }
 0x4ee   :  { %516 = vadd.xlane.f32.xlu0 %v515_v13  ;;  %v709_v37 = vpop.xlane.xlu1 %708  ;;  %v5548_v42 = vpop.permute.xlu0 %999 }
 0x4ef   :  { %v717_v41 = vsub.f32 %v5426_v54, %v709_v37  ;;  %4698 = vpow2.f32 %v725_v39 }
 0x4f0   :  { %v5536_v21 = vpop.eup %4692 }
 0x4f1   :  { %v731_v28 = vsel %vm105_vm1, %v5536_v21, 0.0 }
 0x4f2   :  { %732 = vadd.xlane.f32.xlu1 %v731_v28  ;;  %v5552_v44 = vpop.permute.xlu0 %997  ;;  %v5554_v52 = vpop.permute.xlu1 %764 }
 0x4f4   :  { %v5550_v47 = vpop.eup %4694 }
 0x4f5   :  { %v734_v5 = vsel %vm105_vm1, %v5550_v47, 0.0 }
 0x4f8   :  { %v5558_v56 = vpop.eup %4696 }
 0x4f9   :  { %v737_v24 = vsel %vm105_vm1, %v5558_v56, 0.0 }
 0x4fc   :  { %v5564_v61 = vpop.eup %4698 }
 0x503   :  { %995 = vrot.lane.b32.xlu1 %v5225_v19, %s6765_s29  ;;  %s6771_s29 = smov 16  }
 0x504   :  { %1230 = vrot.lane.b32.xlu0 %v5229_v26, %s6763_s30  ;;  %v727_v26 = vmul.f32 1.442695, %v717_v41 }
 0x506   :  { %4700 = vpow2.f32 %v727_v26 }
 0x513   :  { %v5570_v13 = vpop.eup %4700 }
 0x523   :  { %v712_v50 = vpop.xlane.xlu0 %711  ;;  %735 = vadd.xlane.f32.xlu0 %v734_v5  ;;  %v928_v10 = vpop.xlane.xlu1 %927 }
 0x524   :  { %v718_v54 = vsub.f32 %v5437_v45, %v712_v50  ;;  %v944_v53 = vsub.f32 %v5440_v46, %v928_v10  ;;  %v740_v46 = vsel %vm105_vm1, %v5564_v61, 0.0 }
 0x526   :  { %v729_v17 = vmul.f32 1.442695, %v718_v54  ;;  %v950_v60 = vmul.f32 1.442695, %v944_v53 }
 0x527   :  { %v931_v32 = vpop.xlane.xlu0 %930  ;;  %738 = vadd.xlane.f32.xlu0 %v737_v24  ;;  %v934_v2 = vpop.xlane.xlu1 %933 }
 0x528   :  { %4702 = vpow2.f32 %v729_v17  ;;  %v945_v7 = vsub.f32 %v5443_v51, %v931_v32  ;;  %v946_v3 = vsub.f32 %v5446_v49, %v934_v2  ;;  %v743_v49 = vsel %vm105_vm1, %v5570_v13, 0.0 }
 0x529   :  { %4704 = vpow2.f32 %v950_v60 }
 0x52a   :  { %v952_v12 = vmul.f32 1.442695, %v945_v7  ;;  %v954_v45 = vmul.f32 1.442695, %v946_v3 }
 0x52b   :  { %v937_v28 = vpop.xlane.xlu0 %936  ;;  %741 = vadd.xlane.f32.xlu0 %v740_v46  ;;  %v940_v22 = vpop.xlane.xlu1 %939 }
 0x52c   :  { %4706 = vpow2.f32 %v952_v12  ;;  %v947_v34 = vsub.f32 %v5453_v57, %v937_v28  ;;  %v948_v23 = vsub.f32 %v5456_v58, %v940_v22 }
 0x52d   :  { %4708 = vpow2.f32 %v954_v45 }
 0x52e   :  { %v956_v51 = vmul.f32 1.442695, %v947_v34  ;;  %v958_v27 = vmul.f32 1.442695, %v948_v23 }
 0x52f   :  { %v943_v29 = vpop.xlane.xlu0 %942  ;;  %744 = vadd.xlane.f32.xlu0 %v743_v49  ;;  %v1159_v31 = vpop.xlane.xlu1 %1158 }
 0x530   :  { %4710 = vpow2.f32 %v956_v51  ;;  %v949_v33 = vsub.f32 %v5463_v59, %v943_v29  ;;  %v1175_v36 = vsub.f32 %v5466_v62, %v1159_v31 }
 0x531   :  { %4712 = vpow2.f32 %v958_v27 }
 0x532   :  { %v960_v37 = vmul.f32 1.442695, %v949_v33  ;;  %v1181_v39 = vmul.f32 1.442695, %v1175_v36 }
 0x533   :  { %v1162_v57 = vpop.xlane.xlu0 %1161  ;;  %v1165_v41 = vpop.xlane.xlu1 %1164 }
 0x534   :  { %v1176_v58 = vsub.f32 %v5473_v1, %v1162_v57  ;;  %v1177_v26 = vsub.f32 %v5476_v4, %v1165_v41  ;;  %4714 = vpow2.f32 %v1181_v39 }
 0x535   :  { %v5580_v5 = vpop.eup %4702  ;;  %4716 = vpow2.f32 %v960_v37 }
 0x536   :  { %v5582_v50 = vpop.eup %4704  ;;  %v1183_v10 = vmul.f32 1.442695, %v1176_v58  ;;  %v1185_v54 = vmul.f32 1.442695, %v1177_v26  ;;  %v746_v59 = vsel %vm105_vm1, %v5580_v5, 0.0 }
 0x537   :  { %v1168_v62 = vpop.xlane.xlu0 %1167  ;;  %747 = vadd.xlane.f32.xlu0 %v746_v59  ;;  %v962_v53 = vsel %vm105_vm1, %v5582_v50, 0.0  ;;  %v1171_v17 = vpop.xlane.xlu1 %1170 }
 0x538   :  { %v1178_v1 = vsub.f32 %v5483_v6, %v1168_v62  ;;  %963 = vadd.xlane.f32.xlu1 %v962_v53  ;;  %4718 = vpow2.f32 %v1185_v54  ;;  %v1179_v60 = vsub.f32 %v5486_v9, %v1171_v17 }
 0x539   :  { %v5589_v4 = vpop.eup %4706  ;;  %4720 = vpow2.f32 %v1183_v10 }
 0x53a   :  { %v1187_v24 = vmul.f32 1.442695, %v1178_v1  ;;  %v965_v32 = vsel %vm105_vm1, %v5589_v4, 0.0  ;;  %v5594_v2 = vpop.eup %4708  ;;  %v1189_v12 = vmul.f32 1.442695, %v1179_v60 }
 0x53b   :  { %v1174_v7 = vpop.xlane.xlu0 %1173  ;;  %966 = vadd.xlane.f32.xlu0 %v965_v32  ;;  %v968_v9 = vsel %vm105_vm1, %v5594_v2, 0.0 }
 0x53c   :  { %4722 = vpow2.f32 %v1187_v24  ;;  %v1180_v6 = vsub.f32 %v5493_v11, %v1174_v7 }
 0x53d   :  { %v5596_v3 = vpop.eup %4710  ;;  %4724 = vpow2.f32 %v1189_v12 }
 0x53e   :  { %v971_v45 = vsel %vm105_vm1, %v5596_v3, 0.0  ;;  %v5603_v46 = vpop.eup %4712  ;;  %v1191_v22 = vmul.f32 1.442695, %v1180_v6 }
 0x53f   :  { %972 = vadd.xlane.f32.xlu1 %v971_v45  ;;  %969 = vadd.xlane.f32.xlu0 %v968_v9  ;;  %v974_v34 = vsel %vm105_vm1, %v5603_v46, 0.0 }
 0x540   :  { %4726 = vpow2.f32 %v1191_v22 }
 0x541   :  { %v5605_v28 = vpop.eup %4714 }
 0x542   :  { %v5609_v23 = vpop.eup %4716  ;;  %v1193_v11 = vsel %vm105_vm1, %v5605_v28, 0.0 }
 0x543   :  { %975 = vadd.xlane.f32.xlu0 %v974_v34  ;;  %1194 = vadd.xlane.f32.xlu1 %v1193_v11  ;;  %v977_v27 = vsel %vm105_vm1, %v5609_v23, 0.0 }
 0x545   :  { %v5613_v51 = vpop.eup %4718 }
 0x546   :  { %v5617_v49 = vpop.eup %4720  ;;  %v1199_v29 = vsel %vm105_vm1, %v5613_v51, 0.0 }
 0x547   :  { %978 = vadd.xlane.f32.xlu0 %v977_v27  ;;  %1200 = vadd.xlane.f32.xlu1 %v1199_v29  ;;  %v1196_v31 = vsel %vm105_vm1, %v5617_v49, 0.0 }
 0x549   :  { %v5623_v33 = vpop.eup %4722 }
 0x54a   :  { %v1202_v36 = vsel %vm105_vm1, %v5623_v33, 0.0  ;;  %v5627_v37 = vpop.eup %4724 }
 0x54b   :  { %1197 = vadd.xlane.f32.xlu0 %v1196_v31  ;;  %v1205_v39 = vsel %vm105_vm1, %v5627_v37, 0.0 }
 0x54d   :  { %v5631_v57 = vpop.eup %4726 }
 0x54e   :  { %v1208_v41 = vsel %vm105_vm1, %v5631_v57, 0.0 }
 0x54f   :  { %1203 = vadd.xlane.f32.xlu0 %v1202_v36 }
 0x553   :  { %1206 = vadd.xlane.f32.xlu0 %v1205_v39 }
 0x557   :  { %1209 = vadd.xlane.f32.xlu0 %v1208_v41 }
 0x558   :  { %1228 = vrot.lane.b32.xlu1 %v5221_v14, %s6763_s30 }
 0x563   :  { %v502_v58 = vpop.xlane.xlu1 %501 }
 0x564   :  { %4728 = vrcp.f32 %v502_v58 }
 0x567   :  { %v505_v26 = vpop.xlane.xlu0 %504 }
 0x568   :  { %4730 = vrcp.f32 %v505_v26 }
 0x56b   :  { %v508_v10 = vpop.xlane.xlu1 %507 }
 0x56c   :  { %4732 = vrcp.f32 %v508_v10 }
 0x56d   :  { %1226 = vrot.lane.b32.xlu0 %v5225_v19, %s6763_s30 }
 0x56f   :  { %v511_v54 = vpop.xlane.xlu0 %510 }
 0x570   :  { %4734 = vrcp.f32 %v511_v54 }
 0x571   :  { %v4729_v59 = vpop.eup %4728 }
 0x572   :  { %v524_v17 = vmul.f32 %v4729_v59, %v5510_v48 }
 0x573   :  { %v514_v62 = vpop.xlane.xlu1 %513 }
 0x574   :  { %4736 = vrcp.f32 %v514_v62 }
 0x575   :  { %v4731_v53 = vpop.eup %4730 }
 0x576   :  { %v525_v1 = vmul.f32 %v4731_v53, %v5515_v55 }
 0x577   :  { %v517_v14 = vpop.xlane.xlu0 %516 }
 0x578   :  { %4738 = vrcp.f32 %v517_v14  ;;  %v530_v60 = vpack.c.bf16 %v525_v1, %v524_v17 }
 0x579   :  { %v4733_v24 = vpop.eup %4732 }
 0x57a   :  { %4126 = vmatmul.mubr.msk.bf16.vlgmr.msra.gmra.mxu0 %vm105_vm1, %v530_v60  ;;  %v526_v55 = vmul.f32 %v4733_v24, %v5520_v63 }
 0x57b   :  { %4156 = vmatpush3.bf16.msra.mxu0 %v5501_v16  ;;  %v5643_v19 = vpop.permute.xlu0 %1230  ;;  %4129 = vmatprep.mubr.msk.bf16.mxu0 %vm4951_vm0, %v4950_v0 }
 0x57c   :  { %4528 = vmatpush3.bf16.msra.mxu1 %v5643_v19  ;;  %4157 = vmatprep.subr.bf16.mxu0 %v4950_v0 }
 0x57d   :  { %v4735_v48 = vpop.eup %4734  ;;  %4526 = vmatprep.subr.bf16.mxu1 %v4950_v0 }
 0x57e   :  { %v527_v32 = vmul.f32 %v4735_v48, %v5524_v38 }
 0x57f   :  { %4158 = vmatpush3.bf16.msra.mxu0 %v5503_v18  ;;  %v733_v18 = vpop.xlane.xlu1 %732 }
 0x580   :  { %4159 = vmatprep.subr.bf16.mxu0 %v4950_v0  ;;  %v531_v16 = vpack.c.bf16 %v527_v32, %v526_v55  ;;  %4740 = vrcp.f32 %v733_v18 }
 0x581   :  { %v4737_v7 = vpop.eup %4736 }
 0x582   :  { %4130 = vmatmul.mubr.msk.bf16.gmra.mxu0 %vm105_vm1, %v531_v16  ;;  %v528_v63 = vmul.f32 %v4737_v7, %v5528_v8 }
 0x583   :  { %4160 = vmatpush3.bf16.msra.mxu0 %v5554_v52  ;;  %4133 = vmatprep.mubr.msk.bf16.mxu0 %vm4951_vm0, %v4950_v0  ;;  %v996_v31 = vpop.permute.xlu1 %995 }
 0x584   :  { %4191 = vmatprep.subr.bf16.mxu0 %v4950_v0 }
 0x585   :  { %v4739_v12 = vpop.eup %4738 }
 0x586   :  { %v529_v38 = vmul.f32 %v4739_v12, %v5532_v43 }
 0x588   :  { %v532_v6 = vpack.c.bf16 %v529_v38, %v528_v63 }
 0x58a   :  { %4134 = vmatmul.mubr.msk.bf16.gmra.mxu0 %vm105_vm1, %v532_v6 }
 0x58b   :  { %4161 = vmatprep.mubr.msk.bf16.mxu0 %vm4951_vm0, %v4950_v0 }
 0x58d   :  { %v4741_v22 = vpop.eup %4740 }
 0x58e   :  { %v755_v8 = vmul.f32 %v4741_v22, %v5536_v21 }
 0x5ac   :  { %v736_v45 = vpop.xlane.xlu0 %735 }
 0x5ad   :  { %4742 = vrcp.f32 %v736_v45 }
 0x5b0   :  { %v739_v52 = vpop.xlane.xlu0 %738 }
 0x5b1   :  { %4744 = vrcp.f32 %v739_v52 }
 0x5b4   :  { %v742_v9 = vpop.xlane.xlu0 %741 }
 0x5b5   :  { %4746 = vrcp.f32 %v742_v9 }
 0x5b8   :  { %v745_v11 = vpop.xlane.xlu0 %744 }
 0x5b9   :  { %4748 = vrcp.f32 %v745_v11 }
 0x5ba   :  { %v4743_v34 = vpop.eup %4742 }
 0x5bb   :  { %v756_v43 = vmul.f32 %v4743_v34, %v5550_v47 }
 0x5bd   :  { %v761_v27 = vpack.c.bf16 %v756_v43, %v755_v8 }
 0x5be   :  { %v4745_v29 = vpop.eup %4744 }
 0x5bf   :  { %4162 = vmatmul.mubr.msk.bf16.vlgmr.msra.gmra.mxu0 %vm105_vm1, %v761_v27  ;;  %v757_v21 = vmul.f32 %v4745_v29, %v5558_v56 }
 0x5c0   :  { %4192 = vmatpush3.bf16.msra.mxu0 %v5548_v42  ;;  %v748_v36 = vpop.xlane.xlu0 %747  ;;  %4165 = vmatprep.mubr.msk.bf16.mxu0 %vm4951_vm0, %v4950_v0 }
 0x5c1   :  { %4750 = vrcp.f32 %v748_v36  ;;  %4193 = vmatprep.subr.bf16.mxu0 %v4950_v0  ;;  %v964_v41 = vpop.xlane.xlu1 %963 }
 0x5c2   :  { %v4747_v39 = vpop.eup %4746 }
 0x5c3   :  { %v758_v47 = vmul.f32 %v4747_v39, %v5564_v61 }
 0x5c4   :  { %4194 = vmatpush3.bf16.msra.mxu0 %v5552_v44  ;;  %v967_v58 = vpop.xlane.xlu0 %966 }
 0x5c5   :  { %4752 = vrcp.f32 %v967_v58  ;;  %4195 = vmatprep.subr.bf16.mxu0 %v4950_v0  ;;  %v762_v42 = vpack.c.bf16 %v758_v47, %v757_v21 }
 0x5c6   :  { %4754 = vrcp.f32 %v964_v41  ;;  %v4749_v56 = vpop.eup %4748 }
 0x5c7   :  { %4166 = vmatmul.mubr.msk.bf16.gmra.mxu0 %vm105_vm1, %v762_v42  ;;  %v759_v59 = vmul.f32 %v4749_v56, %v5570_v13 }
 0x5c8   :  { %4196 = vmatpush3.bf16.msra.mxu0 %v996_v31  ;;  %v970_v26 = vpop.xlane.xlu0 %969  ;;  %v973_v10 = vpop.xlane.xlu1 %972  ;;  %4169 = vmatprep.mubr.msk.bf16.mxu0 %vm4951_vm0, %v4950_v0 }
 0x5c9   :  { %4227 = vmatprep.subr.bf16.mxu0 %v4950_v0  ;;  %4756 = vrcp.f32 %v970_v26 }
 0x5ca   :  { %4758 = vrcp.f32 %v973_v10 }
 0x5cc   :  { %v976_v61 = vpop.xlane.xlu0 %975  ;;  %v1195_v44 = vpop.xlane.xlu1 %1194 }
 0x5ce   :  { %v4751_v54 = vpop.eup %4750 }
 0x5cf   :  { %v760_v62 = vmul.f32 %v4751_v54, %v5580_v5 }
 0x5d0   :  { %v979_v53 = vpop.xlane.xlu0 %978  ;;  %v1201_v17 = vpop.xlane.xlu1 %1200 }
 0x5d1   :  { %v763_v1 = vpack.c.bf16 %v760_v62, %v759_v59  ;;  %4760 = vrcp.f32 %v979_v53 }
 0x5d2   :  { %v4753_v14 = vpop.eup %4752  ;;  %4762 = vrcp.f32 %v976_v61 }
 0x5d3   :  { %4170 = vmatmul.mubr.msk.bf16.gmra.mxu0 %vm105_vm1, %v763_v1  ;;  %v4755_v60 = vpop.eup %4754  ;;  %v987_v48 = vmul.f32 %v4753_v14, %v5589_v4  ;;  %4764 = vrcp.f32 %v1201_v17 }
 0x5d4   :  { %v1198_v24 = vpop.xlane.xlu0 %1197  ;;  %4197 = vmatprep.mubr.msk.bf16.mxu0 %vm4951_vm0, %v4950_v0  ;;  %v1229_v55 = vpop.permute.xlu1 %1228  ;;  %v986_v13 = vmul.f32 %v4755_v60, %v5582_v50 }
 0x5d5   :  { %4529 = vmatpush3.bf16.msra.mxu1 %v1229_v55 }
 0x5d6   :  { %4527 = vmatprep.subr.bf16.mxu1 %v4950_v0  ;;  %v4757_v32 = vpop.eup %4756  ;;  %v992_v16 = vpack.c.bf16 %v987_v48, %v986_v13  ;;  %v4642_v13 = vld [vmem:[%s6745_s8 + $0x8] sm:$0xff]  }
 0x5d7   :  { %v4759_v7 = vpop.eup %4758  ;;  %v988_v50 = vmul.f32 %v4757_v32, %v5594_v2 }
 0x5d8   :  { %v1204_v5 = vpop.xlane.xlu0 %1203  ;;  %v989_v4 = vmul.f32 %v4759_v7, %v5596_v3 }
 0x5d9   :  { %4766 = vrcp.f32 %v1204_v5 }
 0x5da   :  { %4768 = vrcp.f32 %v1198_v24  ;;  %v993_v38 = vpack.c.bf16 %v989_v4, %v988_v50 }
 0x5db   :  { %4198 = vmatmul.mubr.msk.bf16.vlgmr.msra.gmra.mxu0 %vm105_vm1, %v992_v16  ;;  %4770 = vrcp.f32 %v1195_v44 }
 0x5dc   :  { %4228 = vmatpush3.bf16.msra.mxu0 %v5643_v19  ;;  %v1207_v12 = vpop.xlane.xlu0 %1206  ;;  %4201 = vmatprep.mubr.msk.bf16.mxu0 %vm4951_vm0, %v4950_v0 }
 0x5dd   :  { %4229 = vmatprep.subr.bf16.mxu0 %v4950_v0  ;;  %4772 = vrcp.f32 %v1207_v12 }
 0x5de   :  { %v4761_v19 = vpop.eup %4760 }
 0x5df   :  { %v4763_v6 = vpop.eup %4762  ;;  %v991_v2 = vmul.f32 %v4761_v19, %v5609_v23  ;;  %v4643_v19 = vld [vmem:[%s6745_s8] sm:$0xff]  }
 0x5e0   :  { %4230 = vmatpush3.bf16.msra.mxu0 %v1229_v55  ;;  %v1210_v63 = vpop.xlane.xlu0 %1209  ;;  %v4765_v18 = vpop.eup %4764  ;;  %v990_v22 = vmul.f32 %v4763_v6, %v5603_v46 }
 0x5e1   :  { %4774 = vrcp.f32 %v1210_v63  ;;  %4231 = vmatprep.subr.bf16.mxu0 %v4950_v0  ;;  %v1219_v52 = vmul.f32 %v4765_v18, %v5613_v51 }
 0x5e2   :  { %v994_v34 = vpack.c.bf16 %v991_v2, %v990_v22 }
 0x5e3   :  { %4202 = vmatmul.mubr.msk.bf16.gmra.mxu0 %vm105_vm1, %v993_v38 }
 0x5e4   :  { %v1227_v45 = vpop.permute.xlu0 %1226  ;;  %4205 = vmatprep.mubr.msk.bf16.mxu0 %vm4951_vm0, %v4950_v0 }
 0x5e5   :  { %4232 = vmatpush3.bf16.msra.mxu0 %v1227_v45  ;;  %4530 = vmatpush3.bf16.msra.mxu1 %v1227_v45 }
 0x5e6   :  { %v4767_v3 = vpop.eup %4766  ;;  %4245 = vmatprep.subr.bf16.mxu1 %v4950_v0  ;;  %4261 = vmatprep.subr.bf16.mxu0 %v4950_v0 }
 0x5e7   :  { %v1220_v9 = vmul.f32 %v4767_v3, %v5623_v33  ;;  %v4769_v43 = vpop.eup %4768 }
 0x5e8   :  { %v4771_v11 = vpop.eup %4770  ;;  %v1218_v51 = vmul.f32 %v4769_v43, %v5617_v49 }
 0x5e9   :  { %v1224_v8 = vpack.c.bf16 %v1220_v9, %v1219_v52  ;;  %v1217_v46 = vmul.f32 %v4771_v11, %v5605_v28 }
 0x5ea   :  { %v4773_v23 = vpop.eup %4772 }
 0x5eb   :  { %4206 = vmatmul.mubr.msk.bf16.gmra.mxu0 %vm105_vm1, %v994_v34  ;;  %4238 = vmatmul.mubr.msk.bf16.vlgmr.msra.gmra.mxu1 %vm105_vm1, %v1224_v8  ;;  %v1221_v27 = vmul.f32 %v4773_v23, %v5627_v37  ;;  %v1223_v31 = vpack.c.bf16 %v1218_v51, %v1217_v46 }
 0x5ec   :  { %4233 = vmatprep.mubr.msk.bf16.mxu0 %vm4951_vm0, %v4950_v0  ;;  %4241 = vmatprep.mubr.msk.bf16.mxu1 %vm4951_vm0, %v4950_v0 }
 0x5ed   :  { %4246 = vmatpush3.bf16.msra.mxu1 %v4642_v13 }
 0x5ee   :  { %v4775_v33 = vpop.eup %4774  ;;  %4247 = vmatprep.subr.bf16.mxu1 %v4950_v0 }
 0x5ef   :  { %v1222_v29 = vmul.f32 %v4775_v33, %v5631_v57 }
 0x5f1   :  { %v1225_v36 = vpack.c.bf16 %v1222_v29, %v1221_v27  ;;  %4248 = vmatpush3.bf16.msra.mxu1 %v4643_v19 }
 0x5f2   :  { %4277 = vmatprep.subr.bf16.mxu1 %v4950_v0 }
 0x5f3   :  { %4234 = vmatmul.mubr.msk.bf16.vlgmr.msra.gmra.mxu0 %vm105_vm1, %v1223_v31  ;;  %4242 = vmatmul.mubr.msk.bf16.gmra.mxu1 %vm105_vm1, %v1225_v36 }
 0x5f4   :  { %4249 = vmatprep.mubr.msk.bf16.mxu1 %vm4951_vm0, %v4950_v0  ;;  %4265 = vmatprep.mubr.msk.bf16.mxu0 %vm4951_vm0, %v4950_v0 }
 0x63a   :  { %v5720_v49 = vpop.f32.mrf.mxu0 }
 0x63c   :  { %v4127_v39 = vpop.f32.mrf.mxu0 }
 0x63e   :  { %v5722_v28 = vpop.f32.mrf.mxu0 }
 0x640   :  { %v4128_v37 = vpop.f32.mrf.mxu0 }
 0x642   :  { %v5724_v21 = vpop.f32.mrf.mxu0 }
 0x644   :  { %v4131_v57 = vpop.f32.mrf.mxu0 }
 0x646   :  { %v5726_v47 = vpop.f32.mrf.mxu0 }
 0x648   :  { %v4132_v41 = vpop.f32.mrf.mxu0 }
 0x64a   :  { %v5728_v58 = vpop.f32.mrf.mxu0 }
 0x64c   :  { %v4135_v42 = vpop.f32.mrf.mxu0 }
 0x64e   :  { %v5730_v26 = vpop.f32.mrf.mxu0 }
 0x650   :  { %v4136_v10 = vpop.f32.mrf.mxu0 }
 0x67f   :  { %v816_v56 = vpop.f32.mrf.mxu0 }
 0x681   :  { %v4163_v61 = vpop.f32.mrf.mxu0 }
 0x683   :  { %v819_v44 = vpop.f32.mrf.mxu0 }
 0x684   :  { %v4547_v54 = vpack.i.bf16 %v819_v44, %v816_v56 }
 0x685   :  { %v4164_v59 = vpop.f32.mrf.mxu0 }
 0x686   :  { %4548 = vrot.lane.b32.xlu0 %v4547_v54, %s6773_s1 }
 0x687   :  { %v824_v62 = vpop.f32.mrf.mxu0 }
 0x689   :  { %v4167_v53 = vpop.f32.mrf.mxu0 }
 0x68b   :  { %v827_v17 = vpop.f32.mrf.mxu0 }
 0x68c   :  { %v4562_v50 = vpack.i.bf16 %v827_v17, %v824_v62 }
 0x68d   :  { %v4168_v1 = vpop.f32.mrf.mxu0 }
 0x693   :  { %v832_v14 = vpop.f32.mrf.mxu0 }
 0x695   :  { %v4171_v60 = vpop.f32.mrf.mxu0 }
 0x697   :  { %v835_v24 = vpop.f32.mrf.mxu0 }
 0x698   :  { %v4577_v39 = vpack.i.bf16 %v835_v24, %v832_v14 }
 0x699   :  { %v4172_v48 = vpop.f32.mrf.mxu0 }
 0x69b   :  { %v1047_v55 = vpop.f32.mrf.mxu0 }
 0x69d   :  { %v4199_v5 = vpop.f32.mrf.mxu0 }
 0x69f   :  { %v1050_v32 = vpop.f32.mrf.mxu0 }
 0x6a0   :  { %v4552_v16 = vpack.i.bf16 %v1050_v32, %v1047_v55 }
 0x6a1   :  { %v4200_v7 = vpop.f32.mrf.mxu0 }
 0x6a2   :  { %4553 = vrot.lane.b32.xlu0 %v4552_v16, %s6771_s29 }
 0x6a3   :  { %v1055_v12 = vpop.f32.mrf.mxu0 }
 0x6a5   :  { %v4203_v4 = vpop.f32.mrf.mxu0 }
 0x6a6   :  { %4563 = vrot.lane.b32.xlu0 %v4562_v50, %s6773_s1 }
 0x6a7   :  { %v1058_v63 = vpop.f32.mrf.mxu0 }
 0x6a8   :  { %v4567_v36 = vpack.i.bf16 %v1058_v63, %v1055_v12 }
 0x6a9   :  { %v4204_v38 = vpop.f32.mrf.mxu0 }
 0x6ab   :  { %v1063_v6 = vpop.f32.mrf.mxu0  ;;  %v1286_v18 = vpop.f32.mrf.mxu1 }
 0x6ad   :  { %v4207_v45 = vpop.f32.mrf.mxu0  ;;  %v4239_v2 = vpop.f32.mrf.mxu1 }
 0x6af   :  { %v1066_v3 = vpop.f32.mrf.mxu0  ;;  %v1289_v52 = vpop.f32.mrf.mxu1 }
 0x6b0   :  { %v4572_v9 = vpack.i.bf16 %v1289_v52, %v1286_v18  ;;  %v4582_v11 = vpack.i.bf16 %v1066_v3, %v1063_v6 }
 0x6b1   :  { %v4208_v22 = vpop.f32.mrf.mxu0  ;;  %v4240_v34 = vpop.f32.mrf.mxu1 }
 0x6b2   :  { %4573 = vrot.lane.b32.xlu0 %v4572_v9, %s6769_s21 }
 0x6b3   :  { %v1278_v8 = vpop.f32.mrf.mxu0  ;;  %v1294_v43 = vpop.f32.mrf.mxu1 }
 0x6b5   :  { %v4235_v23 = vpop.f32.mrf.mxu0  ;;  %v4243_v51 = vpop.f32.mrf.mxu1 }
 0x6b6   :  { %4583 = vrot.lane.b32.xlu0 %v4582_v11, %s6771_s29 }
 0x6b7   :  { %v1281_v33 = vpop.f32.mrf.mxu0  ;;  %v1297_v46 = vpop.f32.mrf.mxu1 }
 0x6b8   :  { %v4557_v27 = vpack.i.bf16 %v1281_v33, %v1278_v8  ;;  %v4587_v37 = vpack.i.bf16 %v1297_v46, %v1294_v43  ;;  %v3797_v46 = vld [vmem:[%s6747_s10] ss:$0 sm:$0xff] }
 0x6b9   :  { %v4236_v29 = vpop.f32.mrf.mxu0  ;;  %v4244_v31 = vpop.f32.mrf.mxu1 }
 0x6ba   :  { %4558 = vrot.lane.b32.xlu1 %v4557_v27, %s6769_s21 }
 0x6be   :  { %4568 = vrot.lane.b32.xlu1 %v4567_v36, %s6771_s29 }
 0x6c2   :  { %4578 = vrot.lane.b32.xlu1 %v4577_v39, %s6773_s1 }
 0x6c6   :  { %4588 = vrot.lane.b32.xlu1 %v4587_v37, %s6769_s21 }
 0x6f8   :  { %v4549_v57 = vpop.permute.xlu0 %4548 }
 0x6f9   :  { %v4551_v42 = vunpack.i.h.bf16 %v4549_v57  ;;  %v4550_v10 = vunpack.i.l.bf16 %v4549_v57 }
 0x6fb   :  { %v1374_v59 = vsel %vm388_vm3, %v5722_v28, %v4551_v42  ;;  %v1373_v62 = vsel %vm388_vm3, %v5720_v49, %v4550_v10 }
 0x714   :  { %v4554_v41 = vpop.permute.xlu0 %4553 }
 0x715   :  { %v4556_v56 = vunpack.i.h.bf16 %v4554_v41  ;;  %v4555_v61 = vunpack.i.l.bf16 %v4554_v41 }
 0x717   :  { %v1381_v1 = vsel %vm1379_vm4, %v1374_v59, %v4556_v56  ;;  %v1380_v14 = vsel %vm1379_vm4, %v1373_v62, %v4555_v61 }
 0x718   :  { %v4564_v44 = vpop.permute.xlu0 %4563 }
 0x719   :  { %v4566_v60 = vunpack.i.h.bf16 %v4564_v44  ;;  %v4565_v24 = vunpack.i.l.bf16 %v4564_v44 }
 0x71b   :  { %v1376_v49 = vsel %vm388_vm3, %v5726_v47, %v4566_v60  ;;  %v1375_v7 = vsel %vm388_vm3, %v5724_v21, %v4565_v24 }
 0x724   :  { %v4574_v13 = vpop.permute.xlu0 %4573 }
 0x725   :  { %v4576_v12 = vunpack.i.h.bf16 %v4574_v13  ;;  %v4575_v50 = vunpack.i.l.bf16 %v4574_v13 }
 0x728   :  { %v4584_v45 = vpop.permute.xlu0 %4583 }
 0x729   :  { %v4586_v34 = vunpack.i.h.bf16 %v4584_v45  ;;  %v4585_v8 = vunpack.i.l.bf16 %v4584_v45 }
 0x72c   :  { %v4559_v54 = vpop.permute.xlu1 %4558 }
 0x72d   :  { %v4561_v53 = vunpack.i.h.bf16 %v4559_v54  ;;  %v4560_v17 = vunpack.i.l.bf16 %v4559_v54 }
 0x72f   :  { %v1388_v48 = vsel %vm1386_vm5, %v1381_v1, %v4561_v53  ;;  %v1387_v55 = vsel %vm1386_vm5, %v1380_v14, %v4560_v17 }
 0x730   :  { %v1393_v5 = vpack.c.bf16 %v1388_v48, %v1387_v55  ;;  %v4569_v32 = vpop.permute.xlu1 %4568 }
 0x731   :  { %v4571_v16 = vunpack.i.h.bf16 %v4569_v32  ;;  %v4570_v28 = vunpack.i.l.bf16 %v4569_v32 }
 0x732   :  { %4250 = vmatmul.mubr.msk.bf16.vlgmr.msra.gmra.mxu1 %vm180_vm2, %v1393_v5 }
 0x733   :  { %v1383_v4 = vsel %vm1379_vm4, %v1376_v49, %v4571_v16  ;;  %v1382_v63 = vsel %vm1379_vm4, %v1375_v7, %v4570_v28  ;;  %4253 = vmatprep.mubr.msk.bf16.mxu1 %vm4951_vm0, %v4950_v0 }
 0x734   :  { %v4579_v38 = vpop.permute.xlu1 %4578  ;;  %v1389_v18 = vsel %vm1386_vm5, %v1382_v63, %v4575_v50  ;;  %v1390_v47 = vsel %vm1386_vm5, %v1383_v4, %v4576_v12 }
 0x735   :  { %v4581_v19 = vunpack.i.h.bf16 %v4579_v38  ;;  %v4580_v6 = vunpack.i.l.bf16 %v4579_v38  ;;  %v1394_v2 = vpack.c.bf16 %v1390_v47, %v1389_v18 }
 0x737   :  { %v1378_v3 = vsel %vm388_vm3, %v5730_v26, %v4581_v19  ;;  %v1377_v52 = vsel %vm388_vm3, %v5728_v58, %v4580_v6  ;;  %v3791_v58 = vld [vmem:[%s6746_s9] ss:$0 sm:$0xff] }
 0x738   :  { %v4589_v21 = vpop.permute.xlu1 %4588  ;;  %v1384_v43 = vsel %vm1379_vm4, %v1377_v52, %v4585_v8  ;;  %v1385_v11 = vsel %vm1379_vm4, %v1378_v3, %v4586_v34 }
 0x739   :  { %v4591_v9 = vunpack.i.h.bf16 %v4589_v21  ;;  %v4590_v22 = vunpack.i.l.bf16 %v4589_v21 }
 0x73a   :  { %4254 = vmatmul.mubr.msk.bf16.gmra.mxu1 %vm180_vm2, %v1394_v2 }
 0x73b   :  { %4257 = vmatprep.mubr.msk.bf16.mxu1 %vm4951_vm0, %v4950_v0  ;;  %v1391_v23 = vsel %vm1386_vm5, %v1384_v43, %v4590_v22  ;;  %v1392_v26 = vsel %vm1386_vm5, %v1385_v11, %v4591_v9 }
 0x73c   :  { %v1395_v51 = vpack.c.bf16 %v1392_v26, %v1391_v23 }
 0x742   :  { %4258 = vmatmul.mubr.msk.bf16.gmra.mxu1 %vm180_vm2, %v1395_v51 }
 0x743   :  { %4293 = vmatprep.mubr.msk.bf16.mxu1 %vm4951_vm0, %v4950_v0 }
 0x7f2   :  { %v1462_v33 = vpop.f32.mrf.mxu1 }
 0x7f3   :  { %v1463_v27 = vadd.f32 %v3791_v58, %v1462_v33 }
 0x7f4   :  { %v4251_v29 = vpop.f32.mrf.mxu1 }
 0x7f5   :  { %v1492_v31 = vmul.f32 %v3797_v46, %v1463_v27 }
 0x7f6   :  { %v1465_v36 = vpop.f32.mrf.mxu1 }
 0x7f7   :  { %v5789_v39 = vadd.f32 %v1492_v31, %v5119_v15  ;;  %v1466_v37 = vadd.f32 %v3791_v58, %v1465_v36  ;;  %v4644_v31 = vld [vmem:[%s6748_s13 + $0x8] sm:$0xff]   ;;  %v4645_v36 = vld [vmem:[%s6748_s13] sm:$0xff]  }
 0x7f8   :  { %v4252_v57 = vpop.f32.mrf.mxu1  ;;  %4262 = vmatpush3.bf16.msra.mxu0 %v4644_v31  ;;  %v3800_v31 = vld [vmem:[%s6752_s14] ss:$0 sm:$0xff] }
 0x7f9   :  { %v1493_v41 = vmul.f32 %v3797_v46, %v1466_v37  ;;  %v1506_v42 = vsel %vm180_vm2, %v5789_v39, 0.0  ;;  %4263 = vmatprep.subr.bf16.mxu0 %v4950_v0 }
 0x7fa   :  { %1507 = vadd.xlane.f32.xlu0 %v1506_v42  ;;  %v1470_v10 = vpop.f32.mrf.mxu1 }
 0x7fb   :  { %v5794_v56 = vadd.f32 %v1493_v41, %v5126_v20  ;;  %v1471_v61 = vadd.f32 %v3791_v58, %v1470_v10 }
 0x7fc   :  { %v4255_v44 = vpop.f32.mrf.mxu1  ;;  %4264 = vmatpush3.bf16.msra.mxu0 %v4645_v36 }
 0x7fd   :  { %v1494_v54 = vmul.f32 %v3797_v46, %v1471_v61  ;;  %v1509_v59 = vsel %vm180_vm2, %v5794_v56, 0.0  ;;  %4305 = vmatprep.subr.bf16.mxu0 %v4950_v0 }
 0x7fe   :  { %1510 = vadd.xlane.f32.xlu1 %v1509_v59  ;;  %v1473_v15 = vpop.f32.mrf.mxu1 }
 0x7ff   :  { %v5799_v62 = vadd.f32 %v1494_v54, %v5133_v25  ;;  %v1474_v53 = vadd.f32 %v3791_v58, %v1473_v15 }
 0x800   :  { %v4256_v17 = vpop.f32.mrf.mxu1 }
 0x801   :  { %v1495_v1 = vmul.f32 %v3797_v46, %v1474_v53  ;;  %v1512_v14 = vsel %vm180_vm2, %v5799_v62, 0.0 }
 0x802   :  { %1513 = vadd.xlane.f32.xlu0 %v1512_v14  ;;  %v1478_v20 = vpop.f32.mrf.mxu1 }
 0x803   :  { %v5804_v60 = vadd.f32 %v1495_v1, %v5140_v30  ;;  %v1479_v24 = vadd.f32 %v3791_v58, %v1478_v20 }
 0x804   :  { %v4259_v48 = vpop.f32.mrf.mxu1 }
 0x805   :  { %v1496_v55 = vmul.f32 %v3797_v46, %v1479_v24  ;;  %v1515_v13 = vsel %vm180_vm2, %v5804_v60, 0.0 }
 0x806   :  { %1516 = vadd.xlane.f32.xlu0 %v1515_v13  ;;  %v1481_v25 = vpop.f32.mrf.mxu1  ;;  %v3798_v13 = vld [vmem:[%s6749_s11] ss:$0 sm:$0xff] }
 0x807   :  { %v5809_v5 = vadd.f32 %v1496_v55, %v5147_v35  ;;  %v1482_v32 = vadd.f32 %v3791_v58, %v1481_v25 }
 0x808   :  { %v4260_v16 = vpop.f32.mrf.mxu1 }
 0x809   :  { %v1497_v28 = vmul.f32 %v3797_v46, %v1482_v32  ;;  %v1518_v49 = vsel %vm180_vm2, %v5809_v5, 0.0 }
 0x80a   :  { %1519 = vadd.xlane.f32.xlu1 %v1518_v49 }
 0x80b   :  { %v5814_v30 = vadd.f32 %v1497_v28, %v5154_v40 }
 0x80d   :  { %v1521_v7 = vsel %vm180_vm2, %v5814_v30, 0.0 }
 0x80e   :  { %1522 = vadd.xlane.f32.xlu0 %v1521_v7  ;;  %v3799_v7 = vld [vmem:[%s6750_s12] ss:$0 sm:$0xff] }
 0x883   :  { %v1508_v12 = vpop.xlane.xlu0 %1507 }
 0x884   :  { %v1524_v50 = vmul.f32 0.03125, %v1508_v12 }
 0x886   :  { %v1530_v4 = vsub.f32 %v5789_v39, %v1524_v50 }
 0x887   :  { %v1511_v35 = vpop.xlane.xlu1 %1510 }
 0x888   :  { %v1525_v63 = vmul.f32 0.03125, %v1511_v35  ;;  %v1536_v38 = vmul.f32 %v1530_v4, %v1530_v4 }
 0x88a   :  { %v5820_v19 = vsub.f32 %v5794_v56, %v1525_v63  ;;  %v1542_v6 = vsel %vm180_vm2, %v1536_v38, 0.0 }
 0x88b   :  { %v1514_v18 = vpop.xlane.xlu0 %1513  ;;  %1543 = vadd.xlane.f32.xlu1 %v1542_v6 }
 0x88c   :  { %v1526_v40 = vmul.f32 0.03125, %v1514_v18  ;;  %v1537_v47 = vmul.f32 %v5820_v19, %v5820_v19 }
 0x88e   :  { %v5826_v45 = vsub.f32 %v5799_v62, %v1526_v40  ;;  %v1545_v21 = vsel %vm180_vm2, %v1537_v47, 0.0 }
 0x88f   :  { %v1517_v2 = vpop.xlane.xlu0 %1516  ;;  %1546 = vadd.xlane.f32.xlu0 %v1545_v21 }
 0x890   :  { %v1527_v3 = vmul.f32 0.03125, %v1517_v2  ;;  %v1538_v52 = vmul.f32 %v5826_v45, %v5826_v45 }
 0x892   :  { %v5832_v9 = vsub.f32 %v5804_v60, %v1527_v3  ;;  %v1548_v22 = vsel %vm180_vm2, %v1538_v52, 0.0 }
 0x893   :  { %1549 = vadd.xlane.f32.xlu1 %v1548_v22  ;;  %v1520_v34 = vpop.xlane.xlu1 %1519 }
 0x894   :  { %v1528_v8 = vmul.f32 0.03125, %v1520_v34  ;;  %v1539_v43 = vmul.f32 %v5832_v9, %v5832_v9 }
 0x896   :  { %v5838_v11 = vsub.f32 %v5809_v5, %v1528_v8  ;;  %v1551_v23 = vsel %vm180_vm2, %v1539_v43, 0.0 }
 0x897   :  { %1552 = vadd.xlane.f32.xlu0 %v1551_v23  ;;  %v1523_v26 = vpop.xlane.xlu0 %1522 }
 0x898   :  { %v1529_v51 = vmul.f32 0.03125, %v1523_v26  ;;  %v1540_v58 = vmul.f32 %v5838_v11, %v5838_v11  ;;  %v4647_v26 = vld [vmem:[%s6751_s15 + $0x30] sm:$0xff]  }
 0x89a   :  { %v5844_v33 = vsub.f32 %v5814_v30, %v1529_v51  ;;  %v1554_v46 = vsel %vm180_vm2, %v1540_v58, 0.0  ;;  %v4648_v51 = vld [vmem:[%s6751_s15 + $0x28] sm:$0xff]   ;;  %v4649_v58 = vld [vmem:[%s6751_s15 + $0x20] sm:$0xff]  }
 0x89b   :  { %1555 = vadd.xlane.f32.xlu1 %v1554_v46  ;;  %v4651_v46 = vld [vmem:[%s6751_s15 + $0x10] sm:$0xff]  }
 0x89c   :  { %v1541_v27 = vmul.f32 %v5844_v33, %v5844_v33 }
 0x89e   :  { %v1557_v29 = vsel %vm180_vm2, %v1541_v27, 0.0  ;;  %v4652_v27 = vld [vmem:[%s6751_s15 + $0x8] sm:$0xff]  }
 0x89f   :  { %1558 = vadd.xlane.f32.xlu0 %v1557_v29  ;;  %v4653_v29 = vld [vmem:[%s6751_s15] sm:$0xff]  }
 0x914   :  { %v1544_v37 = vpop.xlane.xlu1 %1543 }
 0x915   :  { %v1560_v57 = vmul.f32 0.03125, %v1544_v37 }
 0x917   :  { %v1566_v41 = vadd.f32 1e-06, %v1560_v57 }
 0x918   :  { %v1547_v42 = vpop.xlane.xlu0 %1546 }
 0x919   :  { %4776 = vrsqrt.f32 %v1566_v41  ;;  %v1561_v10 = vmul.f32 0.03125, %v1547_v42 }
 0x91b   :  { %v1567_v61 = vadd.f32 1e-06, %v1561_v10 }
 0x91c   :  { %v1550_v44 = vpop.xlane.xlu1 %1549 }
 0x91d   :  { %4778 = vrsqrt.f32 %v1567_v61  ;;  %v1562_v54 = vmul.f32 0.03125, %v1550_v44 }
 0x91f   :  { %v1568_v59 = vadd.f32 1e-06, %v1562_v54 }
 0x920   :  { %v1553_v15 = vpop.xlane.xlu0 %1552 }
 0x921   :  { %4780 = vrsqrt.f32 %v1568_v59  ;;  %v1563_v53 = vmul.f32 0.03125, %v1553_v15 }
 0x923   :  { %v1569_v17 = vadd.f32 1e-06, %v1563_v53 }
 0x924   :  { %v1556_v1 = vpop.xlane.xlu1 %1555 }
 0x925   :  { %4782 = vrsqrt.f32 %v1569_v17  ;;  %v1564_v14 = vmul.f32 0.03125, %v1556_v1 }
 0x926   :  { %v4777_v20 = vpop.eup %4776 }
 0x927   :  { %v1578_v24 = vmul.f32 %v4777_v20, %v1530_v4  ;;  %v1570_v48 = vadd.f32 1e-06, %v1564_v14 }
 0x928   :  { %v1559_v55 = vpop.xlane.xlu0 %1558 }
 0x929   :  { %4784 = vrsqrt.f32 %v1570_v48  ;;  %v1565_v25 = vmul.f32 0.03125, %v1559_v55  ;;  %v1590_v49 = vmul.f32 %v3798_v13, %v1578_v24 }
 0x92a   :  { %v4779_v32 = vpop.eup %4778 }
 0x92b   :  { %v1579_v16 = vmul.f32 %v4779_v32, %v5820_v19  ;;  %v1571_v28 = vadd.f32 1e-06, %v1565_v25  ;;  %v1602_v4 = vadd.f32 %v3799_v7, %v1590_v49 }
 0x92d   :  { %4786 = vrsqrt.f32 %v1571_v28  ;;  %v1591_v12 = vmul.f32 %v3798_v13, %v1579_v16 }
 0x92e   :  { %v4781_v50 = vpop.eup %4780 }
 0x92f   :  { %v1603_v35 = vadd.f32 %v3799_v7, %v1591_v12  ;;  %v1580_v63 = vmul.f32 %v4781_v50, %v5826_v45 }
 0x931   :  { %v1608_v38 = vpack.c.bf16 %v1603_v35, %v1602_v4  ;;  %v1592_v19 = vmul.f32 %v3798_v13, %v1580_v63 }
 0x932   :  { %v4783_v6 = vpop.eup %4782 }
 0x933   :  { %4266 = vmatmul.mubr.msk.bf16.vlgmr.msra.gmra.mxu0 %vm180_vm2, %v1608_v38  ;;  %v1581_v18 = vmul.f32 %v4783_v6, %v5832_v9  ;;  %v1604_v21 = vadd.f32 %v3799_v7, %v1592_v19 }
 0x934   :  { %4269 = vmatprep.mubr.msk.bf16.mxu0 %vm4951_vm0, %v4950_v0 }
 0x935   :  { %v1593_v40 = vmul.f32 %v3798_v13, %v1581_v18 }
 0x936   :  { %v4785_v47 = vpop.eup %4784 }
 0x937   :  { %v1605_v2 = vadd.f32 %v3799_v7, %v1593_v40  ;;  %v1582_v3 = vmul.f32 %v4785_v47, %v5838_v11  ;;  %v4646_v11 = vld [vmem:[%s6751_s15 + $0x38] sm:$0xff]  }
 0x938   :  { %4278 = vmatpush3.bf16.msra.mxu1 %v4646_v11 }
 0x939   :  { %v1609_v52 = vpack.c.bf16 %v1605_v2, %v1604_v21  ;;  %v1594_v34 = vmul.f32 %v3798_v13, %v1582_v3  ;;  %4279 = vmatprep.subr.bf16.mxu1 %v4950_v0 }
 0x93a   :  { %v4787_v22 = vpop.eup %4786 }
 0x93b   :  { %4270 = vmatmul.mubr.msk.bf16.gmra.mxu0 %vm180_vm2, %v1609_v52  ;;  %v1583_v45 = vmul.f32 %v4787_v22, %v5844_v33  ;;  %v1606_v8 = vadd.f32 %v3799_v7, %v1594_v34  ;;  %v4650_v33 = vld [vmem:[%s6751_s15 + $0x18] sm:$0xff]  }
 0x93c   :  { %4273 = vmatprep.mubr.msk.bf16.mxu0 %vm4951_vm0, %v4950_v0  ;;  %4280 = vmatpush3.bf16.msra.mxu1 %v4647_v26 }
 0x93d   :  { %v1595_v9 = vmul.f32 %v3798_v13, %v1583_v45  ;;  %4281 = vmatprep.subr.bf16.mxu1 %v4950_v0 }
 0x93f   :  { %v1607_v43 = vadd.f32 %v3799_v7, %v1595_v9 }
 0x940   :  { %4282 = vmatpush3.bf16.msra.mxu1 %v4648_v51 }
 0x941   :  { %v1610_v23 = vpack.c.bf16 %v1607_v43, %v1606_v8  ;;  %4283 = vmatprep.subr.bf16.mxu1 %v4950_v0 }
 0x943   :  { %4274 = vmatmul.mubr.msk.bf16.gmra.mxu0 %vm180_vm2, %v1610_v23 }
 0x944   :  { %4309 = vmatprep.mubr.msk.bf16.mxu0 %vm4951_vm0, %v4950_v0  ;;  %4284 = vmatpush3.bf16.msra.mxu1 %v4649_v58 }
 0x945   :  { %4285 = vmatprep.subr.bf16.mxu1 %v4950_v0 }
 0x948   :  { %4286 = vmatpush3.bf16.msra.mxu1 %v4650_v33 }
 0x949   :  { %4287 = vmatprep.subr.bf16.mxu1 %v4950_v0 }
 0x94c   :  { %4288 = vmatpush3.bf16.msra.mxu1 %v4651_v46 }
 0x94d   :  { %4289 = vmatprep.subr.bf16.mxu1 %v4950_v0 }
 0x950   :  { %4290 = vmatpush3.bf16.msra.mxu1 %v4652_v27 }
 0x951   :  { %4291 = vmatprep.subr.bf16.mxu1 %v4950_v0 }
 0x954   :  { %4292 = vmatpush3.bf16.msra.mxu1 %v4653_v29 }
 0x955   :  { %4339 = vmatprep.subr.bf16.mxu1 %v4950_v0 }
 0x9f3   :  { %v1677_v36 = vpop.f32.mrf.mxu0 }
 0x9f4   :  { %v1678_v37 = vadd.f32 %v3800_v31, %v1677_v36 }
 0x9f5   :  { %v4267_v57 = vpop.f32.mrf.mxu0 }
 0x9f6   :  { %v1706_v41 = vmul.f32 0.044715, %v1678_v37  ;;  %v1700_v51 = vmul.f32 0.5, %v1678_v37 }
 0x9f7   :  { %v1680_v42 = vpop.f32.mrf.mxu0 }
 0x9f8   :  { %v1712_v10 = vmul.f32 %v1706_v41, %v1678_v37  ;;  %v1681_v61 = vadd.f32 %v3800_v31, %v1680_v42 }
 0x9f9   :  { %v4268_v44 = vpop.f32.mrf.mxu0 }
 0x9fa   :  { %v1718_v54 = vmul.f32 %v1712_v10, %v1678_v37  ;;  %v1707_v59 = vmul.f32 0.044715, %v1681_v61  ;;  %v1701_v58 = vmul.f32 0.5, %v1681_v61 }
 0x9fb   :  { %v1685_v15 = vpop.f32.mrf.mxu0 }
 0x9fc   :  { %v1724_v53 = vadd.f32 %v1718_v54, %v1678_v37  ;;  %v1713_v17 = vmul.f32 %v1707_v59, %v1681_v61  ;;  %v1686_v1 = vadd.f32 %v3800_v31, %v1685_v15 }
 0x9fd   :  { %v4271_v14 = vpop.f32.mrf.mxu0 }
 0x9fe   :  { %v1730_v20 = vmul.f32 0.7978846, %v1724_v53  ;;  %v1719_v24 = vmul.f32 %v1713_v17, %v1681_v61  ;;  %v1708_v48 = vmul.f32 0.044715, %v1686_v1  ;;  %v1702_v42 = vmul.f32 0.5, %v1686_v1 }
 0x9ff   :  { %v1688_v55 = vpop.f32.mrf.mxu0 }
 0xa00   :  { %4788 = vtanh.f32 %v1730_v20  ;;  %v1725_v13 = vadd.f32 %v1719_v24, %v1681_v61  ;;  %v1714_v25 = vmul.f32 %v1708_v48, %v1686_v1  ;;  %v1689_v32 = vadd.f32 %v3800_v31, %v1688_v55 }
 0xa01   :  { %v4272_v16 = vpop.f32.mrf.mxu0 }
 0xa02   :  { %v1731_v28 = vmul.f32 0.7978846, %v1725_v13  ;;  %v1720_v49 = vmul.f32 %v1714_v25, %v1686_v1  ;;  %v1709_v7 = vmul.f32 0.044715, %v1689_v32  ;;  %v1703_v10 = vmul.f32 0.5, %v1689_v32 }
 0xa03   :  { %v1693_v12 = vpop.f32.mrf.mxu0  ;;  %v3815_v25 = vld [vmem:[%s6754_s17] ss:$0 sm:$0xff] }
 0xa04   :  { %4790 = vtanh.f32 %v1731_v28  ;;  %v1715_v50 = vmul.f32 %v1709_v7, %v1689_v32  ;;  %v1694_v4 = vadd.f32 %v3800_v31, %v1693_v12  ;;  %v1726_v35 = vadd.f32 %v1720_v49, %v1686_v1  ;;  %v3806_v1 = vld [vmem:[%s6753_s16] ss:$0 sm:$0xff] }
 0xa05   :  { %v4275_v63 = vpop.f32.mrf.mxu0 }
 0xa06   :  { %v1721_v38 = vmul.f32 %v1715_v50, %v1689_v32  ;;  %v1710_v6 = vmul.f32 0.044715, %v1694_v4  ;;  %v1732_v18 = vmul.f32 0.7978846, %v1726_v35  ;;  %v1704_v17 = vmul.f32 0.5, %v1694_v4 }
 0xa07   :  { %v1696_v19 = vpop.f32.mrf.mxu0 }
 0xa08   :  { %v1716_v40 = vmul.f32 %v1710_v6, %v1694_v4  ;;  %v1697_v47 = vadd.f32 %v3800_v31, %v1696_v19  ;;  %v1727_v21 = vadd.f32 %v1721_v38, %v1689_v32  ;;  %4792 = vtanh.f32 %v1732_v18 }
 0xa09   :  { %v4276_v2 = vpop.f32.mrf.mxu0 }
 0xa0a   :  { %v1722_v3 = vmul.f32 %v1716_v40, %v1694_v4  ;;  %v1711_v52 = vmul.f32 0.044715, %v1697_v47  ;;  %v1733_v22 = vmul.f32 0.7978846, %v1727_v21  ;;  %v1705_v14 = vmul.f32 0.5, %v1697_v47 }
 0xa0c   :  { %v1717_v45 = vmul.f32 %v1711_v52, %v1697_v47  ;;  %4794 = vtanh.f32 %v1733_v22  ;;  %v1728_v34 = vadd.f32 %v1722_v3, %v1694_v4 }
 0xa0d   :  { %v4789_v9 = vpop.eup %4788 }
 0xa0e   :  { %v1723_v8 = vmul.f32 %v1717_v45, %v1697_v47  ;;  %v1734_v43 = vmul.f32 0.7978846, %v1728_v34  ;;  %v1742_v23 = vadd.f32 1.0, %v4789_v9 }
 0xa10   :  { %v1729_v11 = vadd.f32 %v1723_v8, %v1697_v47  ;;  %4796 = vtanh.f32 %v1734_v43  ;;  %v1748_v27 = vmul.f32 %v1742_v23, %v1700_v51 }
 0xa11   :  { %v4791_v26 = vpop.eup %4790 }
 0xa12   :  { %v1743_v33 = vadd.f32 1.0, %v4791_v26  ;;  %v1735_v46 = vmul.f32 0.7978846, %v1729_v11 }
 0xa14   :  { %v1749_v29 = vmul.f32 %v1743_v33, %v1701_v58  ;;  %4798 = vtanh.f32 %v1735_v46 }
 0xa15   :  { %v4793_v31 = vpop.eup %4792 }
 0xa16   :  { %v1754_v36 = vpack.c.bf16 %v1749_v29, %v1748_v27  ;;  %v1744_v57 = vadd.f32 1.0, %v4793_v31 }
 0xa18   :  { %4294 = vmatmul.mubr.bf16.vlgmr.msra.gmra.mxu1 %v1754_v36  ;;  %v1750_v54 = vmul.f32 %v1744_v57, %v1702_v42 }
 0xa19   :  { %v4795_v41 = vpop.eup %4794  ;;  %4297 = vmatprep.mubr.msk.bf16.mxu1 %vm4951_vm0, %v4950_v0 }
 0xa1a   :  { %v1745_v44 = vadd.f32 1.0, %v4795_v41 }
 0xa1c   :  { %v1751_v59 = vmul.f32 %v1745_v44, %v1703_v10 }
 0xa1d   :  { %v4797_v37 = vpop.eup %4796 }
 0xa1e   :  { %v1755_v61 = vpack.c.bf16 %v1751_v59, %v1750_v54  ;;  %v1746_v15 = vadd.f32 1.0, %v4797_v37 }
 0xa20   :  { %4298 = vmatmul.mubr.bf16.gmra.mxu1 %v1755_v61  ;;  %v1752_v24 = vmul.f32 %v1746_v15, %v1704_v17 }
 0xa21   :  { %v4799_v53 = vpop.eup %4798  ;;  %4301 = vmatprep.mubr.msk.bf16.mxu1 %vm4951_vm0, %v4950_v0 }
 0xa22   :  { %v1747_v20 = vadd.f32 1.0, %v4799_v53 }
 0xa24   :  { %v1753_v48 = vmul.f32 %v1747_v20, %v1705_v14 }
 0xa26   :  { %v1756_v55 = vpack.c.bf16 %v1753_v48, %v1752_v24 }
 0xa28   :  { %4302 = vmatmul.mubr.bf16.gmra.mxu1 %v1756_v55 }
 0xa29   :  { %4345 = vmatprep.mubr.msk.bf16.mxu1 %vm4951_vm0, %v4950_v0 }
 0xad8   :  { %v1862_v13 = vpop.f32.mrf.mxu1 }
 0xad9   :  { %v1863_v32 = vadd.f32 %v3806_v1, %v1862_v13 }
 0xada   :  { %v4295_v16 = vpop.f32.mrf.mxu1 }
 0xadb   :  { %v1892_v28 = vmul.f32 %v3815_v25, %v1863_v32 }
 0xadc   :  { %v1865_v49 = vpop.f32.mrf.mxu1 }
 0xadd   :  { %v5926_v7 = vadd.f32 %v1892_v28, %v5789_v39  ;;  %v1866_v12 = vadd.f32 %v3806_v1, %v1865_v49  ;;  %v4654_v28 = vld [vmem:[%s6789_s25 + $0x18] sm:$0xff]   ;;  %v4655_v49 = vld [vmem:[%s6789_s25 + $0x10] sm:$0xff]  }
 0xade   :  { %v4296_v50 = vpop.f32.mrf.mxu1  ;;  %4306 = vmatpush3.bf16.msra.mxu0 %v4654_v28 }
 0xadf   :  { %v1893_v4 = vmul.f32 %v3815_v25, %v1866_v12  ;;  %v1908_v35 = vsel %vm180_vm2, %v5926_v7, 0.0  ;;  %4307 = vmatprep.subr.bf16.mxu0 %v4950_v0 }
 0xae0   :  { %1909 = vadd.xlane.f32.xlu1 %v1908_v35  ;;  %v1870_v63 = vpop.f32.mrf.mxu1 }
 0xae1   :  { %v5931_v38 = vadd.f32 %v1893_v4, %v5794_v56  ;;  %v1871_v6 = vadd.f32 %v3806_v1, %v1870_v63 }
 0xae2   :  { %v4299_v18 = vpop.f32.mrf.mxu1  ;;  %4308 = vmatpush3.bf16.msra.mxu0 %v4655_v49 }
 0xae3   :  { %v1894_v19 = vmul.f32 %v3815_v25, %v1871_v6  ;;  %v1911_v40 = vsel %vm180_vm2, %v5931_v38, 0.0  ;;  %4321 = vmatprep.subr.bf16.mxu0 %v4950_v0 }
 0xae4   :  { %1912 = vadd.xlane.f32.xlu0 %v1911_v40  ;;  %v1873_v39 = vpop.f32.mrf.mxu1 }
 0xae5   :  { %v5936_v47 = vadd.f32 %v1894_v19, %v5799_v62  ;;  %v1874_v21 = vadd.f32 %v3806_v1, %v1873_v39 }
 0xae6   :  { %v4300_v2 = vpop.f32.mrf.mxu1 }
 0xae7   :  { %v1895_v3 = vmul.f32 %v3815_v25, %v1874_v21  ;;  %v1914_v52 = vsel %vm180_vm2, %v5936_v47, 0.0 }
 0xae8   :  { %1915 = vadd.xlane.f32.xlu1 %v1914_v52  ;;  %v1878_v56 = vpop.f32.mrf.mxu1 }
 0xae9   :  { %v5941_v22 = vadd.f32 %v1895_v3, %v5804_v60  ;;  %v1879_v45 = vadd.f32 %v3806_v1, %v1878_v56 }
 0xaea   :  { %v4303_v34 = vpop.f32.mrf.mxu1 }
 0xaeb   :  { %v1896_v9 = vmul.f32 %v3815_v25, %v1879_v45  ;;  %v1917_v8 = vsel %vm180_vm2, %v5941_v22, 0.0  ;;  %v3818_v45 = vld [vmem:[%s6790_s28 + $0x1] ss:$0 sm:$0xff]  ;;  %s6796_s28 = smov 40  }
 0xaec   :  { %1918 = vadd.xlane.f32.xlu0 %v1917_v8  ;;  %v1881_v62 = vpop.f32.mrf.mxu1  ;;  %v3819_v8 = vld [vmem:[%s6742_s5 + $0x1] ss:$0 sm:$0xff] }
 0xaed   :  { %v5946_v43 = vadd.f32 %v1896_v9, %v5809_v5  ;;  %v1882_v23 = vadd.f32 %v3806_v1, %v1881_v62 }
 0xaee   :  { %v4304_v11 = vpop.f32.mrf.mxu1 }
 0xaef   :  { %v1897_v26 = vmul.f32 %v3815_v25, %v1882_v23  ;;  %v1920_v51 = vsel %vm180_vm2, %v5946_v43, 0.0 }
 0xaf0   :  { %1921 = vadd.xlane.f32.xlu1 %v1920_v51 }
 0xaf1   :  { %v5951_v60 = vadd.f32 %v1897_v26, %v5814_v30 }
 0xaf3   :  { %v1923_v58 = vsel %vm180_vm2, %v5951_v60, 0.0 }
 0xaf4   :  { %1924 = vadd.xlane.f32.xlu0 %v1923_v58 }
 0xb69   :  { %v1910_v33 = vpop.xlane.xlu1 %1909 }
 0xb6a   :  { %v1926_v46 = vmul.f32 0.03125, %v1910_v33 }
 0xb6c   :  { %v1932_v27 = vsub.f32 %v5926_v7, %v1926_v46 }
 0xb6d   :  { %v1913_v5 = vpop.xlane.xlu0 %1912 }
 0xb6e   :  { %v1927_v29 = vmul.f32 0.03125, %v1913_v5  ;;  %v1938_v31 = vmul.f32 %v1932_v27, %v1932_v27 }
 0xb70   :  { %v5957_v36 = vsub.f32 %v5931_v38, %v1927_v29  ;;  %v1944_v57 = vsel %vm180_vm2, %v1938_v31, 0.0 }
 0xb71   :  { %v1916_v41 = vpop.xlane.xlu1 %1915  ;;  %1945 = vadd.xlane.f32.xlu1 %v1944_v57 }
 0xb72   :  { %v1928_v30 = vmul.f32 0.03125, %v1916_v41  ;;  %v1939_v42 = vmul.f32 %v5957_v36, %v5957_v36 }
 0xb74   :  { %v5963_v10 = vsub.f32 %v5936_v47, %v1928_v30  ;;  %v1947_v44 = vsel %vm180_vm2, %v1939_v42, 0.0 }
 0xb75   :  { %v1919_v54 = vpop.xlane.xlu0 %1918  ;;  %1948 = vadd.xlane.f32.xlu0 %v1947_v44 }
 0xb76   :  { %v1929_v59 = vmul.f32 0.03125, %v1919_v54  ;;  %v1940_v37 = vmul.f32 %v5963_v10, %v5963_v10 }
 0xb78   :  { %v5969_v61 = vsub.f32 %v5941_v22, %v1929_v59  ;;  %v1950_v15 = vsel %vm180_vm2, %v1940_v37, 0.0 }
 0xb79   :  { %1951 = vadd.xlane.f32.xlu1 %v1950_v15  ;;  %v1922_v53 = vpop.xlane.xlu1 %1921 }
 0xb7a   :  { %v1930_v17 = vmul.f32 0.03125, %v1922_v53  ;;  %v1941_v14 = vmul.f32 %v5969_v61, %v5969_v61 }
 0xb7c   :  { %v5975_v20 = vsub.f32 %v5946_v43, %v1930_v17  ;;  %v1953_v24 = vsel %vm180_vm2, %v1941_v14, 0.0 }
 0xb7d   :  { %1954 = vadd.xlane.f32.xlu0 %v1953_v24  ;;  %v1925_v48 = vpop.xlane.xlu0 %1924 }
 0xb7e   :  { %v1931_v55 = vmul.f32 0.03125, %v1925_v48  ;;  %v1942_v1 = vmul.f32 %v5975_v20, %v5975_v20 }
 0xb80   :  { %v5981_v13 = vsub.f32 %v5951_v60, %v1931_v55  ;;  %v1956_v25 = vsel %vm180_vm2, %v1942_v1, 0.0 }
 0xb81   :  { %1957 = vadd.xlane.f32.xlu1 %v1956_v25 }
 0xb82   :  { %v1943_v32 = vmul.f32 %v5981_v13, %v5981_v13 }
 0xb84   :  { %v1959_v16 = vsel %vm180_vm2, %v1943_v32, 0.0 }
 0xb85   :  { %1960 = vadd.xlane.f32.xlu0 %v1959_v16 }
 0xbfa   :  { %v1946_v12 = vpop.xlane.xlu1 %1945 }
 0xbfb   :  { %v1962_v50 = vmul.f32 0.03125, %v1946_v12 }
 0xbfd   :  { %v1968_v4 = vadd.f32 1e-06, %v1962_v50 }
 0xbfe   :  { %v1949_v35 = vpop.xlane.xlu0 %1948 }
 0xbff   :  { %4800 = vrsqrt.f32 %v1968_v4  ;;  %v1963_v63 = vmul.f32 0.03125, %v1949_v35 }
 0xc01   :  { %v1969_v6 = vadd.f32 1e-06, %v1963_v63 }
 0xc02   :  { %v1952_v18 = vpop.xlane.xlu1 %1951 }
 0xc03   :  { %4802 = vrsqrt.f32 %v1969_v6  ;;  %v1964_v19 = vmul.f32 0.03125, %v1952_v18 }
 0xc05   :  { %v1970_v40 = vadd.f32 1e-06, %v1964_v19 }
 0xc06   :  { %v1955_v39 = vpop.xlane.xlu0 %1954 }
 0xc07   :  { %4804 = vrsqrt.f32 %v1970_v40  ;;  %v1965_v21 = vmul.f32 0.03125, %v1955_v39 }
 0xc09   :  { %v1971_v2 = vadd.f32 1e-06, %v1965_v21 }
 0xc0a   :  { %v1958_v3 = vpop.xlane.xlu1 %1957 }
 0xc0b   :  { %4806 = vrsqrt.f32 %v1971_v2  ;;  %v1966_v52 = vmul.f32 0.03125, %v1958_v3 }
 0xc0c   :  { %v4801_v56 = vpop.eup %4800 }
 0xc0d   :  { %v1980_v34 = vmul.f32 %v4801_v56, %v1932_v27  ;;  %v1972_v9 = vadd.f32 1e-06, %v1966_v52 }
 0xc0e   :  { %v1961_v62 = vpop.xlane.xlu0 %1960 }
 0xc0f   :  { %v1992_v23 = vmul.f32 %v3818_v45, %v1980_v34  ;;  %4808 = vrsqrt.f32 %v1972_v9  ;;  %v1967_v11 = vmul.f32 0.03125, %v1961_v62 }
 0xc10   :  { %v4803_v26 = vpop.eup %4802 }
 0xc11   :  { %v1981_v51 = vmul.f32 %v4803_v26, %v5957_v36  ;;  %v1973_v58 = vadd.f32 1e-06, %v1967_v11  ;;  %v2004_v33 = vadd.f32 %v3819_v8, %v1992_v23 }
 0xc13   :  { %v1993_v46 = vmul.f32 %v3818_v45, %v1981_v51  ;;  %4810 = vrsqrt.f32 %v1973_v58 }
 0xc14   :  { %v4805_v5 = vpop.eup %4804 }
 0xc15   :  { %v2005_v29 = vadd.f32 %v3819_v8, %v1993_v46  ;;  %v1982_v27 = vmul.f32 %v4805_v5, %v5963_v10 }
 0xc17   :  { %v2010_v31 = vpack.c.bf16 %v2005_v29, %v2004_v33  ;;  %v1994_v57 = vmul.f32 %v3818_v45, %v1982_v27 }
 0xc18   :  { %v4807_v41 = vpop.eup %4806 }
 0xc19   :  { %4310 = vmatmul.mubr.msk.bf16.vlgmr.msra.gmra.mxu0 %vm180_vm2, %v2010_v31  ;;  %v1983_v30 = vmul.f32 %v4807_v41, %v5969_v61  ;;  %v2006_v42 = vadd.f32 %v3819_v8, %v1994_v57 }
 0xc1a   :  { %4313 = vmatprep.mubr.msk.bf16.mxu0 %vm4951_vm0, %v4950_v0 }
 0xc1b   :  { %v1995_v36 = vmul.f32 %v3818_v45, %v1983_v30 }
 0xc1c   :  { %v4809_v44 = vpop.eup %4808 }
 0xc1d   :  { %v2007_v54 = vadd.f32 %v3819_v8, %v1995_v36  ;;  %v1984_v59 = vmul.f32 %v4809_v44, %v5975_v20 }
 0xc1f   :  { %v2011_v37 = vpack.c.bf16 %v2007_v54, %v2006_v42  ;;  %v1996_v15 = vmul.f32 %v3818_v45, %v1984_v59 }
 0xc20   :  { %v4811_v53 = vpop.eup %4810 }
 0xc21   :  { %4314 = vmatmul.mubr.msk.bf16.gmra.mxu0 %vm180_vm2, %v2011_v37  ;;  %v1985_v10 = vmul.f32 %v4811_v53, %v5981_v13  ;;  %v2008_v17 = vadd.f32 %v3819_v8, %v1996_v15  ;;  %v3825_v13 = vld [vmem:[%s6743_s7 + $0x1] ss:$0 sm:$0xff]  ;;  %s6791_s7 = smov 104  }
 0xc22   :  { %4317 = vmatprep.mubr.msk.bf16.mxu0 %vm4951_vm0, %v4950_v0 }
 0xc23   :  { %v1997_v61 = vmul.f32 %v3818_v45, %v1985_v10 }
 0xc25   :  { %v2009_v14 = vadd.f32 %v3819_v8, %v1997_v61 }
 0xc27   :  { %v2012_v24 = vpack.c.bf16 %v2009_v14, %v2008_v17 }
 0xc29   :  { %4318 = vmatmul.mubr.msk.bf16.gmra.mxu0 %vm180_vm2, %v2012_v24 }
 0xc2a   :  { %4327 = vmatprep.mubr.msk.bf16.mxu0 %vm4951_vm0, %v4950_v0 }
 0xcd9   :  { %v2081_v20 = vpop.f32.mrf.mxu0 }
 0xcda   :  { %v2082_v18 = vadd.f32 %v3825_v13, %v2081_v20 }
 0xcdb   :  { %v4311_v48 = vpop.f32.mrf.mxu0 }
 0xcdd   :  { %v2084_v55 = vpop.f32.mrf.mxu0 }
 0xcde   :  { %v2085_v63 = vadd.f32 %v3825_v13, %v2084_v55 }
 0xcdf   :  { %v4312_v1 = vpop.f32.mrf.mxu0 }
 0xce0   :  { %v6024_v21 = vpack.c.bf16 %v2085_v63, %v2082_v18  ;;  %v6147_v1 = vld [vmem:[%s6744_s3] sm:$0xff]  ;;  %v6167_v63 = vld [vmem:[%s6744_s3 + $0x10] sm:$0xff] }
 0xce1   :  { %v2089_v25 = vpop.f32.mrf.mxu0 }
 0xce2   :  { %v2090_v28 = vadd.f32 %v3825_v13, %v2089_v25 }
 0xce3   :  { %v4315_v32 = vpop.f32.mrf.mxu0 }
 0xce5   :  { %v2092_v16 = vpop.f32.mrf.mxu0 }
 0xce6   :  { %v2093_v49 = vadd.f32 %v3825_v13, %v2092_v16 }
 0xce7   :  { %v4316_v12 = vpop.f32.mrf.mxu0 }
 0xce8   :  { %v6018_v50 = vpack.c.bf16 %v2093_v49, %v2090_v28  ;;  %v6157_v28 = vld [vmem:[%s6744_s3 + $0x8] sm:$0xff] }
 0xce9   :  { %v2097_v4 = vpop.f32.mrf.mxu0 }
 0xcea   :  { %2112 = vrot.lane.b32.xlu0 %v6018_v50, %s4952_s0  ;;  %v2098_v19 = vadd.f32 %v3825_v13, %v2097_v4 }
 0xceb   :  { %v4319_v35 = vpop.f32.mrf.mxu0 }
 0xced   :  { %v2100_v6 = vpop.f32.mrf.mxu0 }
 0xcee   :  { %v2101_v40 = vadd.f32 %v3825_v13, %v2100_v6  ;;  %2343 = vrot.lane.b32.xlu0 %v6018_v50, %s4953_s22 }
 0xcef   :  { %v4320_v39 = vpop.f32.mrf.mxu0 }
 0xcf0   :  { %v6026_v2 = vpack.c.bf16 %v2101_v40, %v2098_v19  ;;  %v6177_v39 = vld [vmem:[%s6744_s3 + $0x18] sm:$0xff] }
 0xcf2   :  { %2335 = vrot.lane.b32.xlu0 %v6024_v21, %s4955_s24  ;;  %2114 = vrot.lane.b32.xlu1 %v6026_v2, %s4952_s0 }
 0xcf6   :  { %2337 = vrot.lane.b32.xlu0 %v6018_v50, %s4955_s24  ;;  %2110 = vrot.lane.b32.xlu1 %v6024_v21, %s4952_s0  ;;  %s6792_s0 = smov 72  }
 0xcfa   :  { %2339 = vrot.lane.b32.xlu0 %v6026_v2, %s4955_s24  ;;  %2345 = vrot.lane.b32.xlu1 %v6026_v2, %s4953_s22  ;;  %s6794_s24 = smov 56  }
 0xcfe   :  { %2566 = vrot.lane.b32.xlu0 %v6024_v21, %s4957_s6  ;;  %2341 = vrot.lane.b32.xlu1 %v6024_v21, %s4953_s22  ;;  %s6793_s22 = smov 64  }
 0xd02   :  { %2568 = vrot.lane.b32.xlu0 %v6018_v50, %s4957_s6  ;;  %2576 = vrot.lane.b32.xlu1 %v6026_v2, %s4954_s23 }
 0xd06   :  { %2570 = vrot.lane.b32.xlu0 %v6026_v2, %s4957_s6  ;;  %2574 = vrot.lane.b32.xlu1 %v6018_v50, %s4954_s23  ;;  %s6798_s6 = smov 16  }
 0xd0a   :  { %2797 = vrot.lane.b32.xlu0 %v6024_v21, %s6791_s7  ;;  %2572 = vrot.lane.b32.xlu1 %v6024_v21, %s4954_s23 }
 0xd0e   :  { %2801 = vrot.lane.b32.xlu0 %v6026_v2, %s6791_s7  ;;  %2807 = vrot.lane.b32.xlu1 %v6026_v2, %s6792_s0 }
 0xd12   :  { %2260 = vrot.lane.b32.xlu0 %v6024_v21, %s6793_s22  ;;  %2805 = vrot.lane.b32.xlu1 %v6018_v50, %s6792_s0 }
 0xd16   :  { %2493 = vrot.lane.b32.xlu0 %v6018_v50, %s6794_s24  ;;  %2803 = vrot.lane.b32.xlu1 %v6024_v21, %s6792_s0 }
 0xd1a   :  { %2264 = vrot.lane.b32.xlu0 %v6026_v2, %s6793_s22  ;;  %2799 = vrot.lane.b32.xlu1 %v6018_v50, %s6791_s7  ;;  %s6797_s7 = smov 8  }
 0xd1e   :  { %2262 = vrot.lane.b32.xlu1 %v6018_v50, %s6793_s22 }
 0xd22   :  { %2495 = vrot.lane.b32.xlu1 %v6026_v2, %s6794_s24 }
 0xd5c   :  { %v2113_v3 = vpop.permute.xlu0 %2112 }
 0xd5d   :  { %v2129_v11 = vsel %vm388_vm3, %v2113_v3, 0 }
 0xd60   :  { %v2344_v52 = vpop.permute.xlu0 %2343 }
 0xd61   :  { %v2360_v44 = vsel %vm388_vm3, %v2344_v52, 0 }
 0xd64   :  { %v2336_v56 = vpop.permute.xlu0 %2335  ;;  %v2115_v45 = vpop.permute.xlu1 %2114 }
 0xd65   :  { %v2132_v34 = vsel %vm388_vm3, %v2115_v45, 0 }
 0xd66   :  { %4322 = vmatpush3.bf16.xpose.msra.mxu0 %v2132_v34  ;;  %v6187_v34 = vld [vmem:[%s6744_s3 + $0x20] sm:$0xff] }
 0xd67   :  { %4323 = vmatprep.subr.bf16.mxu0 %v4950_v0 }
 0xd68   :  { %v2338_v9 = vpop.permute.xlu0 %2337  ;;  %v2111_v8 = vpop.permute.xlu1 %2110 }
 0xd69   :  { %v2126_v46 = vsel %vm388_vm3, %v2111_v8, 0 }
 0xd6c   :  { %v2340_v62 = vpop.permute.xlu0 %2339  ;;  %v2346_v23 = vpop.permute.xlu1 %2345 }
 0xd6d   :  { %v2363_v57 = vsel %vm388_vm3, %v2346_v23, 0 }
 0xd6e   :  { %4324 = vmatpush3.bf16.xpose.msra.mxu0 %v2129_v11  ;;  %v6197_v11 = vld [vmem:[%s6744_s3 + $0x28] sm:$0xff]  ;;  %s6795_s3 = smov 48  }
 0xd6f   :  { %4325 = vmatprep.subr.bf16.mxu0 %v4950_v0 }
 0xd70   :  { %v2567_v26 = vpop.permute.xlu0 %2566  ;;  %v2342_v51 = vpop.permute.xlu1 %2341 }
 0xd71   :  { %v2357_v53 = vsel %vm388_vm3, %v2342_v51, 0 }
 0xd74   :  { %v2569_v58 = vpop.permute.xlu0 %2568  ;;  %v2577_v33 = vpop.permute.xlu1 %2576 }
 0xd75   :  { %v2594_v17 = vsel %vm388_vm3, %v2577_v33, 0 }
 0xd76   :  { %4326 = vmatpush3.bf16.xpose.msra.mxu0 %v2126_v46 }
 0xd77   :  { %4357 = vmatprep.subr.bf16.mxu0 %v4950_v0 }
 0xd78   :  { %v2571_v5 = vpop.permute.xlu0 %2570  ;;  %v2575_v29 = vpop.permute.xlu1 %2574 }
 0xd79   :  { %v2591_v61 = vsel %vm388_vm3, %v2575_v29, 0 }
 0xd7c   :  { %v2798_v27 = vpop.permute.xlu0 %2797  ;;  %v2573_v31 = vpop.permute.xlu1 %2572 }
 0xd7d   :  { %4328 = vmatmul.mubr.msk.bf16.vlgmr.msra.gmra.mxu0 %vm388_vm3, %v6024_v21  ;;  %v2588_v14 = vsel %vm388_vm3, %v2573_v31, 0 }
 0xd7e   :  { %4358 = vmatpush3.bf16.xpose.msra.mxu0 %v2363_v57  ;;  %4331 = vmatprep.mubr.msk.bf16.mxu0 %vm4951_vm0, %v4950_v0 }
 0xd7f   :  { %4359 = vmatprep.subr.bf16.mxu0 %v4950_v0 }
 0xd80   :  { %v2802_v41 = vpop.permute.xlu0 %2801  ;;  %v2808_v30 = vpop.permute.xlu1 %2807 }
 0xd81   :  { %v2825_v24 = vsel %vm388_vm3, %v2808_v30, 0 }
 0xd84   :  { %v2261_v42 = vpop.permute.xlu0 %2260  ;;  %v2806_v36 = vpop.permute.xlu1 %2805 }
 0xd85   :  { %4332 = vmatmul.mubr.msk.bf16.gmra.mxu0 %vm388_vm3, %v6018_v50  ;;  %v2822_v20 = vsel %vm388_vm3, %v2806_v36, 0 }
 0xd86   :  { %4360 = vmatpush3.bf16.xpose.msra.mxu0 %v2360_v44  ;;  %4335 = vmatprep.mubr.msk.bf16.mxu0 %vm4951_vm0, %v4950_v0 }
 0xd87   :  { %4361 = vmatprep.subr.bf16.mxu0 %v4950_v0 }
 0xd88   :  { %v6094_v54 = vpop.permute.xlu0 %2493  ;;  %v2804_v59 = vpop.permute.xlu1 %2803 }
 0xd89   :  { %v2819_v48 = vsel %vm388_vm3, %v2804_v59, 0 }
 0xd8c   :  { %v2265_v37 = vpop.permute.xlu0 %2264  ;;  %v2800_v15 = vpop.permute.xlu1 %2799 }
 0xd8d   :  { %4336 = vmatmul.mubr.msk.bf16.gmra.mxu0 %vm388_vm3, %v6026_v2  ;;  %4340 = vmatpush3.bf16.msra.mxu1 %v2265_v37 }
 0xd8e   :  { %4362 = vmatpush3.bf16.xpose.msra.mxu0 %v2357_v53  ;;  %4341 = vmatprep.subr.bf16.mxu1 %v4950_v0 }
 0xd8f   :  { %4363 = vmatprep.mubr.msk.bf16.mxu0 %vm4951_vm0, %v4950_v0  ;;  %4393 = vmatprep.subr.bf16.mxu0 %v4950_v0 }
 0xd90   :  { %v2263_v10 = vpop.permute.xlu1 %2262 }
 0xd91   :  { %4342 = vmatpush3.bf16.msra.mxu1 %v2263_v10 }
 0xd92   :  { %4343 = vmatprep.subr.bf16.mxu1 %v4950_v0 }
 0xd95   :  { %4344 = vmatpush3.bf16.msra.mxu1 %v2261_v42  ;;  %4364 = vmatmul.mubr.msk.bf16.vlgmr.msra.gmra.mxu0 %vm388_vm3, %v2336_v56 }
 0xd96   :  { %4394 = vmatpush3.bf16.xpose.msra.mxu0 %v2594_v17  ;;  %4367 = vmatprep.mubr.msk.bf16.mxu0 %vm4951_vm0, %v4950_v0 }
 0xd97   :  { %4395 = vmatprep.subr.bf16.mxu0 %v4950_v0  ;;  %4375 = vmatprep.subr.bf16.mxu1 %v4950_v0 }
 0xd9d   :  { %4368 = vmatmul.mubr.msk.bf16.gmra.mxu0 %vm388_vm3, %v2338_v9 }
 0xd9e   :  { %4396 = vmatpush3.bf16.xpose.msra.mxu0 %v2591_v61  ;;  %4371 = vmatprep.mubr.msk.bf16.mxu0 %vm4951_vm0, %v4950_v0 }
 0xd9f   :  { %4397 = vmatprep.subr.bf16.mxu0 %v4950_v0 }
 0xda5   :  { %4372 = vmatmul.mubr.msk.bf16.gmra.mxu0 %vm388_vm3, %v2340_v62 }
 0xda6   :  { %4398 = vmatpush3.bf16.xpose.msra.mxu0 %v2588_v14  ;;  %4399 = vmatprep.mubr.msk.bf16.mxu0 %vm4951_vm0, %v4950_v0 }
 0xda7   :  { %4429 = vmatprep.subr.bf16.mxu0 %v4950_v0 }
 0xdad   :  { %4400 = vmatmul.mubr.msk.bf16.vlgmr.msra.gmra.mxu0 %vm388_vm3, %v2567_v26 }
 0xdae   :  { %4430 = vmatpush3.bf16.xpose.msra.mxu0 %v2825_v24  ;;  %4403 = vmatprep.mubr.msk.bf16.mxu0 %vm4951_vm0, %v4950_v0 }
 0xdaf   :  { %4431 = vmatprep.subr.bf16.mxu0 %v4950_v0 }
 0xdb5   :  { %4404 = vmatmul.mubr.msk.bf16.gmra.mxu0 %vm388_vm3, %v2569_v58 }
 0xdb6   :  { %4432 = vmatpush3.bf16.xpose.msra.mxu0 %v2822_v20  ;;  %4407 = vmatprep.mubr.msk.bf16.mxu0 %vm4951_vm0, %v4950_v0 }
 0xdb7   :  { %4433 = vmatprep.subr.bf16.mxu0 %v4950_v0 }
 0xdbd   :  { %4408 = vmatmul.mubr.msk.bf16.gmra.mxu0 %vm388_vm3, %v2571_v5 }
 0xdbe   :  { %4434 = vmatpush3.bf16.xpose.msra.mxu0 %v2819_v48  ;;  %4435 = vmatprep.mubr.msk.bf16.mxu0 %vm4951_vm0, %v4950_v0 }
 0xdbf   :  { %4465 = vmatprep.subr.bf16.mxu0 %v4950_v0 }
 0xdc5   :  { %4436 = vmatmul.mubr.msk.bf16.vlgmr.msra.gmra.mxu0 %vm388_vm3, %v2798_v27 }
 0xdc6   :  { %4439 = vmatprep.mubr.msk.bf16.mxu0 %vm4951_vm0, %v4950_v0 }
 0xdcd   :  { %4440 = vmatmul.mubr.msk.bf16.gmra.mxu0 %vm388_vm3, %v2800_v15 }
 0xdce   :  { %4443 = vmatprep.mubr.msk.bf16.mxu0 %vm4951_vm0, %v4950_v0 }
 0xdd5   :  { %4444 = vmatmul.mubr.msk.bf16.gmra.mxu0 %vm388_vm3, %v2802_v41 }
 0xdd6   :  { %4469 = vmatprep.mubr.msk.bf16.mxu0 %vm4951_vm0, %v4950_v0 }
 0xe3d   :  { %v2168_v55 = vpop.f32.mrf.mxu0 }
 0xe3e   :  { %v6150_v25 = vadd.f32 %v6147_v1, %v2168_v55 }
 0xe3f   :  { %v4329_v32 = vpop.f32.mrf.mxu0 }
 0xe40   :  { %v2191_v13 = vsel %vm105_vm1, %v6150_v25, -inf }
 0xe41   :  { %2192 = vmax.xlane.f32.xlu1 %v2191_v13  ;;  %v2171_v16 = vpop.f32.mrf.mxu0 }
 0xe42   :  { %v6160_v49 = vadd.f32 %v6157_v28, %v2171_v16 }
 0xe43   :  { %v4330_v12 = vpop.f32.mrf.mxu0 }
 0xe44   :  { %v2194_v4 = vsel %vm105_vm1, %v6160_v49, -inf }
 0xe45   :  { %2195 = vmax.xlane.f32.xlu0 %v2194_v4  ;;  %v2176_v35 = vpop.f32.mrf.mxu0 }
 0xe46   :  { %v6170_v6 = vadd.f32 %v6167_v63, %v2176_v35 }
 0xe47   :  { %v4333_v18 = vpop.f32.mrf.mxu0 }
 0xe48   :  { %v2197_v19 = vsel %vm105_vm1, %v6170_v6, -inf }
 0xe49   :  { %2198 = vmax.xlane.f32.xlu0 %v2197_v19  ;;  %v2179_v40 = vpop.f32.mrf.mxu0 }
 0xe4a   :  { %v6180_v3 = vadd.f32 %v6177_v39, %v2179_v40 }
 0xe4b   :  { %v4334_v52 = vpop.f32.mrf.mxu0 }
 0xe4c   :  { %v2200_v56 = vsel %vm105_vm1, %v6180_v3, -inf }
 0xe4d   :  { %2201 = vmax.xlane.f32.xlu1 %v2200_v56  ;;  %v2184_v45 = vpop.f32.mrf.mxu0 }
 0xe4e   :  { %v6190_v9 = vadd.f32 %v6187_v34, %v2184_v45 }
 0xe4f   :  { %v4337_v8 = vpop.f32.mrf.mxu0 }
 0xe50   :  { %v2203_v62 = vsel %vm105_vm1, %v6190_v9, -inf }
 0xe51   :  { %2204 = vmax.xlane.f32.xlu0 %v2203_v62  ;;  %v2187_v23 = vpop.f32.mrf.mxu0 }
 0xe52   :  { %v6200_v26 = vadd.f32 %v6197_v11, %v2187_v23 }
 0xe53   :  { %v4338_v51 = vpop.f32.mrf.mxu0 }
 0xe54   :  { %v2206_v58 = vsel %vm105_vm1, %v6200_v26, -inf }
 0xe55   :  { %2207 = vmax.xlane.f32.xlu1 %v2206_v58  ;;  %v2399_v33 = vpop.f32.mrf.mxu0 }
 0xe56   :  { %v6205_v46 = vadd.f32 %v6147_v1, %v2399_v33 }
 0xe57   :  { %v4365_v5 = vpop.f32.mrf.mxu0 }
 0xe58   :  { %v2422_v29 = vsel %vm105_vm1, %v6205_v46, -inf }
 0xe59   :  { %2423 = vmax.xlane.f32.xlu0 %v2422_v29  ;;  %v2402_v27 = vpop.f32.mrf.mxu0 }
 0xe5a   :  { %v6210_v31 = vadd.f32 %v6157_v28, %v2402_v27 }
 0xe5b   :  { %v4366_v57 = vpop.f32.mrf.mxu0 }
 0xe5c   :  { %v2425_v41 = vsel %vm105_vm1, %v6210_v31, -inf }
 0xe5d   :  { %2426 = vmax.xlane.f32.xlu1 %v2425_v41  ;;  %v2407_v30 = vpop.f32.mrf.mxu0 }
 0xe5e   :  { %v6215_v42 = vadd.f32 %v6167_v63, %v2407_v30 }
 0xe5f   :  { %v4369_v36 = vpop.f32.mrf.mxu0 }
 0xe60   :  { %v2428_v44 = vsel %vm105_vm1, %v6215_v42, -inf }
 0xe61   :  { %2429 = vmax.xlane.f32.xlu0 %v2428_v44  ;;  %v2410_v59 = vpop.f32.mrf.mxu0 }
 0xe62   :  { %v6220_v37 = vadd.f32 %v6177_v39, %v2410_v59 }
 0xe63   :  { %v4370_v15 = vpop.f32.mrf.mxu0 }
 0xe64   :  { %v2431_v53 = vsel %vm105_vm1, %v6220_v37, -inf }
 0xe65   :  { %2432 = vmax.xlane.f32.xlu1 %v2431_v53  ;;  %v2415_v10 = vpop.f32.mrf.mxu0 }
 0xe66   :  { %v6225_v17 = vadd.f32 %v6187_v34, %v2415_v10 }
 0xe67   :  { %v4373_v61 = vpop.f32.mrf.mxu0 }
 0xe68   :  { %v2434_v14 = vsel %vm105_vm1, %v6225_v17, -inf }
 0xe69   :  { %2435 = vmax.xlane.f32.xlu0 %v2434_v14  ;;  %v2418_v24 = vpop.f32.mrf.mxu0 }
 0xe6a   :  { %v6230_v20 = vadd.f32 %v6197_v11, %v2418_v24 }
 0xe6b   :  { %v4374_v48 = vpop.f32.mrf.mxu0 }
 0xe6c   :  { %v2437_v55 = vsel %vm105_vm1, %v6230_v20, -inf }
 0xe6d   :  { %2438 = vmax.xlane.f32.xlu1 %v2437_v55  ;;  %v2630_v32 = vpop.f32.mrf.mxu0 }
 0xe6e   :  { %v6235_v13 = vadd.f32 %v6147_v1, %v2630_v32 }
 0xe6f   :  { %v4401_v16 = vpop.f32.mrf.mxu0 }
 0xe70   :  { %v2653_v12 = vsel %vm105_vm1, %v6235_v13, -inf }
 0xe71   :  { %2654 = vmax.xlane.f32.xlu0 %v2653_v12  ;;  %v2633_v4 = vpop.f32.mrf.mxu0 }
 0xe72   :  { %v6246_v59 = vadd.f32 %v6157_v28, %v2633_v4 }
 0xe73   :  { %v4402_v35 = vpop.f32.mrf.mxu0 }
 0xe74   :  { %v2656_v61 = vsel %vm105_vm1, %v6246_v59, -inf }
 0xe75   :  { %v2638_v18 = vpop.f32.mrf.mxu0 }
 0xe76   :  { %v6249_v15 = vadd.f32 %v6167_v63, %v2638_v18 }
 0xe77   :  { %v4405_v19 = vpop.f32.mrf.mxu0 }
 0xe78   :  { %v2659_v14 = vsel %vm105_vm1, %v6249_v15, -inf }
 0xe79   :  { %v2641_v40 = vpop.f32.mrf.mxu0 }
 0xe7a   :  { %v6252_v53 = vadd.f32 %v6177_v39, %v2641_v40 }
 0xe7b   :  { %v4406_v52 = vpop.f32.mrf.mxu0 }
 0xe7c   :  { %v2662_v55 = vsel %vm105_vm1, %v6252_v53, -inf  ;;  %v6300_v52 = vpop.permute.xlu1 %2495 }
 0xe7d   :  { %v2646_v56 = vpop.f32.mrf.mxu0 }
 0xe7e   :  { %2726 = vrot.lane.b32.xlu1 %v6026_v2, %s6795_s3  ;;  %v6255_v10 = vadd.f32 %v6187_v34, %v2646_v56 }
 0xe7f   :  { %v4409_v45 = vpop.f32.mrf.mxu0 }
 0xe80   :  { %v2665_v32 = vsel %vm105_vm1, %v6255_v10, -inf }
 0xe81   :  { %v2649_v8 = vpop.f32.mrf.mxu0 }
 0xe82   :  { %2724 = vrot.lane.b32.xlu1 %v6018_v50, %s6795_s3  ;;  %v6262_v24 = vadd.f32 %v6197_v11, %v2649_v8 }
 0xe83   :  { %v4410_v62 = vpop.f32.mrf.mxu0 }
 0xe84   :  { %v2668_v4 = vsel %vm105_vm1, %v6262_v24, -inf }
 0xe85   :  { %v2861_v23 = vpop.f32.mrf.mxu0 }
 0xe86   :  { %v6265_v48 = vadd.f32 %v6147_v1, %v2861_v23 }
 0xe87   :  { %2491 = vrot.lane.b32.xlu0 %v6024_v21, %s6794_s24  ;;  %v4437_v51 = vpop.f32.mrf.mxu0 }
 0xe88   :  { %v2884_v1 = vsel %vm105_vm1, %v6265_v48, -inf }
 0xe89   :  { %v2864_v58 = vpop.f32.mrf.mxu0 }
 0xe8a   :  { %v6272_v16 = vadd.f32 %v6157_v28, %v2864_v58 }
 0xe8b   :  { %v4438_v33 = vpop.f32.mrf.mxu0 }
 0xe8c   :  { %v2887_v28 = vsel %vm105_vm1, %v6272_v16, -inf }
 0xe8d   :  { %v2869_v5 = vpop.f32.mrf.mxu0 }
 0xe8e   :  { %v6275_v12 = vadd.f32 %v6167_v63, %v2869_v5 }
 0xe8f   :  { %v4441_v29 = vpop.f32.mrf.mxu0 }
 0xe90   :  { %v2890_v63 = vsel %vm105_vm1, %v6275_v12, -inf }
 0xe91   :  { %v2872_v27 = vpop.f32.mrf.mxu0 }
 0xe92   :  { %v6282_v35 = vadd.f32 %v6177_v39, %v2872_v27 }
 0xe93   :  { %v4442_v57 = vpop.f32.mrf.mxu0 }
 0xe94   :  { %v2893_v40 = vsel %vm105_vm1, %v6282_v35, -inf }
 0xe95   :  { %v2877_v41 = vpop.f32.mrf.mxu0 }
 0xe96   :  { %v6285_v18 = vadd.f32 %v6187_v34, %v2877_v41 }
 0xe97   :  { %v4445_v30 = vpop.f32.mrf.mxu0 }
 0xe98   :  { %v2896_v39 = vsel %vm105_vm1, %v6285_v18, -inf }
 0xe99   :  { %v2880_v36 = vpop.f32.mrf.mxu0 }
 0xe9a   :  { %v6292_v19 = vadd.f32 %v6197_v11, %v2880_v36 }
 0xe9b   :  { %v4446_v44 = vpop.f32.mrf.mxu0 }
 0xe9c   :  { %v2899_v34 = vsel %vm105_vm1, %v6292_v19, -inf }
 0xea6   :  { %2657 = vmax.xlane.f32.xlu1 %v2656_v61  ;;  %2660 = vmax.xlane.f32.xlu0 %v2659_v14 }
 0xeaa   :  { %2663 = vmax.xlane.f32.xlu1 %v2662_v55  ;;  %2666 = vmax.xlane.f32.xlu0 %v2665_v32 }
 0xeae   :  { %2669 = vmax.xlane.f32.xlu1 %v2668_v4  ;;  %2885 = vmax.xlane.f32.xlu0 %v2884_v1 }
 0xeb2   :  { %2888 = vmax.xlane.f32.xlu1 %v2887_v28  ;;  %2891 = vmax.xlane.f32.xlu0 %v2890_v63 }
 0xeb6   :  { %2894 = vmax.xlane.f32.xlu1 %v2893_v40  ;;  %2897 = vmax.xlane.f32.xlu0 %v2896_v39 }
 0xeba   :  { %2900 = vmax.xlane.f32.xlu1 %v2899_v34 }
 0xeca   :  { %v2193_v56 = vpop.xlane.xlu1 %2192 }
 0xecb   :  { %v2209_v45 = vsub.f32 %v6150_v25, %v2193_v56 }
 0xecd   :  { %v2215_v8 = vmul.f32 1.442695, %v2209_v45 }
 0xece   :  { %v2196_v11 = vpop.xlane.xlu0 %2195 }
 0xecf   :  { %4812 = vpow2.f32 %v2215_v8  ;;  %v2210_v62 = vsub.f32 %v6160_v49, %v2196_v11 }
 0xed1   :  { %v2217_v23 = vmul.f32 1.442695, %v2210_v62 }
 0xed2   :  { %v2199_v51 = vpop.xlane.xlu0 %2198 }
 0xed3   :  { %4814 = vpow2.f32 %v2217_v23  ;;  %v2211_v58 = vsub.f32 %v6170_v6, %v2199_v51 }
 0xed5   :  { %v2219_v33 = vmul.f32 1.442695, %v2211_v58 }
 0xed6   :  { %v2202_v5 = vpop.xlane.xlu1 %2201 }
 0xed7   :  { %4816 = vpow2.f32 %v2219_v33  ;;  %v2212_v29 = vsub.f32 %v6180_v3, %v2202_v5 }
 0xed9   :  { %v2221_v27 = vmul.f32 1.442695, %v2212_v29 }
 0xeda   :  { %v2205_v57 = vpop.xlane.xlu0 %2204 }
 0xedb   :  { %4818 = vpow2.f32 %v2221_v27  ;;  %v2213_v25 = vsub.f32 %v6190_v9, %v2205_v57 }
 0xedc   :  { %v6307_v41 = vpop.eup %4812 }
 0xedd   :  { %v2223_v30 = vmul.f32 1.442695, %v2213_v25  ;;  %v2227_v49 = vsel %vm105_vm1, %v6307_v41, 0.0 }
 0xede   :  { %v2208_v36 = vpop.xlane.xlu1 %2207  ;;  %2228 = vadd.xlane.f32.xlu0 %v2227_v49 }
 0xedf   :  { %4820 = vpow2.f32 %v2223_v30  ;;  %v2214_v6 = vsub.f32 %v6200_v26, %v2208_v36 }
 0xee0   :  { %v6312_v44 = vpop.eup %4814 }
 0xee1   :  { %v2225_v61 = vmul.f32 1.442695, %v2214_v6  ;;  %v2230_v3 = vsel %vm105_vm1, %v6312_v44, 0.0 }
 0xee2   :  { %v2424_v14 = vpop.xlane.xlu0 %2423  ;;  %2231 = vadd.xlane.f32.xlu1 %v2230_v3 }
 0xee3   :  { %4822 = vpow2.f32 %v2225_v61  ;;  %v2440_v9 = vsub.f32 %v6205_v46, %v2424_v14 }
 0xee4   :  { %v6317_v55 = vpop.eup %4816 }
 0xee5   :  { %v2446_v32 = vmul.f32 1.442695, %v2440_v9  ;;  %v2233_v4 = vsel %vm105_vm1, %v6317_v55, 0.0 }
 0xee6   :  { %v2427_v1 = vpop.xlane.xlu1 %2426  ;;  %2234 = vadd.xlane.f32.xlu0 %v2233_v4 }
 0xee7   :  { %4824 = vpow2.f32 %v2446_v32  ;;  %v2441_v26 = vsub.f32 %v6210_v31, %v2427_v1 }
 0xee8   :  { %v6322_v28 = vpop.eup %4818 }
 0xee9   :  { %v2448_v63 = vmul.f32 1.442695, %v2441_v26  ;;  %v2236_v40 = vsel %vm105_vm1, %v6322_v28, 0.0 }
 0xeea   :  { %v2430_v39 = vpop.xlane.xlu0 %2429  ;;  %2237 = vadd.xlane.f32.xlu1 %v2236_v40 }
 0xeeb   :  { %4826 = vpow2.f32 %v2448_v63  ;;  %v2442_v46 = vsub.f32 %v6215_v42, %v2430_v39 }
 0xeec   :  { %v6327_v34 = vpop.eup %4820 }
 0xeed   :  { %v2450_v56 = vmul.f32 1.442695, %v2442_v46  ;;  %v2239_v45 = vsel %vm105_vm1, %v6327_v34, 0.0 }
 0xeee   :  { %v2433_v8 = vpop.xlane.xlu1 %2432  ;;  %2240 = vadd.xlane.f32.xlu0 %v2239_v45 }
 0xeef   :  { %4828 = vpow2.f32 %v2450_v56  ;;  %v2443_v31 = vsub.f32 %v6220_v37, %v2433_v8 }
 0xef0   :  { %v6332_v11 = vpop.eup %4822 }
 0xef1   :  { %v2452_v62 = vmul.f32 1.442695, %v2443_v31  ;;  %v2242_v23 = vsel %vm105_vm1, %v6332_v11, 0.0 }
 0xef2   :  { %v2436_v51 = vpop.xlane.xlu0 %2435  ;;  %2243 = vadd.xlane.f32.xlu1 %v2242_v23 }
 0xef3   :  { %4830 = vpow2.f32 %v2452_v62  ;;  %v2444_v42 = vsub.f32 %v6225_v17, %v2436_v51 }
 0xef4   :  { %v6337_v58 = vpop.eup %4824 }
 0xef5   :  { %v2454_v33 = vmul.f32 1.442695, %v2444_v42  ;;  %v2458_v5 = vsel %vm105_vm1, %v6337_v58, 0.0 }
 0xef6   :  { %v2439_v29 = vpop.xlane.xlu1 %2438  ;;  %2459 = vadd.xlane.f32.xlu1 %v2458_v5 }
 0xef7   :  { %4832 = vpow2.f32 %v2454_v33  ;;  %v2445_v37 = vsub.f32 %v6230_v20, %v2439_v29 }
 0xef8   :  { %v6342_v27 = vpop.eup %4826 }
 0xef9   :  { %v2456_v57 = vmul.f32 1.442695, %v2445_v37  ;;  %v2461_v25 = vsel %vm105_vm1, %v6342_v27, 0.0 }
 0xefa   :  { %v2655_v30 = vpop.xlane.xlu0 %2654  ;;  %2462 = vadd.xlane.f32.xlu0 %v2461_v25  ;;  %v6371_v1 = vpop.permute.xlu1 %2726 }
 0xefb   :  { %4834 = vpow2.f32 %v2456_v57  ;;  %v2671_v17 = vsub.f32 %v6235_v13, %v2655_v30 }
 0xefc   :  { %v6347_v49 = vpop.eup %4828 }
 0xefd   :  { %v2677_v36 = vmul.f32 1.442695, %v2671_v17  ;;  %v2464_v6 = vsel %vm105_vm1, %v6347_v49, 0.0 }
 0xefe   :  { %2465 = vadd.xlane.f32.xlu1 %v2464_v6  ;;  %v6373_v26 = vpop.permute.xlu1 %2724  ;;  %v6375_v63 = vpop.permute.xlu0 %2491 }
 0xeff   :  { %4836 = vpow2.f32 %v2677_v36 }
 0xf00   :  { %v6351_v20 = vpop.eup %4830 }
 0xf01   :  { %v2467_v61 = vsel %vm105_vm1, %v6351_v20, 0.0 }
 0xf02   :  { %2468 = vadd.xlane.f32.xlu1 %v2467_v61 }
 0xf04   :  { %v6355_v3 = vpop.eup %4832 }
 0xf05   :  { %v2470_v14 = vsel %vm105_vm1, %v6355_v3, 0.0 }
 0xf06   :  { %2471 = vadd.xlane.f32.xlu1 %v2470_v14 }
 0xf08   :  { %v6359_v13 = vpop.eup %4834 }
 0xf09   :  { %v2473_v9 = vsel %vm105_vm1, %v6359_v13, 0.0 }
 0xf0a   :  { %2474 = vadd.xlane.f32.xlu1 %v2473_v9 }
 0xf0c   :  { %v6363_v32 = vpop.eup %4836 }
 0xf0d   :  { %v2689_v4 = vsel %vm105_vm1, %v6363_v32, 0.0 }
 0xf0e   :  { %2690 = vadd.xlane.f32.xlu0 %v2689_v4 }
 0xf1b   :  { %2957 = vrot.lane.b32.xlu1 %v6026_v2, %s6796_s28 }
 0xf24   :  { %2722 = vrot.lane.b32.xlu0 %v6024_v21, %s6795_s3 }
 0xf2f   :  { %v2658_v40 = vpop.xlane.xlu1 %2657  ;;  %v2661_v39 = vpop.xlane.xlu0 %2660 }
 0xf30   :  { %v2672_v46 = vsub.f32 %v6246_v59, %v2658_v40  ;;  %v2673_v56 = vsub.f32 %v6249_v15, %v2661_v39 }
 0xf32   :  { %v2679_v45 = vmul.f32 1.442695, %v2672_v46  ;;  %v2681_v8 = vmul.f32 1.442695, %v2673_v56 }
 0xf33   :  { %v2664_v31 = vpop.xlane.xlu1 %2663  ;;  %v2667_v62 = vpop.xlane.xlu0 %2666 }
 0xf34   :  { %4838 = vpow2.f32 %v2679_v45  ;;  %v2674_v2 = vsub.f32 %v6252_v53, %v2664_v31  ;;  %v2675_v51 = vsub.f32 %v6255_v10, %v2667_v62 }
 0xf35   :  { %4840 = vpow2.f32 %v2681_v8 }
 0xf36   :  { %v2683_v23 = vmul.f32 1.442695, %v2674_v2  ;;  %v2685_v59 = vmul.f32 1.442695, %v2675_v51 }
 0xf37   :  { %v2670_v42 = vpop.xlane.xlu1 %2669  ;;  %v2886_v33 = vpop.xlane.xlu0 %2885 }
 0xf38   :  { %v2676_v5 = vsub.f32 %v6262_v24, %v2670_v42  ;;  %v2902_v29 = vsub.f32 %v6265_v48, %v2886_v33  ;;  %4842 = vpow2.f32 %v2683_v23 }
 0xf3a   :  { %v2687_v15 = vmul.f32 1.442695, %v2676_v5  ;;  %v2908_v30 = vmul.f32 1.442695, %v2902_v29 }
 0xf3b   :  { %v2889_v37 = vpop.xlane.xlu1 %2888  ;;  %v2892_v57 = vpop.xlane.xlu0 %2891 }
 0xf3c   :  { %4844 = vpow2.f32 %v2687_v15  ;;  %v2903_v25 = vsub.f32 %v6272_v16, %v2889_v37  ;;  %v2904_v53 = vsub.f32 %v6275_v12, %v2892_v57 }
 0xf3d   :  { %4846 = vpow2.f32 %v2685_v59 }
 0xf3e   :  { %v2910_v17 = vmul.f32 1.442695, %v2903_v25  ;;  %v2912_v10 = vmul.f32 1.442695, %v2904_v53 }
 0xf3f   :  { %v2895_v36 = vpop.xlane.xlu1 %2894  ;;  %v2898_v6 = vpop.xlane.xlu0 %2897 }
 0xf40   :  { %4848 = vpow2.f32 %v2910_v17  ;;  %v2905_v24 = vsub.f32 %v6282_v35, %v2895_v36  ;;  %v2906_v14 = vsub.f32 %v6285_v18, %v2898_v6 }
 0xf41   :  { %v6386_v48 = vpop.eup %4838  ;;  %4850 = vpow2.f32 %v2908_v30 }
 0xf42   :  { %4852 = vpow2.f32 %v2912_v10  ;;  %v2914_v61 = vmul.f32 1.442695, %v2905_v24  ;;  %v2692_v16 = vsel %vm105_vm1, %v6386_v48, 0.0  ;;  %v6391_v12 = vpop.eup %4840  ;;  %v2916_v4 = vmul.f32 1.442695, %v2906_v14 }
 0xf43   :  { %2693 = vadd.xlane.f32.xlu1 %v2692_v16  ;;  %v2901_v9 = vpop.xlane.xlu1 %2900  ;;  %v2695_v35 = vsel %vm105_vm1, %v6391_v12, 0.0 }
 0xf44   :  { %4854 = vpow2.f32 %v2914_v61  ;;  %v2907_v40 = vsub.f32 %v6292_v19, %v2901_v9 }
 0xf45   :  { %v6396_v39 = vpop.eup %4842  ;;  %4856 = vpow2.f32 %v2916_v4 }
 0xf46   :  { %v2918_v18 = vmul.f32 1.442695, %v2907_v40  ;;  %v2698_v45 = vsel %vm105_vm1, %v6396_v39, 0.0 }
 0xf47   :  { %2696 = vadd.xlane.f32.xlu1 %v2695_v35 }
 0xf48   :  { %4858 = vpow2.f32 %v2918_v18 }
 0xf49   :  { %v6398_v46 = vpop.eup %4844 }
 0xf4a   :  { %v2704_v56 = vsel %vm105_vm1, %v6398_v46, 0.0  ;;  %v6404_v8 = vpop.eup %4846 }
 0xf4b   :  { %2705 = vadd.xlane.f32.xlu0 %v2704_v56  ;;  %2699 = vadd.xlane.f32.xlu1 %v2698_v45  ;;  %v2701_v2 = vsel %vm105_vm1, %v6404_v8, 0.0 }
 0xf4d   :  { %v6406_v19 = vpop.eup %4848 }
 0xf4e   :  { %v6408_v31 = vpop.eup %4850  ;;  %v2923_v62 = vsel %vm105_vm1, %v6406_v19, 0.0 }
 0xf4f   :  { %v6414_v23 = vpop.eup %4852  ;;  %2924 = vadd.xlane.f32.xlu0 %v2923_v62  ;;  %2702 = vadd.xlane.f32.xlu1 %v2701_v2  ;;  %v2920_v42 = vsel %vm105_vm1, %v6408_v31, 0.0 }
 0xf50   :  { %v2926_v51 = vsel %vm105_vm1, %v6414_v23, 0.0 }
 0xf51   :  { %v6420_v33 = vpop.eup %4854 }
 0xf52   :  { %v2929_v5 = vsel %vm105_vm1, %v6420_v33, 0.0  ;;  %v6424_v29 = vpop.eup %4856 }
 0xf53   :  { %2927 = vadd.xlane.f32.xlu0 %v2926_v51  ;;  %2921 = vadd.xlane.f32.xlu1 %v2920_v42  ;;  %v2932_v59 = vsel %vm105_vm1, %v6424_v29, 0.0 }
 0xf55   :  { %v6428_v15 = vpop.eup %4858 }
 0xf56   :  { %v2935_v37 = vsel %vm105_vm1, %v6428_v15, 0.0 }
 0xf57   :  { %2930 = vadd.xlane.f32.xlu1 %v2929_v5 }
 0xf5b   :  { %2933 = vadd.xlane.f32.xlu1 %v2932_v59 }
 0xf5f   :  { %2936 = vadd.xlane.f32.xlu1 %v2935_v37 }
 0xf67   :  { %v2229_v57 = vpop.xlane.xlu0 %2228 }
 0xf68   :  { %4860 = vrcp.f32 %v2229_v57 }
 0xf69   :  { %2955 = vrot.lane.b32.xlu0 %v6018_v50, %s6796_s28 }
 0xf6b   :  { %v2232_v25 = vpop.xlane.xlu1 %2231 }
 0xf6c   :  { %4862 = vrcp.f32 %v2232_v25 }
 0xf6f   :  { %v2235_v53 = vpop.xlane.xlu0 %2234 }
 0xf70   :  { %2953 = vrot.lane.b32.xlu1 %v6024_v21, %s6796_s28  ;;  %4864 = vrcp.f32 %v2235_v53 }
 0xf73   :  { %v2238_v30 = vpop.xlane.xlu1 %2237 }
 0xf74   :  { %4866 = vrcp.f32 %v2238_v30 }
 0xf75   :  { %v4861_v17 = vpop.eup %4860 }
 0xf76   :  { %v2251_v6 = vmul.f32 %v4861_v17, %v6307_v41 }
 0xf77   :  { %v2241_v10 = vpop.xlane.xlu0 %2240 }
 0xf78   :  { %4868 = vrcp.f32 %v2241_v10 }
 0xf79   :  { %v4863_v36 = vpop.eup %4862 }
 0xf7a   :  { %v2252_v24 = vmul.f32 %v4863_v36, %v6312_v44 }
 0xf7b   :  { %v2244_v61 = vpop.xlane.xlu1 %2243 }
 0xf7c   :  { %v2257_v50 = vpack.c.bf16 %v2252_v24, %v2251_v6  ;;  %4870 = vrcp.f32 %v2244_v61 }
 0xf7d   :  { %v4865_v14 = vpop.eup %4864 }
 0xf7e   :  { %4346 = vmatmul.mubr.msk.bf16.vlgmr.msra.gmra.mxu1 %vm105_vm1, %v2257_v50  ;;  %v2253_v41 = vmul.f32 %v4865_v14, %v6317_v55 }
 0xf7f   :  { %4376 = vmatpush3.bf16.msra.mxu1 %v6300_v52  ;;  %v2460_v21 = vpop.xlane.xlu1 %2459  ;;  %4349 = vmatprep.mubr.msk.bf16.mxu1 %vm4951_vm0, %v4950_v0 }
 0xf80   :  { %4377 = vmatprep.subr.bf16.mxu1 %v4950_v0  ;;  %4872 = vrcp.f32 %v2460_v21 }
 0xf81   :  { %v4867_v16 = vpop.eup %4866 }
 0xf82   :  { %v2254_v44 = vmul.f32 %v4867_v16, %v6322_v28 }
 0xf83   :  { %4378 = vmatpush3.bf16.msra.mxu1 %v6094_v54  ;;  %v2463_v9 = vpop.xlane.xlu0 %2462 }
 0xf84   :  { %4874 = vrcp.f32 %v2463_v9  ;;  %4379 = vmatprep.subr.bf16.mxu1 %v4950_v0  ;;  %v2258_v4 = vpack.c.bf16 %v2254_v44, %v2253_v41 }
 0xf85   :  { %v4869_v52 = vpop.eup %4868 }
 0xf86   :  { %4350 = vmatmul.mubr.msk.bf16.gmra.mxu1 %vm105_vm1, %v2258_v4  ;;  %v2255_v54 = vmul.f32 %v4869_v52, %v6327_v34 }
 0xf87   :  { %4380 = vmatpush3.bf16.msra.mxu1 %v6375_v63  ;;  %v2466_v40 = vpop.xlane.xlu1 %2465  ;;  %4353 = vmatprep.mubr.msk.bf16.mxu1 %vm4951_vm0, %v4950_v0 }
 0xf88   :  { %4411 = vmatprep.subr.bf16.mxu1 %v4950_v0  ;;  %4876 = vrcp.f32 %v2466_v40 }
 0xf89   :  { %v4871_v55 = vpop.eup %4870 }
 0xf8a   :  { %v2256_v28 = vmul.f32 %v4871_v55, %v6332_v11 }
 0xf8b   :  { %v2469_v35 = vpop.xlane.xlu1 %2468 }
 0xf8c   :  { %4878 = vrcp.f32 %v2469_v35  ;;  %v2259_v18 = vpack.c.bf16 %v2256_v28, %v2255_v54 }
 0xf8d   :  { %v4873_v56 = vpop.eup %4872 }
 0xf8e   :  { %4354 = vmatmul.mubr.msk.bf16.gmra.mxu1 %vm105_vm1, %v2259_v18  ;;  %v2482_v62 = vmul.f32 %v4873_v56, %v6337_v58 }
 0xf8f   :  { %v2472_v45 = vpop.xlane.xlu1 %2471  ;;  %4381 = vmatprep.mubr.msk.bf16.mxu1 %vm4951_vm0, %v4950_v0 }
 0xf90   :  { %4880 = vrcp.f32 %v2472_v45 }
 0xf91   :  { %v4875_v63 = vpop.eup %4874 }
 0xf92   :  { %v2483_v2 = vmul.f32 %v4875_v63, %v6342_v27 }
 0xf93   :  { %v2475_v51 = vpop.xlane.xlu1 %2474 }
 0xf94   :  { %v2488_v34 = vpack.c.bf16 %v2483_v2, %v2482_v62  ;;  %4882 = vrcp.f32 %v2475_v51 }
 0xf95   :  { %v4877_v11 = vpop.eup %4876 }
 0xf96   :  { %4382 = vmatmul.mubr.msk.bf16.vlgmr.msra.gmra.mxu1 %vm105_vm1, %v2488_v34  ;;  %v2484_v58 = vmul.f32 %v4877_v11, %v6347_v49 }
 0xf97   :  { %4412 = vmatpush3.bf16.msra.mxu1 %v6371_v1  ;;  %4385 = vmatprep.mubr.msk.bf16.mxu1 %vm4951_vm0, %v4950_v0  ;;  %v2691_v42 = vpop.xlane.xlu0 %2690 }
 0xf98   :  { %4413 = vmatprep.subr.bf16.mxu1 %v4950_v0  ;;  %4884 = vrcp.f32 %v2691_v42 }
 0xf99   :  { %v4879_v5 = vpop.eup %4878 }
 0xf9a   :  { %v2485_v27 = vmul.f32 %v4879_v5, %v6351_v20 }
 0xf9b   :  { %4414 = vmatpush3.bf16.msra.mxu1 %v6373_v26  ;;  %v2723_v37 = vpop.permute.xlu0 %2722  ;;  %v2958_v26 = vpop.permute.xlu1 %2957 }
 0xf9c   :  { %4415 = vmatprep.subr.bf16.mxu1 %v4950_v0  ;;  %v2489_v59 = vpack.c.bf16 %v2485_v27, %v2484_v58 }
 0xf9d   :  { %v4881_v1 = vpop.eup %4880 }
 0xf9e   :  { %4386 = vmatmul.mubr.msk.bf16.gmra.mxu1 %vm105_vm1, %v2489_v59  ;;  %v2486_v49 = vmul.f32 %v4881_v1, %v6355_v3 }
 0xf9f   :  { %4416 = vmatpush3.bf16.msra.mxu1 %v2723_v37  ;;  %4389 = vmatprep.mubr.msk.bf16.mxu1 %vm4951_vm0, %v4950_v0 }
 0xfa0   :  { %4447 = vmatprep.subr.bf16.mxu1 %v4950_v0 }
 0xfa1   :  { %v4883_v57 = vpop.eup %4882 }
 0xfa2   :  { %v2487_v20 = vmul.f32 %v4883_v57, %v6359_v13 }
 0xfa4   :  { %v2490_v25 = vpack.c.bf16 %v2487_v20, %v2486_v49 }
 0xfa5   :  { %v4885_v36 = vpop.eup %4884 }
 0xfa6   :  { %4390 = vmatmul.mubr.msk.bf16.gmra.mxu1 %vm105_vm1, %v2490_v25  ;;  %v2713_v13 = vmul.f32 %v4885_v36, %v6363_v32 }
 0xfa7   :  { %4417 = vmatprep.mubr.msk.bf16.mxu1 %vm4951_vm0, %v4950_v0 }
 0xfcc   :  { %v2694_v53 = vpop.xlane.xlu1 %2693 }
 0xfcd   :  { %4886 = vrcp.f32 %v2694_v53 }
 0xfd0   :  { %v2697_v30 = vpop.xlane.xlu1 %2696 }
 0xfd1   :  { %4888 = vrcp.f32 %v2697_v30 }
 0xfd4   :  { %v2706_v17 = vpop.xlane.xlu0 %2705  ;;  %v2700_v10 = vpop.xlane.xlu1 %2699 }
 0xfd5   :  { %4890 = vrcp.f32 %v2700_v10 }
 0xfd8   :  { %v2925_v6 = vpop.xlane.xlu0 %2924  ;;  %v2703_v3 = vpop.xlane.xlu1 %2702 }
 0xfd9   :  { %4892 = vrcp.f32 %v2703_v3 }
 0xfda   :  { %v4887_v24 = vpop.eup %4886  ;;  %4894 = vrcp.f32 %v2706_v17 }
 0xfdb   :  { %v2714_v61 = vmul.f32 %v4887_v24, %v6386_v48 }
 0xfdc   :  { %v2922_v50 = vpop.xlane.xlu1 %2921  ;;  %v2928_v21 = vpop.xlane.xlu0 %2927 }
 0xfdd   :  { %v2719_v14 = vpack.c.bf16 %v2714_v61, %v2713_v13  ;;  %4896 = vrcp.f32 %v2922_v50 }
 0xfde   :  { %v4889_v41 = vpop.eup %4888  ;;  %4898 = vrcp.f32 %v2925_v6 }
 0xfdf   :  { %4418 = vmatmul.mubr.msk.bf16.vlgmr.msra.gmra.mxu1 %vm105_vm1, %v2719_v14  ;;  %v2715_v48 = vmul.f32 %v4889_v41, %v6391_v12  ;;  %v4657_v41 = vld [vmem:[%s6745_s8 + $0x10] sm:$0xff]  }
 0xfe0   :  { %4448 = vmatpush3.bf16.msra.mxu1 %v2958_v26  ;;  %v2931_v16 = vpop.xlane.xlu1 %2930  ;;  %4421 = vmatprep.mubr.msk.bf16.mxu1 %vm4951_vm0, %v4950_v0  ;;  %v2956_v9 = vpop.permute.xlu0 %2955 }
 0xfe1   :  { %4449 = vmatprep.subr.bf16.mxu1 %v4950_v0  ;;  %4900 = vrcp.f32 %v2931_v16  ;;  %v4656_v16 = vld [vmem:[%s6745_s8 + $0x18] sm:$0xff]   ;;  %s6799_s8 = smov 24  }
 0xfe2   :  { %v4891_v44 = vpop.eup %4890  ;;  %4902 = vrcp.f32 %v2928_v21  ;;  %4466 = vmatpush3.bf16.msra.mxu0 %v4656_v16 }
 0xfe3   :  { %v2716_v4 = vmul.f32 %v4891_v44, %v6396_v39  ;;  %4467 = vmatprep.subr.bf16.mxu0 %v4950_v0 }
 0xfe4   :  { %4450 = vmatpush3.bf16.msra.mxu1 %v2956_v9  ;;  %v2934_v32 = vpop.xlane.xlu1 %2933 }
 0xfe5   :  { %4451 = vmatprep.subr.bf16.mxu1 %v4950_v0  ;;  %v2720_v52 = vpack.c.bf16 %v2716_v4, %v2715_v48 }
 0xfe6   :  { %v4893_v40 = vpop.eup %4892  ;;  %4468 = vmatpush3.bf16.msra.mxu0 %v4657_v41 }
 0xfe7   :  { %4422 = vmatmul.mubr.msk.bf16.gmra.mxu1 %vm105_vm1, %v2720_v52  ;;  %v4895_v54 = vpop.eup %4894  ;;  %v2717_v28 = vmul.f32 %v4893_v40, %v6404_v8  ;;  %4497 = vmatprep.subr.bf16.mxu0 %v4950_v0 }
 0xfe8   :  { %v2937_v55 = vpop.xlane.xlu1 %2936  ;;  %4425 = vmatprep.mubr.msk.bf16.mxu1 %vm4951_vm0, %v4950_v0  ;;  %v2718_v12 = vmul.f32 %v4895_v54, %v6398_v46 }
 0xfe9   :  { %4904 = vrcp.f32 %v2937_v55 }
 0xfea   :  { %v2721_v39 = vpack.c.bf16 %v2718_v12, %v2717_v28  ;;  %v4897_v18 = vpop.eup %4896  ;;  %4906 = vrcp.f32 %v2934_v32 }
 0xfeb   :  { %v4899_v56 = vpop.eup %4898  ;;  %v2944_v45 = vmul.f32 %v4897_v18, %v6408_v31 }
 0xfec   :  { %v2954_v35 = vpop.permute.xlu1 %2953  ;;  %v2945_v8 = vmul.f32 %v4899_v56, %v6406_v19 }
 0xfed   :  { %4452 = vmatpush3.bf16.msra.mxu1 %v2954_v35 }
 0xfee   :  { %4481 = vmatprep.subr.bf16.mxu1 %v4950_v0  ;;  %v2950_v63 = vpack.c.bf16 %v2945_v8, %v2944_v45  ;;  %v4901_v62 = vpop.eup %4900 }
 0xfef   :  { %4426 = vmatmul.mubr.msk.bf16.gmra.mxu1 %vm105_vm1, %v2721_v39  ;;  %v4903_v46 = vpop.eup %4902  ;;  %v2947_v2 = vmul.f32 %v4901_v62, %v6420_v33 }
 0xff0   :  { %4453 = vmatprep.mubr.msk.bf16.mxu1 %vm4951_vm0, %v4950_v0  ;;  %v2946_v51 = vmul.f32 %v4903_v46, %v6414_v23 }
 0xff2   :  { %v2951_v34 = vpack.c.bf16 %v2947_v2, %v2946_v51 }
 0xff6   :  { %v4905_v11 = vpop.eup %4904 }
 0xff7   :  { %4454 = vmatmul.mubr.msk.bf16.vlgmr.msra.gmra.mxu1 %vm105_vm1, %v2950_v63  ;;  %v4907_v31 = vpop.eup %4906  ;;  %v2949_v19 = vmul.f32 %v4905_v11, %v6428_v15 }
 0xff8   :  { %4457 = vmatprep.mubr.msk.bf16.mxu1 %vm4951_vm0, %v4950_v0  ;;  %v2948_v42 = vmul.f32 %v4907_v31, %v6424_v29 }
 0xffa   :  { %v2952_v5 = vpack.c.bf16 %v2949_v19, %v2948_v42 }
 0xfff   :  { %4458 = vmatmul.mubr.msk.bf16.gmra.mxu1 %vm105_vm1, %v2951_v34 }
0x1000   :  { %4461 = vmatprep.mubr.msk.bf16.mxu1 %vm4951_vm0, %v4950_v0 }
0x1007   :  { %4462 = vmatmul.mubr.msk.bf16.gmra.mxu1 %vm105_vm1, %v2952_v5 }
0x1008   :  { %4485 = vmatprep.mubr.msk.bf16.mxu1 %vm4951_vm0, %v4950_v0 }
0x103e   :  { %v6510_v33 = vpop.f32.mrf.mxu1 }
0x1040   :  { %v4347_v23 = vpop.f32.mrf.mxu1 }
0x1042   :  { %v6512_v58 = vpop.f32.mrf.mxu1 }
0x1044   :  { %v4348_v27 = vpop.f32.mrf.mxu1 }
0x1046   :  { %v6514_v59 = vpop.f32.mrf.mxu1 }
0x1048   :  { %v4351_v37 = vpop.f32.mrf.mxu1 }
0x104a   :  { %v6516_v1 = vpop.f32.mrf.mxu1 }
0x104c   :  { %v4352_v15 = vpop.f32.mrf.mxu1 }
0x104e   :  { %v6518_v57 = vpop.f32.mrf.mxu1 }
0x1050   :  { %v4355_v29 = vpop.f32.mrf.mxu1 }
0x1052   :  { %v6520_v49 = vpop.f32.mrf.mxu1 }
0x1054   :  { %v4356_v20 = vpop.f32.mrf.mxu1 }
0x1056   :  { %v2543_v25 = vpop.f32.mrf.mxu1 }
0x1058   :  { %v4383_v26 = vpop.f32.mrf.mxu1 }
0x105a   :  { %v2546_v53 = vpop.f32.mrf.mxu1 }
0x105b   :  { %v4592_v30 = vpack.i.bf16 %v2546_v53, %v2543_v25 }
0x105c   :  { %v4384_v17 = vpop.f32.mrf.mxu1 }
0x105d   :  { %4593 = vrot.lane.b32.xlu1 %v4592_v30, %s6797_s7 }
0x105e   :  { %v2551_v10 = vpop.f32.mrf.mxu1 }
0x1060   :  { %v4387_v36 = vpop.f32.mrf.mxu1 }
0x1062   :  { %v2554_v6 = vpop.f32.mrf.mxu1 }
0x1063   :  { %v4607_v3 = vpack.i.bf16 %v2554_v6, %v2551_v10 }
0x1064   :  { %v4388_v24 = vpop.f32.mrf.mxu1 }
0x1066   :  { %v2559_v13 = vpop.f32.mrf.mxu1 }
0x1068   :  { %v4391_v61 = vpop.f32.mrf.mxu1 }
0x106a   :  { %v2562_v50 = vpop.f32.mrf.mxu1 }
0x106b   :  { %v4622_v14 = vpack.i.bf16 %v2562_v50, %v2559_v13 }
0x106c   :  { %v4392_v21 = vpop.f32.mrf.mxu1 }
0x109f   :  { %v2774_v44 = vpop.f32.mrf.mxu1 }
0x10a1   :  { %v4419_v9 = vpop.f32.mrf.mxu1 }
0x10a3   :  { %v2777_v32 = vpop.f32.mrf.mxu1 }
0x10a4   :  { %v4597_v48 = vpack.i.bf16 %v2777_v32, %v2774_v44 }
0x10a5   :  { %v4420_v4 = vpop.f32.mrf.mxu1 }
0x10a6   :  { %4598 = vrot.lane.b32.xlu1 %v4597_v48, %s6798_s6 }
0x10a7   :  { %v2782_v52 = vpop.f32.mrf.mxu1 }
0x10a9   :  { %v4423_v40 = vpop.f32.mrf.mxu1 }
0x10ab   :  { %v2785_v55 = vpop.f32.mrf.mxu1 }
0x10ac   :  { %v4612_v51 = vpack.i.bf16 %v2785_v55, %v2782_v52 }
0x10ad   :  { %v4424_v54 = vpop.f32.mrf.mxu1 }
0x10af   :  { %v2790_v28 = vpop.f32.mrf.mxu1 }
0x10b1   :  { %v4427_v35 = vpop.f32.mrf.mxu1 }
0x10b3   :  { %v2793_v12 = vpop.f32.mrf.mxu1 }
0x10b4   :  { %v4627_v19 = vpack.i.bf16 %v2793_v12, %v2790_v28 }
0x10b5   :  { %v4428_v39 = vpop.f32.mrf.mxu1 }
0x10b7   :  { %v3005_v18 = vpop.f32.mrf.mxu1 }
0x10b9   :  { %v4455_v56 = vpop.f32.mrf.mxu1 }
0x10bb   :  { %v3008_v45 = vpop.f32.mrf.mxu1 }
0x10bc   :  { %v4602_v8 = vpack.i.bf16 %v3008_v45, %v3005_v18 }
0x10bd   :  { %v4456_v63 = vpop.f32.mrf.mxu1 }
0x10be   :  { %4603 = vrot.lane.b32.xlu1 %v4602_v8, %s6799_s8 }
0x10bf   :  { %v3013_v62 = vpop.f32.mrf.mxu1 }
0x10c1   :  { %v4459_v46 = vpop.f32.mrf.mxu1 }
0x10c2   :  { %4608 = vrot.lane.b32.xlu1 %v4607_v3, %s6797_s7 }
0x10c3   :  { %v3016_v2 = vpop.f32.mrf.mxu1 }
0x10c4   :  { %v4617_v34 = vpack.i.bf16 %v3016_v2, %v3013_v62 }
0x10c5   :  { %v4460_v11 = vpop.f32.mrf.mxu1 }
0x10c6   :  { %4613 = vrot.lane.b32.xlu1 %v4612_v51, %s6798_s6  ;;  %4618 = vrot.lane.b32.xlu0 %v4617_v34, %s6799_s8  ;;  %v3867_v11 = vld [vmem:[%s6747_s10 + $0x1] ss:$0 sm:$0xff] }
0x10c7   :  { %v3021_v31 = vpop.f32.mrf.mxu1 }
0x10c9   :  { %v4463_v42 = vpop.f32.mrf.mxu1 }
0x10ca   :  { %4623 = vrot.lane.b32.xlu1 %v4622_v14, %s6797_s7  ;;  %4628 = vrot.lane.b32.xlu0 %v4627_v19, %s6798_s6 }
0x10cb   :  { %v3024_v5 = vpop.f32.mrf.mxu1 }
0x10cc   :  { %v4632_v23 = vpack.i.bf16 %v3024_v5, %v3021_v31 }
0x10cd   :  { %v4464_v27 = vpop.f32.mrf.mxu1 }
0x10ce   :  { %4633 = vrot.lane.b32.xlu1 %v4632_v23, %s6799_s8 }
0x10cf   :  { %v4594_v37 = vpop.permute.xlu1 %4593 }
0x10d0   :  { %v4596_v29 = vunpack.i.h.bf16 %v4594_v37  ;;  %v4595_v20 = vunpack.i.l.bf16 %v4594_v37 }
0x10d2   :  { %v3101_v30 = vsel %vm388_vm3, %v6512_v58, %v4596_v29  ;;  %v3100_v17 = vsel %vm388_vm3, %v6510_v33, %v4595_v20 }
0x1118   :  { %v4599_v15 = vpop.permute.xlu1 %4598 }
0x1119   :  { %v4601_v25 = vunpack.i.h.bf16 %v4599_v15  ;;  %v4600_v26 = vunpack.i.l.bf16 %v4599_v15 }
0x111b   :  { %v3106_v6 = vsel %vm1379_vm4, %v3100_v17, %v4600_v26  ;;  %v3107_v3 = vsel %vm1379_vm4, %v3101_v30, %v4601_v25 }
0x1130   :  { %v4604_v53 = vpop.permute.xlu1 %4603 }
0x1131   :  { %v4606_v10 = vunpack.i.h.bf16 %v4604_v53  ;;  %v4605_v36 = vunpack.i.l.bf16 %v4604_v53 }
0x1133   :  { %v3112_v24 = vsel %vm1386_vm5, %v3106_v6, %v4605_v36  ;;  %v3113_v13 = vsel %vm1386_vm5, %v3107_v3, %v4606_v10 }
0x1134   :  { %v3118_v61 = vpack.c.bf16 %v3113_v13, %v3112_v24  ;;  %v4609_v50 = vpop.permute.xlu1 %4608 }
0x1135   :  { %v4611_v14 = vunpack.i.h.bf16 %v4609_v50  ;;  %v4610_v21 = vunpack.i.l.bf16 %v4609_v50 }
0x1136   :  { %4470 = vmatmul.mubr.msk.bf16.vlgmr.msra.gmra.mxu0 %vm180_vm2, %v3118_v61 }
0x1137   :  { %4473 = vmatprep.mubr.msk.bf16.mxu0 %vm4951_vm0, %v4950_v0  ;;  %v3103_v32 = vsel %vm388_vm3, %v6516_v1, %v4611_v14  ;;  %v3102_v48 = vsel %vm388_vm3, %v6514_v59, %v4610_v21 }
0x1138   :  { %v4619_v33 = vpop.permute.xlu0 %4618  ;;  %v4614_v58 = vpop.permute.xlu1 %4613 }
0x1139   :  { %v4621_v16 = vunpack.i.h.bf16 %v4619_v33  ;;  %v4620_v41 = vunpack.i.l.bf16 %v4619_v33  ;;  %v4616_v44 = vunpack.i.h.bf16 %v4614_v58  ;;  %v4615_v9 = vunpack.i.l.bf16 %v4614_v58 }
0x113b   :  { %v3108_v4 = vsel %vm1379_vm4, %v3102_v48, %v4615_v9  ;;  %v3109_v52 = vsel %vm1379_vm4, %v3103_v32, %v4616_v44 }
0x113c   :  { %v3114_v40 = vsel %vm1386_vm5, %v3108_v4, %v4620_v41  ;;  %v3115_v55 = vsel %vm1386_vm5, %v3109_v52, %v4621_v16  ;;  %v4629_v54 = vpop.permute.xlu0 %4628  ;;  %v4624_v28 = vpop.permute.xlu1 %4623 }
0x113d   :  { %v3119_v35 = vpack.c.bf16 %v3115_v55, %v3114_v40  ;;  %v4626_v12 = vunpack.i.h.bf16 %v4624_v28  ;;  %v4631_v39 = vunpack.i.h.bf16 %v4629_v54  ;;  %v4630_v18 = vunpack.i.l.bf16 %v4629_v54 }
0x113e   :  { %v4625_v56 = vunpack.i.l.bf16 %v4624_v28 }
0x113f   :  { %v3105_v1 = vsel %vm388_vm3, %v6520_v49, %v4626_v12  ;;  %4474 = vmatmul.mubr.msk.bf16.gmra.mxu0 %vm180_vm2, %v3119_v35 }
0x1140   :  { %v3104_v59 = vsel %vm388_vm3, %v6518_v57, %v4625_v56  ;;  %v4634_v45 = vpop.permute.xlu1 %4633  ;;  %4477 = vmatprep.mubr.msk.bf16.mxu0 %vm4951_vm0, %v4950_v0  ;;  %v3111_v46 = vsel %vm1379_vm4, %v3105_v1, %v4631_v39  ;;  %v3860_v57 = vld [vmem:[%s6746_s9 + $0x1] ss:$0 sm:$0xff] }
0x1141   :  { %v4636_v8 = vunpack.i.h.bf16 %v4634_v45  ;;  %v4635_v63 = vunpack.i.l.bf16 %v4634_v45  ;;  %v3110_v62 = vsel %vm1379_vm4, %v3104_v59, %v4630_v18 }
0x1143   :  { %v3116_v2 = vsel %vm1386_vm5, %v3110_v62, %v4635_v63  ;;  %v3117_v51 = vsel %vm1386_vm5, %v3111_v46, %v4636_v8 }
0x1144   :  { %v3120_v49 = vpack.c.bf16 %v3117_v51, %v3116_v2 }
0x1147   :  { %4478 = vmatmul.mubr.msk.bf16.gmra.mxu0 %vm180_vm2, %v3120_v49 }
0x1148   :  { %4513 = vmatprep.mubr.msk.bf16.mxu0 %vm4951_vm0, %v4950_v0 }
0x11f6   :  { %v3189_v34 = vpop.f32.mrf.mxu0 }
0x11f7   :  { %v3190_v31 = vadd.f32 %v3860_v57, %v3189_v34 }
0x11f8   :  { %v4471_v19 = vpop.f32.mrf.mxu0 }
0x11f9   :  { %v3220_v42 = vmul.f32 %v3867_v11, %v3190_v31 }
0x11fa   :  { %v3192_v5 = vpop.f32.mrf.mxu0 }
0x11fb   :  { %v6579_v23 = vadd.f32 %v3220_v42, %v5926_v7  ;;  %v3193_v27 = vadd.f32 %v3860_v57, %v3192_v5  ;;  %v4658_v42 = vld [vmem:[%s6748_s13 + $0x18] sm:$0xff]   ;;  %v4659_v5 = vld [vmem:[%s6748_s13 + $0x10] sm:$0xff]  }
0x11fc   :  { %v4472_v37 = vpop.f32.mrf.mxu0  ;;  %4482 = vmatpush3.bf16.msra.mxu1 %v4658_v42  ;;  %v3877_v42 = vld [vmem:[%s6752_s14 + $0x1] ss:$0 sm:$0xff] }
0x11fd   :  { %v3221_v15 = vmul.f32 %v3867_v11, %v3193_v27  ;;  %v3236_v29 = vsel %vm180_vm2, %v6579_v23, 0.0  ;;  %4483 = vmatprep.subr.bf16.mxu1 %v4950_v0 }
0x11fe   :  { %3237 = vadd.xlane.f32.xlu0 %v3236_v29 }
0x11ff   :  { %v6584_v20 = vadd.f32 %v3221_v15, %v5931_v38  ;;  %v3197_v25 = vpop.f32.mrf.mxu0 }
0x1200   :  { %v3198_v26 = vadd.f32 %v3860_v57, %v3197_v25  ;;  %4484 = vmatpush3.bf16.msra.mxu1 %v4659_v5 }
0x1201   :  { %v4475_v53 = vpop.f32.mrf.mxu0  ;;  %v3239_v30 = vsel %vm180_vm2, %v6584_v20, 0.0 }
0x1202   :  { %v3222_v17 = vmul.f32 %v3867_v11, %v3198_v26  ;;  %3240 = vadd.xlane.f32.xlu1 %v3239_v30 }
0x1203   :  { %v3200_v7 = vpop.f32.mrf.mxu0 }
0x1204   :  { %v6589_v10 = vadd.f32 %v3222_v17, %v5936_v47  ;;  %v3201_v36 = vadd.f32 %v3860_v57, %v3200_v7 }
0x1205   :  { %v4476_v6 = vpop.f32.mrf.mxu0 }
0x1206   :  { %v3223_v3 = vmul.f32 %v3867_v11, %v3201_v36  ;;  %v3242_v24 = vsel %vm180_vm2, %v6589_v10, 0.0 }
0x1207   :  { %3243 = vadd.xlane.f32.xlu0 %v3242_v24  ;;  %v3205_v38 = vpop.f32.mrf.mxu0 }
0x1208   :  { %v6594_v13 = vadd.f32 %v3223_v3, %v5941_v22  ;;  %v3206_v61 = vadd.f32 %v3860_v57, %v3205_v38 }
0x1209   :  { %v4479_v50 = vpop.f32.mrf.mxu0 }
0x120a   :  { %v3224_v14 = vmul.f32 %v3867_v11, %v3206_v61  ;;  %v3245_v21 = vsel %vm180_vm2, %v6594_v13, 0.0  ;;  %v3870_v50 = vld [vmem:[%s6749_s11 + $0x1] ss:$0 sm:$0xff] }
0x120b   :  { %3246 = vadd.xlane.f32.xlu0 %v3245_v21  ;;  %v3208_v47 = vpop.f32.mrf.mxu0 }
0x120c   :  { %v6599_v33 = vadd.f32 %v3224_v14, %v5946_v43  ;;  %v3209_v58 = vadd.f32 %v3860_v57, %v3208_v47 }
0x120d   :  { %v4480_v16 = vpop.f32.mrf.mxu0 }
0x120e   :  { %v3225_v41 = vmul.f32 %v3867_v11, %v3209_v58  ;;  %v3248_v44 = vsel %vm180_vm2, %v6599_v33, 0.0 }
0x120f   :  { %3249 = vadd.xlane.f32.xlu0 %v3248_v44  ;;  %v3871_v44 = vld [vmem:[%s6750_s12 + $0x1] ss:$0 sm:$0xff] }
0x1210   :  { %v6604_v22 = vadd.f32 %v3225_v41, %v5951_v60 }
0x1212   :  { %v3251_v9 = vsel %vm180_vm2, %v6604_v22, 0.0 }
0x1213   :  { %3252 = vadd.xlane.f32.xlu1 %v3251_v9 }
0x1287   :  { %v3238_v32 = vpop.xlane.xlu0 %3237 }
0x1288   :  { %v3254_v48 = vmul.f32 0.03125, %v3238_v32 }
0x128a   :  { %v3260_v4 = vsub.f32 %v6579_v23, %v3254_v48 }
0x128b   :  { %v3241_v43 = vpop.xlane.xlu1 %3240 }
0x128c   :  { %v3255_v52 = vmul.f32 0.03125, %v3241_v43  ;;  %v3266_v40 = vmul.f32 %v3260_v4, %v3260_v4 }
0x128e   :  { %v3261_v55 = vsub.f32 %v6584_v20, %v3255_v52  ;;  %v3272_v54 = vsel %vm180_vm2, %v3266_v40, 0.0 }
0x128f   :  { %3273 = vadd.xlane.f32.xlu0 %v3272_v54 }
0x1290   :  { %v3244_v28 = vpop.xlane.xlu0 %3243  ;;  %v3267_v35 = vmul.f32 %v3261_v55, %v3261_v55 }
0x1291   :  { %v3256_v60 = vmul.f32 0.03125, %v3244_v28 }
0x1292   :  { %v3275_v12 = vsel %vm180_vm2, %v3267_v35, 0.0 }
0x1293   :  { %v6613_v39 = vsub.f32 %v6589_v10, %v3256_v60  ;;  %3276 = vadd.xlane.f32.xlu1 %v3275_v12 }
0x1294   :  { %v3247_v18 = vpop.xlane.xlu0 %3246 }
0x1295   :  { %v3257_v56 = vmul.f32 0.03125, %v3247_v18  ;;  %v3268_v1 = vmul.f32 %v6613_v39, %v6613_v39 }
0x1297   :  { %v3263_v59 = vsub.f32 %v6594_v13, %v3257_v56  ;;  %v3278_v45 = vsel %vm180_vm2, %v3268_v1, 0.0 }
0x1298   :  { %3279 = vadd.xlane.f32.xlu0 %v3278_v45  ;;  %v3250_v8 = vpop.xlane.xlu0 %3249 }
0x1299   :  { %v3258_v63 = vmul.f32 0.03125, %v3250_v8  ;;  %v3269_v62 = vmul.f32 %v3263_v59, %v3263_v59 }
0x129b   :  { %v3264_v46 = vsub.f32 %v6599_v33, %v3258_v63  ;;  %v3281_v2 = vsel %vm180_vm2, %v3269_v62, 0.0 }
0x129c   :  { %3282 = vadd.xlane.f32.xlu1 %v3281_v2  ;;  %v3253_v51 = vpop.xlane.xlu1 %3252 }
0x129d   :  { %v3259_v49 = vmul.f32 0.03125, %v3253_v51  ;;  %v3270_v57 = vmul.f32 %v3264_v46, %v3264_v46  ;;  %v4661_v51 = vld [vmem:[%s6751_s15 + $0x70] sm:$0xff]  }
0x129f   :  { %v3265_v34 = vsub.f32 %v6604_v22, %v3259_v49  ;;  %v3284_v11 = vsel %vm180_vm2, %v3270_v57, 0.0  ;;  %v4662_v49 = vld [vmem:[%s6751_s15 + $0x68] sm:$0xff]   ;;  %v4663_v57 = vld [vmem:[%s6751_s15 + $0x60] sm:$0xff]  }
0x12a0   :  { %3285 = vadd.xlane.f32.xlu0 %v3284_v11  ;;  %v4665_v11 = vld [vmem:[%s6751_s15 + $0x50] sm:$0xff]  }
0x12a1   :  { %v3271_v31 = vmul.f32 %v3265_v34, %v3265_v34 }
0x12a3   :  { %v3287_v19 = vsel %vm180_vm2, %v3271_v31, 0.0  ;;  %v4666_v31 = vld [vmem:[%s6751_s15 + $0x48] sm:$0xff]  }
0x12a4   :  { %3288 = vadd.xlane.f32.xlu1 %v3287_v19  ;;  %v4667_v19 = vld [vmem:[%s6751_s15 + $0x40] sm:$0xff]  }
0x1318   :  { %v3274_v27 = vpop.xlane.xlu0 %3273 }
0x1319   :  { %v3290_v37 = vmul.f32 0.03125, %v3274_v27 }
0x131b   :  { %v3296_v15 = vadd.f32 1e-06, %v3290_v37 }
0x131c   :  { %v3277_v29 = vpop.xlane.xlu1 %3276 }
0x131d   :  { %4908 = vrsqrt.f32 %v3296_v15  ;;  %v3291_v25 = vmul.f32 0.03125, %v3277_v29 }
0x131f   :  { %v3297_v26 = vadd.f32 1e-06, %v3291_v25 }
0x1321   :  { %4910 = vrsqrt.f32 %v3297_v26  ;;  %v3280_v53 = vpop.xlane.xlu0 %3279 }
0x1322   :  { %v3292_v30 = vmul.f32 0.03125, %v3280_v53 }
0x1324   :  { %v3298_v17 = vadd.f32 1e-06, %v3292_v30 }
0x1325   :  { %v3283_v7 = vpop.xlane.xlu1 %3282 }
0x1326   :  { %4912 = vrsqrt.f32 %v3298_v17  ;;  %v3293_v36 = vmul.f32 0.03125, %v3283_v7 }
0x1328   :  { %v3299_v6 = vadd.f32 1e-06, %v3293_v36 }
0x1329   :  { %v3286_v3 = vpop.xlane.xlu0 %3285 }
0x132a   :  { %v4909_v24 = vpop.eup %4908  ;;  %4914 = vrsqrt.f32 %v3299_v6  ;;  %v3294_v38 = vmul.f32 0.03125, %v3286_v3 }
0x132b   :  { %v3308_v61 = vmul.f32 %v4909_v24, %v3260_v4 }
0x132c   :  { %v3300_v14 = vadd.f32 1e-06, %v3294_v38 }
0x132d   :  { %v3289_v21 = vpop.xlane.xlu1 %3288  ;;  %v3320_v16 = vmul.f32 %v3870_v50, %v3308_v61 }
0x132e   :  { %v4911_v47 = vpop.eup %4910  ;;  %4916 = vrsqrt.f32 %v3300_v14  ;;  %v3295_v58 = vmul.f32 0.03125, %v3289_v21 }
0x132f   :  { %v3309_v41 = vmul.f32 %v4911_v47, %v3261_v55  ;;  %v3332_v4 = vadd.f32 %v3871_v44, %v3320_v16 }
0x1330   :  { %v3301_v9 = vadd.f32 1e-06, %v3295_v58 }
0x1331   :  { %v3321_v32 = vmul.f32 %v3870_v50, %v3309_v41 }
0x1332   :  { %4918 = vrsqrt.f32 %v3301_v9 }
0x1333   :  { %v4913_v48 = vpop.eup %4912  ;;  %v3333_v43 = vadd.f32 %v3871_v44, %v3321_v32 }
0x1334   :  { %v3310_v52 = vmul.f32 %v4913_v48, %v6613_v39 }
0x1335   :  { %v3338_v40 = vpack.c.bf16 %v3333_v43, %v3332_v4 }
0x1336   :  { %v3322_v55 = vmul.f32 %v3870_v50, %v3310_v52 }
0x1337   :  { %v4915_v54 = vpop.eup %4914  ;;  %4486 = vmatmul.mubr.msk.bf16.vlgmr.msra.gmra.mxu1 %vm180_vm2, %v3338_v40 }
0x1338   :  { %v3311_v28 = vmul.f32 %v4915_v54, %v3263_v59  ;;  %4489 = vmatprep.mubr.msk.bf16.mxu1 %vm4951_vm0, %v4950_v0  ;;  %v3334_v18 = vadd.f32 %v3871_v44, %v3322_v55 }
0x133a   :  { %v3323_v35 = vmul.f32 %v3870_v50, %v3311_v28 }
0x133b   :  { %v4917_v60 = vpop.eup %4916 }
0x133c   :  { %v3312_v12 = vmul.f32 %v4917_v60, %v3264_v46  ;;  %v3335_v56 = vadd.f32 %v3871_v44, %v3323_v35  ;;  %v4660_v46 = vld [vmem:[%s6751_s15 + $0x78] sm:$0xff]  }
0x133d   :  { %4498 = vmatpush3.bf16.msra.mxu0 %v4660_v46 }
0x133e   :  { %v3339_v1 = vpack.c.bf16 %v3335_v56, %v3334_v18  ;;  %v3324_v39 = vmul.f32 %v3870_v50, %v3312_v12  ;;  %4499 = vmatprep.subr.bf16.mxu0 %v4950_v0 }
0x133f   :  { %v4919_v45 = vpop.eup %4918 }
0x1340   :  { %v3313_v8 = vmul.f32 %v4919_v45, %v3265_v34  ;;  %4490 = vmatmul.mubr.msk.bf16.gmra.mxu1 %vm180_vm2, %v3339_v1  ;;  %v3336_v59 = vadd.f32 %v3871_v44, %v3324_v39  ;;  %v4664_v34 = vld [vmem:[%s6751_s15 + $0x58] sm:$0xff]  }
0x1341   :  { %4493 = vmatprep.mubr.msk.bf16.mxu1 %vm4951_vm0, %v4950_v0  ;;  %4500 = vmatpush3.bf16.msra.mxu0 %v4661_v51 }
0x1342   :  { %v3325_v63 = vmul.f32 %v3870_v50, %v3313_v8  ;;  %4501 = vmatprep.subr.bf16.mxu0 %v4950_v0 }
0x1344   :  { %v3337_v62 = vadd.f32 %v3871_v44, %v3325_v63 }
0x1345   :  { %4502 = vmatpush3.bf16.msra.mxu0 %v4662_v49 }
0x1346   :  { %v3340_v2 = vpack.c.bf16 %v3337_v62, %v3336_v59  ;;  %4503 = vmatprep.subr.bf16.mxu0 %v4950_v0 }
0x1348   :  { %4494 = vmatmul.mubr.msk.bf16.gmra.mxu1 %vm180_vm2, %v3340_v2 }
0x1349   :  { %4504 = vmatpush3.bf16.msra.mxu0 %v4663_v57 }
0x134a   :  { %4505 = vmatprep.subr.bf16.mxu0 %v4950_v0 }
0x134d   :  { %4506 = vmatpush3.bf16.msra.mxu0 %v4664_v34 }
0x134e   :  { %4507 = vmatprep.subr.bf16.mxu0 %v4950_v0 }
0x1351   :  { %4508 = vmatpush3.bf16.msra.mxu0 %v4665_v11 }
0x1352   :  { %4509 = vmatprep.subr.bf16.mxu0 %v4950_v0 }
0x1355   :  { %4510 = vmatpush3.bf16.msra.mxu0 %v4666_v31 }
0x1356   :  { %4511 = vmatprep.subr.bf16.mxu0 %v4950_v0 }
0x1359   :  { %4512 = vmatpush3.bf16.msra.mxu0 %v4667_v19 }
0x13f7   :  { %v3409_v5 = vpop.f32.mrf.mxu1 }
0x13f8   :  { %v3410_v27 = vadd.f32 %v3877_v42, %v3409_v5 }
0x13f9   :  { %v4487_v37 = vpop.f32.mrf.mxu1 }
0x13fa   :  { %v3438_v15 = vmul.f32 0.044715, %v3410_v27  ;;  %v3432_v49 = vmul.f32 0.5, %v3410_v27 }
0x13fb   :  { %v3412_v29 = vpop.f32.mrf.mxu1 }
0x13fc   :  { %v3444_v25 = vmul.f32 %v3438_v15, %v3410_v27  ;;  %v3413_v26 = vadd.f32 %v3877_v42, %v3412_v29 }
0x13fd   :  { %v4488_v53 = vpop.f32.mrf.mxu1 }
0x13fe   :  { %v3450_v30 = vmul.f32 %v3444_v25, %v3410_v27  ;;  %v3439_v17 = vmul.f32 0.044715, %v3413_v26  ;;  %v3433_v57 = vmul.f32 0.5, %v3413_v26 }
0x1400   :  { %v3456_v7 = vadd.f32 %v3450_v30, %v3410_v27  ;;  %v3445_v36 = vmul.f32 %v3439_v17, %v3413_v26  ;;  %v3417_v6 = vpop.f32.mrf.mxu1 }
0x1401   :  { %v3418_v3 = vadd.f32 %v3877_v42, %v3417_v6 }
0x1402   :  { %v3462_v24 = vmul.f32 0.7978846, %v3456_v7  ;;  %v3451_v38 = vmul.f32 %v3445_v36, %v3413_v26  ;;  %v4491_v61 = vpop.f32.mrf.mxu1 }
0x1403   :  { %v3440_v50 = vmul.f32 0.044715, %v3418_v3  ;;  %v3434_v29 = vmul.f32 0.5, %v3418_v3 }
0x1404   :  { %4920 = vtanh.f32 %v3462_v24  ;;  %v3457_v14 = vadd.f32 %v3451_v38, %v3413_v26  ;;  %v3420_v21 = vpop.f32.mrf.mxu1 }
0x1405   :  { %v3446_v47 = vmul.f32 %v3440_v50, %v3418_v3  ;;  %v3421_v58 = vadd.f32 %v3877_v42, %v3420_v21 }
0x1406   :  { %v3463_v16 = vmul.f32 0.7978846, %v3457_v14  ;;  %v4492_v41 = vpop.f32.mrf.mxu1 }
0x1407   :  { %v3452_v44 = vmul.f32 %v3446_v47, %v3418_v3  ;;  %v3441_v9 = vmul.f32 0.044715, %v3421_v58  ;;  %v3435_v25 = vmul.f32 0.5, %v3421_v58  ;;  %v3910_v47 = vld [vmem:[%s6754_s17 + $0x1] ss:$0 sm:$0xff] }
0x1408   :  { %4922 = vtanh.f32 %v3463_v16  ;;  %v3425_v32 = vpop.f32.mrf.mxu1 }
0x1409   :  { %v3458_v48 = vadd.f32 %v3452_v44, %v3418_v3  ;;  %v3447_v4 = vmul.f32 %v3441_v9, %v3421_v58  ;;  %v3426_v43 = vadd.f32 %v3877_v42, %v3425_v32  ;;  %v3900_v3 = vld [vmem:[%s6753_s16 + $0x1] ss:$0 sm:$0xff] }
0x140a   :  { %v4495_v52 = vpop.f32.mrf.mxu1 }
0x140b   :  { %v3464_v40 = vmul.f32 0.7978846, %v3458_v48  ;;  %v3453_v54 = vmul.f32 %v3447_v4, %v3421_v58  ;;  %v3442_v28 = vmul.f32 0.044715, %v3426_v43  ;;  %v3436_v6 = vmul.f32 0.5, %v3426_v43 }
0x140c   :  { %v3428_v55 = vpop.f32.mrf.mxu1 }
0x140d   :  { %4924 = vtanh.f32 %v3464_v40  ;;  %v3459_v35 = vadd.f32 %v3453_v54, %v3421_v58  ;;  %v3448_v60 = vmul.f32 %v3442_v28, %v3426_v43  ;;  %v3429_v12 = vadd.f32 %v3877_v42, %v3428_v55 }
0x140e   :  { %v4496_v18 = vpop.f32.mrf.mxu1 }
0x140f   :  { %v3465_v56 = vmul.f32 0.7978846, %v3459_v35  ;;  %v3454_v1 = vmul.f32 %v3448_v60, %v3426_v43  ;;  %v3443_v45 = vmul.f32 0.044715, %v3429_v12  ;;  %v3437_v24 = vmul.f32 0.5, %v3429_v12 }
0x1411   :  { %v4921_v8 = vpop.eup %4920  ;;  %4926 = vtanh.f32 %v3465_v56  ;;  %v3460_v39 = vadd.f32 %v3454_v1, %v3426_v43  ;;  %v3449_v63 = vmul.f32 %v3443_v45, %v3429_v12 }
0x1412   :  { %v3474_v2 = vadd.f32 1.0, %v4921_v8 }
0x1413   :  { %v3466_v59 = vmul.f32 0.7978846, %v3460_v39  ;;  %v3455_v62 = vmul.f32 %v3449_v63, %v3429_v12 }
0x1414   :  { %v3480_v31 = vmul.f32 %v3474_v2, %v3432_v49 }
0x1415   :  { %v4923_v46 = vpop.eup %4922  ;;  %4928 = vtanh.f32 %v3466_v59  ;;  %v3461_v51 = vadd.f32 %v3455_v62, %v3429_v12 }
0x1416   :  { %v3475_v34 = vadd.f32 1.0, %v4923_v46 }
0x1417   :  { %v3467_v11 = vmul.f32 0.7978846, %v3461_v51 }
0x1418   :  { %v3481_v19 = vmul.f32 %v3475_v34, %v3433_v57 }
0x1419   :  { %4930 = vtanh.f32 %v3467_v11 }
0x141a   :  { %v4925_v42 = vpop.eup %4924  ;;  %v3486_v5 = vpack.c.bf16 %v3481_v19, %v3480_v31 }
0x141b   :  { %v3476_v37 = vadd.f32 1.0, %v4925_v42 }
0x141c   :  { %4514 = vmatmul.mubr.bf16.vlgmr.msra.gmra.mxu0 %v3486_v5 }
0x141d   :  { %4517 = vmatprep.mubr.msk.bf16.mxu0 %vm4951_vm0, %v4950_v0  ;;  %v3482_v30 = vmul.f32 %v3476_v37, %v3434_v29 }
0x141e   :  { %v4927_v15 = vpop.eup %4926 }
0x141f   :  { %v3477_v53 = vadd.f32 1.0, %v4927_v15 }
0x1421   :  { %v3483_v17 = vmul.f32 %v3477_v53, %v3435_v25 }
0x1422   :  { %v4929_v27 = vpop.eup %4928 }
0x1423   :  { %v3487_v26 = vpack.c.bf16 %v3483_v17, %v3482_v30  ;;  %v3478_v7 = vadd.f32 1.0, %v4929_v27 }
0x1425   :  { %4518 = vmatmul.mubr.bf16.gmra.mxu0 %v3487_v26  ;;  %v3484_v61 = vmul.f32 %v3478_v7, %v3436_v6 }
0x1426   :  { %v4931_v36 = vpop.eup %4930  ;;  %4521 = vmatprep.mubr.msk.bf16.mxu0 %vm4951_vm0, %v4950_v0 }
0x1427   :  { %v3479_v38 = vadd.f32 1.0, %v4931_v36 }
0x1429   :  { %v3485_v50 = vmul.f32 %v3479_v38, %v3437_v24 }
0x142b   :  { %v3488_v14 = vpack.c.bf16 %v3485_v50, %v3484_v61 }
0x142d   :  { %4522 = vmatmul.mubr.bf16.gmra.mxu0 %v3488_v14 }
0x14dc   :  { %v3596_v21 = vpop.f32.mrf.mxu0 }
0x14dd   :  { %v3597_v58 = vadd.f32 %v3900_v3, %v3596_v21 }
0x14de   :  { %v4515_v16 = vpop.f32.mrf.mxu0 }
0x14df   :  { %v3627_v41 = vmul.f32 %v3910_v47, %v3597_v58 }
0x14e0   :  { %v3599_v0 = vpop.f32.mrf.mxu0 }
0x14e1   :  { %v3600_v44 = vadd.f32 %v3900_v3, %v3599_v0  ;;  %v3633_v9 = vadd.f32 %v3627_v41, %v6579_v23 }
0x14e2   :  { %v4516_v32 = vpop.f32.mrf.mxu0 }
0x14e3   :  { %v3628_v48 = vmul.f32 %v3910_v47, %v3600_v44  ;;  %v3641_v4 = vsel %vm180_vm2, %v3633_v9, 0.0 }
0x14e4   :  { %3642 = vadd.xlane.f32.xlu0 %v3641_v4 }
0x14e5   :  { %v3604_v43 = vpop.f32.mrf.mxu0  ;;  %v3634_v52 = vadd.f32 %v3628_v48, %v6584_v20 }
0x14e6   :  { %v3605_v40 = vadd.f32 %v3900_v3, %v3604_v43 }
0x14e7   :  { %v4519_v54 = vpop.f32.mrf.mxu0  ;;  %v3644_v28 = vsel %vm180_vm2, %v3634_v52, 0.0 }
0x14e8   :  { %v3629_v55 = vmul.f32 %v3910_v47, %v3605_v40  ;;  %3645 = vadd.xlane.f32.xlu1 %v3644_v28 }
0x14e9   :  { %v3607_v35 = vpop.f32.mrf.mxu0 }
0x14ea   :  { %v3608_v60 = vadd.f32 %v3900_v3, %v3607_v35  ;;  %v3635_v12 = vadd.f32 %v3629_v55, %v6589_v10  ;;  %v3911_v35 = vld [vmem:[%s6755_s18] ss:$0 sm:$0xff] }
0x14eb   :  { %v4520_v18 = vpop.f32.mrf.mxu0 }
0x14ec   :  { %v3630_v23 = vmul.f32 %v3910_v47, %v3608_v60  ;;  %v3647_v56 = vsel %vm180_vm2, %v3635_v12, 0.0  ;;  %v3912_v18 = vld [vmem:[%s6756_s19] ss:$0 sm:$0xff] }
0x14ed   :  { %3648 = vadd.xlane.f32.xlu0 %v3647_v56  ;;  %v3612_v1 = vpop.f32.mrf.mxu0 }
0x14ee   :  { %v3613_v45 = vadd.f32 %v3900_v3, %v3612_v1  ;;  %v3636_v8 = vadd.f32 %v3630_v23, %v6594_v13 }
0x14ef   :  { %v4523_v20 = vpop.f32.mrf.mxu0 }
0x14f0   :  { %v3631_v39 = vmul.f32 %v3910_v47, %v3613_v45  ;;  %v3650_v63 = vsel %vm180_vm2, %v3636_v8, 0.0 }
0x14f1   :  { %3651 = vadd.xlane.f32.xlu1 %v3650_v63  ;;  %v3615_v59 = vpop.f32.mrf.mxu0 }
0x14f2   :  { %v3616_v62 = vadd.f32 %v3900_v3, %v3615_v59  ;;  %v3637_v2 = vadd.f32 %v3631_v39, %v6599_v33 }
0x14f3   :  { %v4524_v46 = vpop.f32.mrf.mxu0 }
0x14f4   :  { %v3632_v10 = vmul.f32 %v3910_v47, %v3616_v62  ;;  %v3653_v51 = vsel %vm180_vm2, %v3637_v2, 0.0 }
0x14f5   :  { %3654 = vadd.xlane.f32.xlu0 %v3653_v51 }
0x14f6   :  { %v3638_v49 = vadd.f32 %v3632_v10, %v6604_v22 }
0x14f8   :  { %v3656_v57 = vsel %vm180_vm2, %v3638_v49, 0.0 }
0x14f9   :  { %3657 = vadd.xlane.f32.xlu1 %v3656_v57 }
0x156d   :  { %v3643_v13 = vpop.xlane.xlu0 %3642 }
0x156e   :  { %v3659_v34 = vmul.f32 0.03125, %v3643_v13 }
0x1570   :  { %v3665_v11 = vsub.f32 %v3633_v9, %v3659_v34 }
0x1571   :  { %v3646_v31 = vpop.xlane.xlu1 %3645 }
0x1572   :  { %v3660_v19 = vmul.f32 0.03125, %v3646_v31  ;;  %v3671_v42 = vmul.f32 %v3665_v11, %v3665_v11 }
0x1574   :  { %v3666_v5 = vsub.f32 %v3634_v52, %v3660_v19  ;;  %v3677_v37 = vsel %vm180_vm2, %v3671_v42, 0.0 }
0x1575   :  { %3678 = vadd.xlane.f32.xlu0 %v3677_v37 }
0x1576   :  { %v3649_v33 = vpop.xlane.xlu0 %3648  ;;  %v3672_v15 = vmul.f32 %v3666_v5, %v3666_v5 }
0x1577   :  { %v3661_v29 = vmul.f32 0.03125, %v3649_v33 }
0x1578   :  { %v3680_v25 = vsel %vm180_vm2, %v3672_v15, 0.0 }
0x1579   :  { %v3667_v53 = vsub.f32 %v3635_v12, %v3661_v29  ;;  %3681 = vadd.xlane.f32.xlu1 %v3680_v25 }
0x157a   :  { %v3652_v22 = vpop.xlane.xlu1 %3651 }
0x157b   :  { %v3662_v30 = vmul.f32 0.03125, %v3652_v22  ;;  %v3673_v17 = vmul.f32 %v3667_v53, %v3667_v53 }
0x157d   :  { %v3668_v27 = vsub.f32 %v3636_v8, %v3662_v30  ;;  %v3683_v26 = vsel %vm180_vm2, %v3673_v17, 0.0 }
0x157e   :  { %3684 = vadd.xlane.f32.xlu0 %v3683_v26  ;;  %v3655_v7 = vpop.xlane.xlu0 %3654 }
0x157f   :  { %v3663_v36 = vmul.f32 0.03125, %v3655_v7  ;;  %v3674_v6 = vmul.f32 %v3668_v27, %v3668_v27 }
0x1581   :  { %v3669_v24 = vsub.f32 %v3637_v2, %v3663_v36  ;;  %v3686_v38 = vsel %vm180_vm2, %v3674_v6, 0.0 }
0x1582   :  { %3687 = vadd.xlane.f32.xlu1 %v3686_v38  ;;  %v3658_v61 = vpop.xlane.xlu1 %3657 }
0x1583   :  { %v3664_v50 = vmul.f32 0.03125, %v3658_v61  ;;  %v3675_v14 = vmul.f32 %v3669_v24, %v3669_v24 }
0x1585   :  { %v3670_v3 = vsub.f32 %v3638_v49, %v3664_v50  ;;  %v3689_v21 = vsel %vm180_vm2, %v3675_v14, 0.0 }
0x1586   :  { %3690 = vadd.xlane.f32.xlu0 %v3689_v21 }
0x1587   :  { %v3676_v47 = vmul.f32 %v3670_v3, %v3670_v3 }
0x1589   :  { %v3692_v58 = vsel %vm180_vm2, %v3676_v47, 0.0 }
0x158a   :  { %3693 = vadd.xlane.f32.xlu1 %v3692_v58 }
0x15fe   :  { %v3679_v16 = vpop.xlane.xlu0 %3678 }
0x15ff   :  { %v3695_v41 = vmul.f32 0.03125, %v3679_v16 }
0x1601   :  { %v3701_v0 = vadd.f32 1e-06, %v3695_v41 }
0x1602   :  { %v3682_v44 = vpop.xlane.xlu1 %3681 }
0x1603   :  { %4932 = vrsqrt.f32 %v3701_v0  ;;  %v3696_v9 = vmul.f32 0.03125, %v3682_v44 }
0x1605   :  { %v3702_v32 = vadd.f32 1e-06, %v3696_v9 }
0x1607   :  { %4934 = vrsqrt.f32 %v3702_v32  ;;  %v3685_v48 = vpop.xlane.xlu0 %3684 }
0x1608   :  { %v3697_v4 = vmul.f32 0.03125, %v3685_v48 }
0x160a   :  { %v3703_v43 = vadd.f32 1e-06, %v3697_v4 }
0x160b   :  { %v3688_v52 = vpop.xlane.xlu1 %3687 }
0x160c   :  { %4936 = vrsqrt.f32 %v3703_v43  ;;  %v3698_v40 = vmul.f32 0.03125, %v3688_v52 }
0x160e   :  { %v3704_v54 = vadd.f32 1e-06, %v3698_v40 }
0x160f   :  { %v3691_v28 = vpop.xlane.xlu0 %3690 }
0x1610   :  { %v4933_v55 = vpop.eup %4932  ;;  %4938 = vrsqrt.f32 %v3704_v54  ;;  %v3699_v60 = vmul.f32 0.03125, %v3691_v28 }
0x1611   :  { %v3713_v12 = vmul.f32 %v4933_v55, %v3665_v11 }
0x1612   :  { %v3705_v23 = vadd.f32 1e-06, %v3699_v60 }
0x1613   :  { %v3725_v56 = vmul.f32 %v3911_v35, %v3713_v12  ;;  %v3694_v1 = vpop.xlane.xlu1 %3693 }
0x1614   :  { %v4935_v45 = vpop.eup %4934  ;;  %4940 = vrsqrt.f32 %v3705_v23  ;;  %v3700_v8 = vmul.f32 0.03125, %v3694_v1 }
0x1615   :  { %v3737_v20 = vadd.f32 %v3912_v18, %v3725_v56  ;;  %v3714_v39 = vmul.f32 %v4935_v45, %v3666_v5 }
0x1616   :  { %v3706_v63 = vadd.f32 1e-06, %v3700_v8 }
0x1617   :  { %3743 = vst.msk [vmem:[%s6757_s20] sm:$0xff] %vm180_vm2, %v3737_v20  ;;  %v3726_v59 = vmul.f32 %v3911_v35, %v3714_v39 }
0x1618   :  { %4942 = vrsqrt.f32 %v3706_v63 }
0x1619   :  { %v4937_v62 = vpop.eup %4936  ;;  %v3738_v2 = vadd.f32 %v3912_v18, %v3726_v59 }
0x161a   :  { %v3715_v46 = vmul.f32 %v4937_v62, %v3667_v53 }
0x161b   :  { %3744 = vst.msk [vmem:[%s6757_s20 + $0x8] sm:$0xff] %vm180_vm2, %v3738_v2 }
0x161c   :  { %v3727_v10 = vmul.f32 %v3911_v35, %v3715_v46 }
0x161d   :  { %v4939_v51 = vpop.eup %4938 }
0x161e   :  { %v3739_v49 = vadd.f32 %v3912_v18, %v3727_v10  ;;  %v3716_v57 = vmul.f32 %v4939_v51, %v3668_v27 }
0x1620   :  { %3745 = vst.msk [vmem:[%s6757_s20 + $0x10] sm:$0xff] %vm180_vm2, %v3739_v49  ;;  %v3728_v13 = vmul.f32 %v3911_v35, %v3716_v57 }
0x1621   :  { %v4941_v34 = vpop.eup %4940 }
0x1622   :  { %v3740_v11 = vadd.f32 %v3912_v18, %v3728_v13  ;;  %v3717_v31 = vmul.f32 %v4941_v34, %v3669_v24 }
0x1624   :  { %3746 = vst.msk [vmem:[%s6757_s20 + $0x18] sm:$0xff] %vm180_vm2, %v3740_v11  ;;  %v3729_v19 = vmul.f32 %v3911_v35, %v3717_v31 }
0x1625   :  { %v4943_v42 = vpop.eup %4942 }
0x1626   :  { %v3741_v5 = vadd.f32 %v3912_v18, %v3729_v19  ;;  %v3718_v37 = vmul.f32 %v4943_v42, %v3670_v3 }
0x1628   :  { %3747 = vst.msk [vmem:[%s6757_s20 + $0x20] sm:$0xff] %vm180_vm2, %v3741_v5  ;;  %v3730_v33 = vmul.f32 %v3911_v35, %v3718_v37 }
0x162a   :  { %v3742_v15 = vadd.f32 %v3912_v18, %v3730_v33 }
0x162c   :  { %3748 = vst.msk [vmem:[%s6757_s20 + $0x28] sm:$0xff] %vm180_vm2, %v3742_v15 }

</bundles_post_ra>
